<compile_context>
chip_gen: v6e
topology: v6e:2x2x1
jax: 0.10.0
libtpu: 0.0.40
codegen_flags: <defaults>
</compile_context>

<pallas_src>
import numpy as np
import jax
import jax.numpy as jnp
from jax.experimental import pallas as pl
from jax.experimental.pallas import tpu as pltpu

D_MODEL = 32
NHEAD = 4
HEAD_DIM = D_MODEL // NHEAD
DFF = 128
NUM_EMB = 32
N_ENC = 2
N_DEC = 2
SEQ = 8
LN_EPS = 1e-5
SCALE = HEAD_DIM ** -0.5
LANES = 128


# ---------------- static parameter-slab layout (name -> (row_off, rows, cols)) ----

def _r8(n):
    return -(-n // 8) * 8


def _build_layout():
    layout = {}
    off = 0

    def add(name, rows, cols):
        nonlocal off
        layout[name] = (off, rows, cols)
        off += _r8(rows)          # keep every block 8-sublane aligned

    def add_attn(prefix):
        for nm in ("q", "k", "v"):
            add(f"{prefix}.w{nm}", NHEAD * HEAD_DIM, D_MODEL)   # head-major (h*hd, d)
            add(f"{prefix}.b{nm}", NHEAD * SEQ, HEAD_DIM)       # pre-broadcast over S
        add(f"{prefix}.wo", NHEAD * HEAD_DIM, D_MODEL)          # (h*hd, d_out)
        add(f"{prefix}.bo", 1, D_MODEL)

    def add_norm(prefix):
        add(f"{prefix}.g", 1, D_MODEL)
        add(f"{prefix}.b", 1, D_MODEL)

    def add_ffn(prefix):
        add(f"{prefix}.w1", D_MODEL, DFF)
        add(f"{prefix}.b1", 1, DFF)
        add(f"{prefix}.w2", DFF, D_MODEL)
        add(f"{prefix}.b2", 1, D_MODEL)

    add("emb", NUM_EMB, D_MODEL)
    for i in range(N_ENC):
        add_attn(f"enc{i}.self")
        add_norm(f"enc{i}.norm1")
        add_ffn(f"enc{i}.ffn")
        add_norm(f"enc{i}.norm2")
    add_norm("enc_norm")
    for i in range(N_DEC):
        add_attn(f"dec{i}.self")
        add_norm(f"dec{i}.norm1")
        add_attn(f"dec{i}.cross")
        add_norm(f"dec{i}.norm2")
        add_ffn(f"dec{i}.ffn")
        add_norm(f"dec{i}.norm3")
    add_norm("dec_norm")
    return layout, _r8(off)


_LAYOUT, _SLAB_ROWS = _build_layout()   # 2320 rows x 128 lanes x f32 ~= 1.1 MiB


# ---------------- fused Pallas kernel (whole forward pass) ----------------

def _transformer_kernel(ids_ref, slab_ref, out_ref):
    def P(name):
        off, r, c = _LAYOUT[name]
        return slab_ref[off:off + r, :c]          # static slice (free)

    # ---- embedding: in-kernel one-hot matmul
    ids = ids_ref[...]                                                  # (S, 1) i32
    vocab_iota = jax.lax.broadcasted_iota(jnp.int32, (SEQ, NUM_EMB), 1)
    onehot = (ids == vocab_iota).astype(jnp.float32)                    # (S, V)
    x_emb = jnp.dot(onehot, P("emb"), preferred_element_type=jnp.float32)

    def layer_norm(y, prefix):
        mu = jnp.mean(y, axis=-1, keepdims=True)
        ms = jnp.mean(y * y, axis=-1, keepdims=True)       # independent reductions
        var = ms - mu * mu
        return (y - mu) * jax.lax.rsqrt(var + LN_EPS) * P(f"{prefix}.g") + P(f"{prefix}.b")

    def head_proj(x, prefix, which):
        # x: (S, D) -> (H, S, HD); weight stored head-major as (H*HD, D)
        w3 = P(f"{prefix}.w{which}").reshape(NHEAD, HEAD_DIM, D_MODEL)  # free regroup
        b3 = P(f"{prefix}.b{which}").reshape(NHEAD, SEQ, HEAD_DIM)      # free regroup
        xb = jnp.broadcast_to(x, (NHEAD, SEQ, D_MODEL))
        return jnp.einsum('hsd,hkd->hsk', xb, w3,
                          preferred_element_type=jnp.float32) + b3

    def attention(q, k, v):
        # q, k, v: (H, S, HD) -- canonical leading-batch einsums only
        s = jnp.einsum('hqd,hkd->hqk', q, k,
                       preferred_element_type=jnp.float32) * SCALE
        m = jnp.max(s, axis=-1, keepdims=True)
        p = jnp.exp(s - m)
        p = p * pl.reciprocal(jnp.sum(p, axis=-1, keepdims=True), approx=True)
        return jnp.einsum('hqk,hkd->hqd', p, v, preferred_element_type=jnp.float32)

    def out_proj(o, prefix):
        wo3 = P(f"{prefix}.wo").reshape(NHEAD, HEAD_DIM, D_MODEL)       # free regroup
        y = jnp.einsum('hqd,hdo->hqo', o, wo3, preferred_element_type=jnp.float32)
        return jnp.sum(y, axis=0) + P(f"{prefix}.bo")                   # (S, D)

    def self_mha(x, prefix):
        q = head_proj(x, prefix, "q")
        k = head_proj(x, prefix, "k")
        v = head_proj(x, prefix, "v")
        return out_proj(attention(q, k, v), prefix)

    def ffn(x, prefix):
        h = jnp.dot(x, P(f"{prefix}.w1"),
                    preferred_element_type=jnp.float32) + P(f"{prefix}.b1")
        h = jnp.maximum(h, 0.0)
        return jnp.dot(h, P(f"{prefix}.w2"),
                       preferred_element_type=jnp.float32) + P(f"{prefix}.b2")

    # TODO(synk): dropout(p=0.1) uses eval-mode identity semantics (model.eval()).

    # ---- encoder (src = embedded tokens), post-norm layers
    mem = x_emb
    for i in range(N_ENC):
        mem = layer_norm(mem + self_mha(mem, f"enc{i}.self"), f"enc{i}.norm1")
        mem = layer_norm(mem + ffn(mem, f"enc{i}.ffn"), f"enc{i}.norm2")
    mem = layer_norm(mem, "enc_norm")

    # ---- cross-attention K/V hoisted out of the decoder loop (mem is fixed)
    cross_kv = [(head_proj(mem, f"dec{i}.cross", "k"),
                 head_proj(mem, f"dec{i}.cross", "v")) for i in range(N_DEC)]

    # ---- decoder (tgt = embedded tokens, memory = encoder output), no masks
    y = x_emb
    for i in range(N_DEC):
        y = layer_norm(y + self_mha(y, f"dec{i}.self"), f"dec{i}.norm1")
        q = head_proj(y, f"dec{i}.cross", "q")
        k_c, v_c = cross_kv[i]
        y = layer_norm(y + out_proj(attention(q, k_c, v_c), f"dec{i}.cross"),
                       f"dec{i}.norm2")
        y = layer_norm(y + ffn(y, f"dec{i}.ffn"), f"dec{i}.norm3")
    y = layer_norm(y, "dec_norm")

    out_ref[...] = y


# ---------------- host wrapper (single pallas_call, no grid) ----------------

def forward(param_slab, token_ids):
    ids2d = token_ids.astype(jnp.int32).reshape(SEQ, 1)
    return pl.pallas_call(
        _transformer_kernel,
        out_shape=jax.ShapeDtypeStruct((SEQ, D_MODEL), jnp.float32),
        in_specs=[pl.BlockSpec(memory_space=pltpu.MemorySpace.VMEM),
                  pl.BlockSpec(memory_space=pltpu.MemorySpace.VMEM)],
        out_specs=pl.BlockSpec(memory_space=pltpu.MemorySpace.VMEM),
        cost_estimate=pl.CostEstimate(flops=1_000_000, transcendentals=2_000,
                                      bytes_accessed=1_200_000),
    )(ids2d, param_slab)


# ------------- one-time parameter packing into the lane-dense slab -------------

def prepare_params(params):
    """Pack PyTorch-layout params into one (rows, 128) f32 slab (eager, once)."""
    slab = np.zeros((_SLAB_ROWS, LANES), np.float32)

    def put(name, arr):
        off, r, c = _LAYOUT[name]
        slab[off:off + r, :c] = np.asarray(arr, np.float32).reshape(r, c)

    def put_attn(prefix, p):
        w = np.asarray(p['in_proj_w'], np.float32)          # (3D, D), rows = out chan
        b = np.asarray(p['in_proj_b'], np.float32)          # (3D,)
        for idx, nm in enumerate(("q", "k", "v")):
            wi = w[idx * D_MODEL:(idx + 1) * D_MODEL, :]    # (D, D) head-major rows
            put(f"{prefix}.w{nm}", wi)
            bi = b[idx * D_MODEL:(idx + 1) * D_MODEL].reshape(NHEAD, 1, HEAD_DIM)
            bi = np.broadcast_to(bi, (NHEAD, SEQ, HEAD_DIM))
            put(f"{prefix}.b{nm}", np.ascontiguousarray(bi))
        put(f"{prefix}.wo", np.asarray(p['out_w'], np.float32).T)   # (h*hd, d_out)
        put(f"{prefix}.bo", np.asarray(p['out_b'], np.float32).reshape(1, D_MODEL))

    def put_norm(prefix, g, b):
        put(f"{prefix}.g", np.asarray(g, np.float32).reshape(1, -1))
        put(f"{prefix}.b", np.asarray(b, np.float32).reshape(1, -1))

    def put_ffn(prefix, p):
        put(f"{prefix}.w1", np.asarray(p['lin1_w'], np.float32).T)
        put(f"{prefix}.b1", np.asarray(p['lin1_b'], np.float32).reshape(1, -1))
        put(f"{prefix}.w2", np.asarray(p['lin2_w'], np.float32).T)
        put(f"{prefix}.b2", np.asarray(p['lin2_b'], np.float32).reshape(1, -1))

    put("emb", params['emb'])
    for i, lp in enumerate(params['enc']):
        put_attn(f"enc{i}.self", lp['self_attn'])
        put_norm(f"enc{i}.norm1", lp['norm1_g'], lp['norm1_b'])
        put_ffn(f"enc{i}.ffn", lp)
        put_norm(f"enc{i}.norm2", lp['norm2_g'], lp['norm2_b'])
    put_norm("enc_norm", params['enc_norm_g'], params['enc_norm_b'])
    for i, lp in enumerate(params['dec']):
        put_attn(f"dec{i}.self", lp['self_attn'])
        put_norm(f"dec{i}.norm1", lp['norm1_g'], lp['norm1_b'])
        put_attn(f"dec{i}.cross", lp['cross_attn'])
        put_norm(f"dec{i}.norm2", lp['norm2_g'], lp['norm2_b'])
        put_ffn(f"dec{i}.ffn", lp)
        put_norm(f"dec{i}.norm3", lp['norm3_g'], lp['norm3_b'])
    put_norm("dec_norm", params['dec_norm_g'], params['dec_norm_b'])
    return jnp.asarray(slab)


# ---------------- deterministic parameter init (PyTorch layout) ----------------

def _keygen(key):
    while True:
        key, sub = jax.random.split(key)
        yield sub


def _init_attn(kg, d):
    return {
        'in_proj_w': 0.05 * jax.random.normal(next(kg), (3 * d, d), jnp.float32),
        'in_proj_b': 0.01 * jax.random.normal(next(kg), (3 * d,), jnp.float32),
        'out_w': 0.05 * jax.random.normal(next(kg), (d, d), jnp.float32),
        'out_b': 0.01 * jax.random.normal(next(kg), (d,), jnp.float32),
    }


def _init_ffn_norms(kg, d, dff, n_norms):
    p = {
        'lin1_w': 0.05 * jax.random.normal(next(kg), (dff, d), jnp.float32),
        'lin1_b': 0.01 * jax.random.normal(next(kg), (dff,), jnp.float32),
        'lin2_w': 0.05 * jax.random.normal(next(kg), (d, dff), jnp.float32),
        'lin2_b': 0.01 * jax.random.normal(next(kg), (d,), jnp.float32),
    }
    for i in range(1, n_norms + 1):
        p[f'norm{i}_g'] = jnp.ones((d,), jnp.float32)
        p[f'norm{i}_b'] = jnp.zeros((d,), jnp.float32)
    return p


def init_params(key, num_embeddings=NUM_EMB, d=D_MODEL, dff=DFF,
                n_enc=N_ENC, n_dec=N_DEC):
    kg = _keygen(key)
    params = {'emb': jax.random.normal(next(kg), (num_embeddings, d), jnp.float32)}
    enc = []
    for _ in range(n_enc):
        lp = {'self_attn': _init_attn(kg, d)}
        lp.update(_init_ffn_norms(kg, d, dff, n_norms=2))
        enc.append(lp)
    dec = []
    for _ in range(n_dec):
        lp = {'self_attn': _init_attn(kg, d), 'cross_attn': _init_attn(kg, d)}
        lp.update(_init_ffn_norms(kg, d, dff, n_norms=3))
        dec.append(lp)
    params['enc'] = enc
    params['dec'] = dec
    params['enc_norm_g'] = jnp.ones((d,), jnp.float32)
    params['enc_norm_b'] = jnp.zeros((d,), jnp.float32)
    params['dec_norm_g'] = jnp.ones((d,), jnp.float32)
    params['dec_norm_b'] = jnp.zeros((d,), jnp.float32)
    return params


if __name__ == "__main__":
    key = jax.random.PRNGKey(0)
    k_param, k_tok = jax.random.split(key)
    params = init_params(k_param)
    param_slab = prepare_params(params)           # one-time packing (eager)
    token_ids = jax.random.randint(k_tok, (SEQ,), 0, NUM_EMB, dtype=jnp.int32)

    fwd = jax.jit(forward)
    out = jax.block_until_ready(fwd(param_slab, token_ids))

    assert out.shape == (SEQ, D_MODEL), out.shape
    assert out.dtype == jnp.float32
    assert bool(jnp.all(jnp.isfinite(out)))
    print("KERNEL_OK")
</pallas_src>

<mosaic_0001>
module attributes {stable_mosaic.version = 11 : i64} {
  func.func @_transformer_kernel(%arg0: memref<8x1xi32, #tpu.memory_space<vmem>>, %arg1: memref<2320x128xf32, #tpu.memory_space<vmem>>, %arg2: memref<8x32xf32, #tpu.memory_space<vmem>>) attributes {dimension_semantics = [], scalar_prefetch = 0 : i64, scratch_operands = 0 : i64, tpu.core_type = #tpu.core_type<tc>} {
    %c0 = arith.constant 0 : index
    %c0_0 = arith.constant 0 : index
    %0 = vector.load %arg0[%c0, %c0_0] : memref<8x1xi32, #tpu.memory_space<vmem>>, vector<8x1xi32>
    %1 = tpu.iota {dimensions = array<i32: 1>} : vector<8x32xi32>
    %2 = vector.broadcast %0 : vector<8x1xi32> to vector<8x32xi32>
    %3 = arith.cmpi eq, %2, %1 : vector<8x32xi32>
    %4 = arith.extui %3 : vector<8x32xi1> to vector<8x32xi32>
    %5 = arith.sitofp %4 : vector<8x32xi32> to vector<8x32xf32>
    %c0_1 = arith.constant 0 : index
    %c0_2 = arith.constant 0 : index
    %6 = vector.load %arg1[%c0_1, %c0_2] : memref<2320x128xf32, #tpu.memory_space<vmem>>, vector<32x32xf32>
    %cst = arith.constant dense<0.000000e+00> : vector<8x32xf32>
    %7 = tpu.matmul %5, %6, %cst {dimension_numbers = #tpu.dot_dimension_numbers<[1], [0], [0], [1], [0, 0, 1, 1], [], []>} : vector<8x32xf32>, vector<32x32xf32>, vector<8x32xf32> -> vector<8x32xf32>
    %c32 = arith.constant 32 : index
    %c0_3 = arith.constant 0 : index
    %8 = vector.load %arg1[%c32, %c0_3] : memref<2320x128xf32, #tpu.memory_space<vmem>>, vector<32x32xf32>
    %9 = vector.shape_cast %8 : vector<32x32xf32> to vector<4x8x32xf32>
    %c64 = arith.constant 64 : index
    %c0_4 = arith.constant 0 : index
    %10 = vector.load %arg1[%c64, %c0_4] : memref<2320x128xf32, #tpu.memory_space<vmem>>, vector<32x8xf32>
    %11 = vector.shape_cast %10 : vector<32x8xf32> to vector<4x8x8xf32>
    %12 = vector.shape_cast %7 : vector<8x32xf32> to vector<1x8x32xf32>
    %13 = vector.broadcast %12 : vector<1x8x32xf32> to vector<4x8x32xf32>
    "tpu.trace_start"() <{level = 10 : i32, message = "hsd,hkd->hsk"}> : () -> ()
    %cst_5 = arith.constant dense<0.000000e+00> : vector<4x8x8xf32>
    %14 = tpu.matmul %13, %9, %cst_5 {dimension_numbers = #tpu.dot_dimension_numbers<[2], [2], [1], [1], [0, 0, 0, 1, 1, 1], [0], [0]>} : vector<4x8x32xf32>, vector<4x8x32xf32>, vector<4x8x8xf32> -> vector<4x8x8xf32>
    "tpu.trace_stop"() : () -> ()
    %15 = arith.addf %14, %11 : vector<4x8x8xf32>
    %c96 = arith.constant 96 : index
    %c0_6 = arith.constant 0 : index
    %16 = vector.load %arg1[%c96, %c0_6] : memref<2320x128xf32, #tpu.memory_space<vmem>>, vector<32x32xf32>
    %17 = vector.shape_cast %16 : vector<32x32xf32> to vector<4x8x32xf32>
    %c128 = arith.constant 128 : index
    %c0_7 = arith.constant 0 : index
    %18 = vector.load %arg1[%c128, %c0_7] : memref<2320x128xf32, #tpu.memory_space<vmem>>, vector<32x8xf32>
    %19 = vector.shape_cast %18 : vector<32x8xf32> to vector<4x8x8xf32>
    %20 = vector.shape_cast %7 : vector<8x32xf32> to vector<1x8x32xf32>
    %21 = vector.broadcast %20 : vector<1x8x32xf32> to vector<4x8x32xf32>
    "tpu.trace_start"() <{level = 10 : i32, message = "hsd,hkd->hsk"}> : () -> ()
    %cst_8 = arith.constant dense<0.000000e+00> : vector<4x8x8xf32>
    %22 = tpu.matmul %21, %17, %cst_8 {dimension_numbers = #tpu.dot_dimension_numbers<[2], [2], [1], [1], [0, 0, 0, 1, 1, 1], [0], [0]>} : vector<4x8x32xf32>, vector<4x8x32xf32>, vector<4x8x8xf32> -> vector<4x8x8xf32>
    "tpu.trace_stop"() : () -> ()
    %23 = arith.addf %22, %19 : vector<4x8x8xf32>
    %c160 = arith.constant 160 : index
    %c0_9 = arith.constant 0 : index
    %24 = vector.load %arg1[%c160, %c0_9] : memref<2320x128xf32, #tpu.memory_space<vmem>>, vector<32x32xf32>
    %25 = vector.shape_cast %24 : vector<32x32xf32> to vector<4x8x32xf32>
    %c192 = arith.constant 192 : index
    %c0_10 = arith.constant 0 : index
    %26 = vector.load %arg1[%c192, %c0_10] : memref<2320x128xf32, #tpu.memory_space<vmem>>, vector<32x8xf32>
    %27 = vector.shape_cast %26 : vector<32x8xf32> to vector<4x8x8xf32>
    %28 = vector.shape_cast %7 : vector<8x32xf32> to vector<1x8x32xf32>
    %29 = vector.broadcast %28 : vector<1x8x32xf32> to vector<4x8x32xf32>
    "tpu.trace_start"() <{level = 10 : i32, message = "hsd,hkd->hsk"}> : () -> ()
    %cst_11 = arith.constant dense<0.000000e+00> : vector<4x8x8xf32>
    %30 = tpu.matmul %29, %25, %cst_11 {dimension_numbers = #tpu.dot_dimension_numbers<[2], [2], [1], [1], [0, 0, 0, 1, 1, 1], [0], [0]>} : vector<4x8x32xf32>, vector<4x8x32xf32>, vector<4x8x8xf32> -> vector<4x8x8xf32>
    "tpu.trace_stop"() : () -> ()
    %31 = arith.addf %30, %27 : vector<4x8x8xf32>
    "tpu.trace_start"() <{level = 10 : i32, message = "hqd,hkd->hqk"}> : () -> ()
    %cst_12 = arith.constant dense<0.000000e+00> : vector<4x8x8xf32>
    %32 = tpu.matmul %15, %23, %cst_12 {dimension_numbers = #tpu.dot_dimension_numbers<[2], [2], [1], [1], [0, 0, 0, 1, 1, 1], [0], [0]>} : vector<4x8x8xf32>, vector<4x8x8xf32>, vector<4x8x8xf32> -> vector<4x8x8xf32>
    "tpu.trace_stop"() : () -> ()
    %cst_13 = arith.constant 0.353553385 : f32
    %33 = vector.broadcast %cst_13 : f32 to vector<4x8x8xf32>
    %34 = arith.mulf %32, %33 : vector<4x8x8xf32>
    %cst_14 = arith.constant dense<0xFF800000> : vector<4x8xf32>
    %35 = vector.multi_reduction <maximumf>, %34, %cst_14 [2] : vector<4x8x8xf32> to vector<4x8xf32>
    %36 = vector.shape_cast %35 : vector<4x8xf32> to vector<4x8x1xf32>
    %37 = vector.broadcast %36 : vector<4x8x1xf32> to vector<4x8x8xf32>
    %38 = arith.subf %34, %37 : vector<4x8x8xf32>
    %39 = math.exp %38 : vector<4x8x8xf32>
    %cst_15 = arith.constant dense<0.000000e+00> : vector<4x8xf32>
    %40 = vector.multi_reduction <add>, %39, %cst_15 [2] : vector<4x8x8xf32> to vector<4x8xf32>
    %41 = vector.shape_cast %40 : vector<4x8xf32> to vector<4x8x1xf32>
    %42 = tpu.reciprocal %41 {approx = true} : vector<4x8x1xf32> -> vector<4x8x1xf32>
    %43 = vector.broadcast %42 : vector<4x8x1xf32> to vector<4x8x8xf32>
    %44 = arith.mulf %39, %43 : vector<4x8x8xf32>
    "tpu.trace_start"() <{level = 10 : i32, message = "hqk,hkd->hqd"}> : () -> ()
    %cst_16 = arith.constant dense<0.000000e+00> : vector<4x8x8xf32>
    %45 = tpu.matmul %44, %31, %cst_16 {dimension_numbers = #tpu.dot_dimension_numbers<[2], [1], [1], [2], [0, 0, 0, 1, 1, 2], [0], [0]>} : vector<4x8x8xf32>, vector<4x8x8xf32>, vector<4x8x8xf32> -> vector<4x8x8xf32>
    "tpu.trace_stop"() : () -> ()
    %c224 = arith.constant 224 : index
    %c0_17 = arith.constant 0 : index
    %46 = vector.load %arg1[%c224, %c0_17] : memref<2320x128xf32, #tpu.memory_space<vmem>>, vector<32x32xf32>
    %47 = vector.shape_cast %46 : vector<32x32xf32> to vector<4x8x32xf32>
    "tpu.trace_start"() <{level = 10 : i32, message = "hqd,hdo->hqo"}> : () -> ()
    %cst_18 = arith.constant dense<0.000000e+00> : vector<4x8x32xf32>
    %48 = tpu.matmul %45, %47, %cst_18 {dimension_numbers = #tpu.dot_dimension_numbers<[2], [1], [1], [2], [0, 0, 0, 1, 1, 2], [0], [0]>} : vector<4x8x8xf32>, vector<4x8x32xf32>, vector<4x8x32xf32> -> vector<4x8x32xf32>
    "tpu.trace_stop"() : () -> ()
    %cst_19 = arith.constant dense<0.000000e+00> : vector<8x32xf32>
    %49 = vector.multi_reduction <add>, %48, %cst_19 [0] : vector<4x8x32xf32> to vector<8x32xf32>
    %c256 = arith.constant 256 : index
    %c0_20 = arith.constant 0 : index
    %50 = vector.load %arg1[%c256, %c0_20] : memref<2320x128xf32, #tpu.memory_space<vmem>>, vector<1x32xf32>
    %51 = vector.broadcast %50 : vector<1x32xf32> to vector<8x32xf32>
    %52 = arith.addf %49, %51 : vector<8x32xf32>
    %53 = arith.addf %7, %52 : vector<8x32xf32>
    %cst_21 = arith.constant dense<0.000000e+00> : vector<8xf32>
    %54 = vector.multi_reduction <add>, %53, %cst_21 [1] : vector<8x32xf32> to vector<8xf32>
    %55 = vector.shape_cast %54 : vector<8xf32> to vector<8x1xf32>
    %cst_22 = arith.constant 3.200000e+01 : f32
    %56 = vector.broadcast %cst_22 : f32 to vector<8x1xf32>
    %57 = arith.divf %55, %56 : vector<8x1xf32>
    %58 = arith.mulf %53, %53 : vector<8x32xf32>
    %cst_23 = arith.constant dense<0.000000e+00> : vector<8xf32>
    %59 = vector.multi_reduction <add>, %58, %cst_23 [1] : vector<8x32xf32> to vector<8xf32>
    %60 = vector.shape_cast %59 : vector<8xf32> to vector<8x1xf32>
    %cst_24 = arith.constant 3.200000e+01 : f32
    %61 = vector.broadcast %cst_24 : f32 to vector<8x1xf32>
    %62 = arith.divf %60, %61 : vector<8x1xf32>
    %63 = arith.mulf %57, %57 : vector<8x1xf32>
    %64 = arith.subf %62, %63 : vector<8x1xf32>
    %65 = vector.broadcast %57 : vector<8x1xf32> to vector<8x32xf32>
    %66 = arith.subf %53, %65 : vector<8x32xf32>
    %cst_25 = arith.constant 9.99999974E-6 : f32
    %67 = vector.broadcast %cst_25 : f32 to vector<8x1xf32>
    %68 = arith.addf %64, %67 : vector<8x1xf32>
    %69 = math.rsqrt %68 : vector<8x1xf32>
    %70 = vector.broadcast %69 : vector<8x1xf32> to vector<8x32xf32>
    %71 = arith.mulf %66, %70 : vector<8x32xf32>
    %c264 = arith.constant 264 : index
    %c0_26 = arith.constant 0 : index
    %72 = vector.load %arg1[%c264, %c0_26] : memref<2320x128xf32, #tpu.memory_space<vmem>>, vector<1x32xf32>
    %73 = vector.broadcast %72 : vector<1x32xf32> to vector<8x32xf32>
    %74 = arith.mulf %71, %73 : vector<8x32xf32>
    %c272 = arith.constant 272 : index
    %c0_27 = arith.constant 0 : index
    %75 = vector.load %arg1[%c272, %c0_27] : memref<2320x128xf32, #tpu.memory_space<vmem>>, vector<1x32xf32>
    %76 = vector.broadcast %75 : vector<1x32xf32> to vector<8x32xf32>
    %77 = arith.addf %74, %76 : vector<8x32xf32>
    %c280 = arith.constant 280 : index
    %c0_28 = arith.constant 0 : index
    %78 = vector.load %arg1[%c280, %c0_28] : memref<2320x128xf32, #tpu.memory_space<vmem>>, vector<32x128xf32>
    %cst_29 = arith.constant dense<0.000000e+00> : vector<8x128xf32>
    %79 = tpu.matmul %77, %78, %cst_29 {dimension_numbers = #tpu.dot_dimension_numbers<[1], [0], [0], [1], [0, 0, 1, 1], [], []>} : vector<8x32xf32>, vector<32x128xf32>, vector<8x128xf32> -> vector<8x128xf32>
    %c312 = arith.constant 312 : index
    %c0_30 = arith.constant 0 : index
    %80 = vector.load %arg1[%c312, %c0_30] : memref<2320x128xf32, #tpu.memory_space<vmem>>, vector<1x128xf32>
    %81 = vector.broadcast %80 : vector<1x128xf32> to vector<8x128xf32>
    %82 = arith.addf %79, %81 : vector<8x128xf32>
    %cst_31 = arith.constant 0.000000e+00 : f32
    %83 = vector.broadcast %cst_31 : f32 to vector<8x128xf32>
    %84 = arith.maximumf %82, %83 : vector<8x128xf32>
    %c320 = arith.constant 320 : index
    %c0_32 = arith.constant 0 : index
    %85 = vector.load %arg1[%c320, %c0_32] : memref<2320x128xf32, #tpu.memory_space<vmem>>, vector<128x32xf32>
    %cst_33 = arith.constant dense<0.000000e+00> : vector<8x32xf32>
    %86 = tpu.matmul %84, %85, %cst_33 {dimension_numbers = #tpu.dot_dimension_numbers<[1], [0], [0], [1], [0, 0, 1, 1], [], []>} : vector<8x128xf32>, vector<128x32xf32>, vector<8x32xf32> -> vector<8x32xf32>
    %c448 = arith.constant 448 : index
    %c0_34 = arith.constant 0 : index
    %87 = vector.load %arg1[%c448, %c0_34] : memref<2320x128xf32, #tpu.memory_space<vmem>>, vector<1x32xf32>
    %88 = vector.broadcast %87 : vector<1x32xf32> to vector<8x32xf32>
    %89 = arith.addf %86, %88 : vector<8x32xf32>
    %90 = arith.addf %77, %89 : vector<8x32xf32>
    %cst_35 = arith.constant dense<0.000000e+00> : vector<8xf32>
    %91 = vector.multi_reduction <add>, %90, %cst_35 [1] : vector<8x32xf32> to vector<8xf32>
    %92 = vector.shape_cast %91 : vector<8xf32> to vector<8x1xf32>
    %cst_36 = arith.constant 3.200000e+01 : f32
    %93 = vector.broadcast %cst_36 : f32 to vector<8x1xf32>
    %94 = arith.divf %92, %93 : vector<8x1xf32>
    %95 = arith.mulf %90, %90 : vector<8x32xf32>
    %cst_37 = arith.constant dense<0.000000e+00> : vector<8xf32>
    %96 = vector.multi_reduction <add>, %95, %cst_37 [1] : vector<8x32xf32> to vector<8xf32>
    %97 = vector.shape_cast %96 : vector<8xf32> to vector<8x1xf32>
    %cst_38 = arith.constant 3.200000e+01 : f32
    %98 = vector.broadcast %cst_38 : f32 to vector<8x1xf32>
    %99 = arith.divf %97, %98 : vector<8x1xf32>
    %100 = arith.mulf %94, %94 : vector<8x1xf32>
    %101 = arith.subf %99, %100 : vector<8x1xf32>
    %102 = vector.broadcast %94 : vector<8x1xf32> to vector<8x32xf32>
    %103 = arith.subf %90, %102 : vector<8x32xf32>
    %cst_39 = arith.constant 9.99999974E-6 : f32
    %104 = vector.broadcast %cst_39 : f32 to vector<8x1xf32>
    %105 = arith.addf %101, %104 : vector<8x1xf32>
    %106 = math.rsqrt %105 : vector<8x1xf32>
    %107 = vector.broadcast %106 : vector<8x1xf32> to vector<8x32xf32>
    %108 = arith.mulf %103, %107 : vector<8x32xf32>
    %c456 = arith.constant 456 : index
    %c0_40 = arith.constant 0 : index
    %109 = vector.load %arg1[%c456, %c0_40] : memref<2320x128xf32, #tpu.memory_space<vmem>>, vector<1x32xf32>
    %110 = vector.broadcast %109 : vector<1x32xf32> to vector<8x32xf32>
    %111 = arith.mulf %108, %110 : vector<8x32xf32>
    %c464 = arith.constant 464 : index
    %c0_41 = arith.constant 0 : index
    %112 = vector.load %arg1[%c464, %c0_41] : memref<2320x128xf32, #tpu.memory_space<vmem>>, vector<1x32xf32>
    %113 = vector.broadcast %112 : vector<1x32xf32> to vector<8x32xf32>
    %114 = arith.addf %111, %113 : vector<8x32xf32>
    %c472 = arith.constant 472 : index
    %c0_42 = arith.constant 0 : index
    %115 = vector.load %arg1[%c472, %c0_42] : memref<2320x128xf32, #tpu.memory_space<vmem>>, vector<32x32xf32>
    %116 = vector.shape_cast %115 : vector<32x32xf32> to vector<4x8x32xf32>
    %c504 = arith.constant 504 : index
    %c0_43 = arith.constant 0 : index
    %117 = vector.load %arg1[%c504, %c0_43] : memref<2320x128xf32, #tpu.memory_space<vmem>>, vector<32x8xf32>
    %118 = vector.shape_cast %117 : vector<32x8xf32> to vector<4x8x8xf32>
    %119 = vector.shape_cast %114 : vector<8x32xf32> to vector<1x8x32xf32>
    %120 = vector.broadcast %119 : vector<1x8x32xf32> to vector<4x8x32xf32>
    "tpu.trace_start"() <{level = 10 : i32, message = "hsd,hkd->hsk"}> : () -> ()
    %cst_44 = arith.constant dense<0.000000e+00> : vector<4x8x8xf32>
    %121 = tpu.matmul %120, %116, %cst_44 {dimension_numbers = #tpu.dot_dimension_numbers<[2], [2], [1], [1], [0, 0, 0, 1, 1, 1], [0], [0]>} : vector<4x8x32xf32>, vector<4x8x32xf32>, vector<4x8x8xf32> -> vector<4x8x8xf32>
    "tpu.trace_stop"() : () -> ()
    %122 = arith.addf %121, %118 : vector<4x8x8xf32>
    %c536 = arith.constant 536 : index
    %c0_45 = arith.constant 0 : index
    %123 = vector.load %arg1[%c536, %c0_45] : memref<2320x128xf32, #tpu.memory_space<vmem>>, vector<32x32xf32>
    %124 = vector.shape_cast %123 : vector<32x32xf32> to vector<4x8x32xf32>
    %c568 = arith.constant 568 : index
    %c0_46 = arith.constant 0 : index
    %125 = vector.load %arg1[%c568, %c0_46] : memref<2320x128xf32, #tpu.memory_space<vmem>>, vector<32x8xf32>
    %126 = vector.shape_cast %125 : vector<32x8xf32> to vector<4x8x8xf32>
    %127 = vector.shape_cast %114 : vector<8x32xf32> to vector<1x8x32xf32>
    %128 = vector.broadcast %127 : vector<1x8x32xf32> to vector<4x8x32xf32>
    "tpu.trace_start"() <{level = 10 : i32, message = "hsd,hkd->hsk"}> : () -> ()
    %cst_47 = arith.constant dense<0.000000e+00> : vector<4x8x8xf32>
    %129 = tpu.matmul %128, %124, %cst_47 {dimension_numbers = #tpu.dot_dimension_numbers<[2], [2], [1], [1], [0, 0, 0, 1, 1, 1], [0], [0]>} : vector<4x8x32xf32>, vector<4x8x32xf32>, vector<4x8x8xf32> -> vector<4x8x8xf32>
    "tpu.trace_stop"() : () -> ()
    %130 = arith.addf %129, %126 : vector<4x8x8xf32>
    %c600 = arith.constant 600 : index
    %c0_48 = arith.constant 0 : index
    %131 = vector.load %arg1[%c600, %c0_48] : memref<2320x128xf32, #tpu.memory_space<vmem>>, vector<32x32xf32>
    %132 = vector.shape_cast %131 : vector<32x32xf32> to vector<4x8x32xf32>
    %c632 = arith.constant 632 : index
    %c0_49 = arith.constant 0 : index
    %133 = vector.load %arg1[%c632, %c0_49] : memref<2320x128xf32, #tpu.memory_space<vmem>>, vector<32x8xf32>
    %134 = vector.shape_cast %133 : vector<32x8xf32> to vector<4x8x8xf32>
    %135 = vector.shape_cast %114 : vector<8x32xf32> to vector<1x8x32xf32>
    %136 = vector.broadcast %135 : vector<1x8x32xf32> to vector<4x8x32xf32>
    "tpu.trace_start"() <{level = 10 : i32, message = "hsd,hkd->hsk"}> : () -> ()
    %cst_50 = arith.constant dense<0.000000e+00> : vector<4x8x8xf32>
    %137 = tpu.matmul %136, %132, %cst_50 {dimension_numbers = #tpu.dot_dimension_numbers<[2], [2], [1], [1], [0, 0, 0, 1, 1, 1], [0], [0]>} : vector<4x8x32xf32>, vector<4x8x32xf32>, vector<4x8x8xf32> -> vector<4x8x8xf32>
    "tpu.trace_stop"() : () -> ()
    %138 = arith.addf %137, %134 : vector<4x8x8xf32>
    "tpu.trace_start"() <{level = 10 : i32, message = "hqd,hkd->hqk"}> : () -> ()
    %cst_51 = arith.constant dense<0.000000e+00> : vector<4x8x8xf32>
    %139 = tpu.matmul %122, %130, %cst_51 {dimension_numbers = #tpu.dot_dimension_numbers<[2], [2], [1], [1], [0, 0, 0, 1, 1, 1], [0], [0]>} : vector<4x8x8xf32>, vector<4x8x8xf32>, vector<4x8x8xf32> -> vector<4x8x8xf32>
    "tpu.trace_stop"() : () -> ()
    %cst_52 = arith.constant 0.353553385 : f32
    %140 = vector.broadcast %cst_52 : f32 to vector<4x8x8xf32>
    %141 = arith.mulf %139, %140 : vector<4x8x8xf32>
    %cst_53 = arith.constant dense<0xFF800000> : vector<4x8xf32>
    %142 = vector.multi_reduction <maximumf>, %141, %cst_53 [2] : vector<4x8x8xf32> to vector<4x8xf32>
    %143 = vector.shape_cast %142 : vector<4x8xf32> to vector<4x8x1xf32>
    %144 = vector.broadcast %143 : vector<4x8x1xf32> to vector<4x8x8xf32>
    %145 = arith.subf %141, %144 : vector<4x8x8xf32>
    %146 = math.exp %145 : vector<4x8x8xf32>
    %cst_54 = arith.constant dense<0.000000e+00> : vector<4x8xf32>
    %147 = vector.multi_reduction <add>, %146, %cst_54 [2] : vector<4x8x8xf32> to vector<4x8xf32>
    %148 = vector.shape_cast %147 : vector<4x8xf32> to vector<4x8x1xf32>
    %149 = tpu.reciprocal %148 {approx = true} : vector<4x8x1xf32> -> vector<4x8x1xf32>
    %150 = vector.broadcast %149 : vector<4x8x1xf32> to vector<4x8x8xf32>
    %151 = arith.mulf %146, %150 : vector<4x8x8xf32>
    "tpu.trace_start"() <{level = 10 : i32, message = "hqk,hkd->hqd"}> : () -> ()
    %cst_55 = arith.constant dense<0.000000e+00> : vector<4x8x8xf32>
    %152 = tpu.matmul %151, %138, %cst_55 {dimension_numbers = #tpu.dot_dimension_numbers<[2], [1], [1], [2], [0, 0, 0, 1, 1, 2], [0], [0]>} : vector<4x8x8xf32>, vector<4x8x8xf32>, vector<4x8x8xf32> -> vector<4x8x8xf32>
    "tpu.trace_stop"() : () -> ()
    %c664 = arith.constant 664 : index
    %c0_56 = arith.constant 0 : index
    %153 = vector.load %arg1[%c664, %c0_56] : memref<2320x128xf32, #tpu.memory_space<vmem>>, vector<32x32xf32>
    %154 = vector.shape_cast %153 : vector<32x32xf32> to vector<4x8x32xf32>
    "tpu.trace_start"() <{level = 10 : i32, message = "hqd,hdo->hqo"}> : () -> ()
    %cst_57 = arith.constant dense<0.000000e+00> : vector<4x8x32xf32>
    %155 = tpu.matmul %152, %154, %cst_57 {dimension_numbers = #tpu.dot_dimension_numbers<[2], [1], [1], [2], [0, 0, 0, 1, 1, 2], [0], [0]>} : vector<4x8x8xf32>, vector<4x8x32xf32>, vector<4x8x32xf32> -> vector<4x8x32xf32>
    "tpu.trace_stop"() : () -> ()
    %cst_58 = arith.constant dense<0.000000e+00> : vector<8x32xf32>
    %156 = vector.multi_reduction <add>, %155, %cst_58 [0] : vector<4x8x32xf32> to vector<8x32xf32>
    %c696 = arith.constant 696 : index
    %c0_59 = arith.constant 0 : index
    %157 = vector.load %arg1[%c696, %c0_59] : memref<2320x128xf32, #tpu.memory_space<vmem>>, vector<1x32xf32>
    %158 = vector.broadcast %157 : vector<1x32xf32> to vector<8x32xf32>
    %159 = arith.addf %156, %158 : vector<8x32xf32>
    %160 = arith.addf %114, %159 : vector<8x32xf32>
    %cst_60 = arith.constant dense<0.000000e+00> : vector<8xf32>
    %161 = vector.multi_reduction <add>, %160, %cst_60 [1] : vector<8x32xf32> to vector<8xf32>
    %162 = vector.shape_cast %161 : vector<8xf32> to vector<8x1xf32>
    %cst_61 = arith.constant 3.200000e+01 : f32
    %163 = vector.broadcast %cst_61 : f32 to vector<8x1xf32>
    %164 = arith.divf %162, %163 : vector<8x1xf32>
    %165 = arith.mulf %160, %160 : vector<8x32xf32>
    %cst_62 = arith.constant dense<0.000000e+00> : vector<8xf32>
    %166 = vector.multi_reduction <add>, %165, %cst_62 [1] : vector<8x32xf32> to vector<8xf32>
    %167 = vector.shape_cast %166 : vector<8xf32> to vector<8x1xf32>
    %cst_63 = arith.constant 3.200000e+01 : f32
    %168 = vector.broadcast %cst_63 : f32 to vector<8x1xf32>
    %169 = arith.divf %167, %168 : vector<8x1xf32>
    %170 = arith.mulf %164, %164 : vector<8x1xf32>
    %171 = arith.subf %169, %170 : vector<8x1xf32>
    %172 = vector.broadcast %164 : vector<8x1xf32> to vector<8x32xf32>
    %173 = arith.subf %160, %172 : vector<8x32xf32>
    %cst_64 = arith.constant 9.99999974E-6 : f32
    %174 = vector.broadcast %cst_64 : f32 to vector<8x1xf32>
    %175 = arith.addf %171, %174 : vector<8x1xf32>
    %176 = math.rsqrt %175 : vector<8x1xf32>
    %177 = vector.broadcast %176 : vector<8x1xf32> to vector<8x32xf32>
    %178 = arith.mulf %173, %177 : vector<8x32xf32>
    %c704 = arith.constant 704 : index
    %c0_65 = arith.constant 0 : index
    %179 = vector.load %arg1[%c704, %c0_65] : memref<2320x128xf32, #tpu.memory_space<vmem>>, vector<1x32xf32>
    %180 = vector.broadcast %179 : vector<1x32xf32> to vector<8x32xf32>
    %181 = arith.mulf %178, %180 : vector<8x32xf32>
    %c712 = arith.constant 712 : index
    %c0_66 = arith.constant 0 : index
    %182 = vector.load %arg1[%c712, %c0_66] : memref<2320x128xf32, #tpu.memory_space<vmem>>, vector<1x32xf32>
    %183 = vector.broadcast %182 : vector<1x32xf32> to vector<8x32xf32>
    %184 = arith.addf %181, %183 : vector<8x32xf32>
    %c720 = arith.constant 720 : index
    %c0_67 = arith.constant 0 : index
    %185 = vector.load %arg1[%c720, %c0_67] : memref<2320x128xf32, #tpu.memory_space<vmem>>, vector<32x128xf32>
    %cst_68 = arith.constant dense<0.000000e+00> : vector<8x128xf32>
    %186 = tpu.matmul %184, %185, %cst_68 {dimension_numbers = #tpu.dot_dimension_numbers<[1], [0], [0], [1], [0, 0, 1, 1], [], []>} : vector<8x32xf32>, vector<32x128xf32>, vector<8x128xf32> -> vector<8x128xf32>
    %c752 = arith.constant 752 : index
    %c0_69 = arith.constant 0 : index
    %187 = vector.load %arg1[%c752, %c0_69] : memref<2320x128xf32, #tpu.memory_space<vmem>>, vector<1x128xf32>
    %188 = vector.broadcast %187 : vector<1x128xf32> to vector<8x128xf32>
    %189 = arith.addf %186, %188 : vector<8x128xf32>
    %cst_70 = arith.constant 0.000000e+00 : f32
    %190 = vector.broadcast %cst_70 : f32 to vector<8x128xf32>
    %191 = arith.maximumf %189, %190 : vector<8x128xf32>
    %c760 = arith.constant 760 : index
    %c0_71 = arith.constant 0 : index
    %192 = vector.load %arg1[%c760, %c0_71] : memref<2320x128xf32, #tpu.memory_space<vmem>>, vector<128x32xf32>
    %cst_72 = arith.constant dense<0.000000e+00> : vector<8x32xf32>
    %193 = tpu.matmul %191, %192, %cst_72 {dimension_numbers = #tpu.dot_dimension_numbers<[1], [0], [0], [1], [0, 0, 1, 1], [], []>} : vector<8x128xf32>, vector<128x32xf32>, vector<8x32xf32> -> vector<8x32xf32>
    %c888 = arith.constant 888 : index
    %c0_73 = arith.constant 0 : index
    %194 = vector.load %arg1[%c888, %c0_73] : memref<2320x128xf32, #tpu.memory_space<vmem>>, vector<1x32xf32>
    %195 = vector.broadcast %194 : vector<1x32xf32> to vector<8x32xf32>
    %196 = arith.addf %193, %195 : vector<8x32xf32>
    %197 = arith.addf %184, %196 : vector<8x32xf32>
    %cst_74 = arith.constant dense<0.000000e+00> : vector<8xf32>
    %198 = vector.multi_reduction <add>, %197, %cst_74 [1] : vector<8x32xf32> to vector<8xf32>
    %199 = vector.shape_cast %198 : vector<8xf32> to vector<8x1xf32>
    %cst_75 = arith.constant 3.200000e+01 : f32
    %200 = vector.broadcast %cst_75 : f32 to vector<8x1xf32>
    %201 = arith.divf %199, %200 : vector<8x1xf32>
    %202 = arith.mulf %197, %197 : vector<8x32xf32>
    %cst_76 = arith.constant dense<0.000000e+00> : vector<8xf32>
    %203 = vector.multi_reduction <add>, %202, %cst_76 [1] : vector<8x32xf32> to vector<8xf32>
    %204 = vector.shape_cast %203 : vector<8xf32> to vector<8x1xf32>
    %cst_77 = arith.constant 3.200000e+01 : f32
    %205 = vector.broadcast %cst_77 : f32 to vector<8x1xf32>
    %206 = arith.divf %204, %205 : vector<8x1xf32>
    %207 = arith.mulf %201, %201 : vector<8x1xf32>
    %208 = arith.subf %206, %207 : vector<8x1xf32>
    %209 = vector.broadcast %201 : vector<8x1xf32> to vector<8x32xf32>
    %210 = arith.subf %197, %209 : vector<8x32xf32>
    %cst_78 = arith.constant 9.99999974E-6 : f32
    %211 = vector.broadcast %cst_78 : f32 to vector<8x1xf32>
    %212 = arith.addf %208, %211 : vector<8x1xf32>
    %213 = math.rsqrt %212 : vector<8x1xf32>
    %214 = vector.broadcast %213 : vector<8x1xf32> to vector<8x32xf32>
    %215 = arith.mulf %210, %214 : vector<8x32xf32>
    %c896 = arith.constant 896 : index
    %c0_79 = arith.constant 0 : index
    %216 = vector.load %arg1[%c896, %c0_79] : memref<2320x128xf32, #tpu.memory_space<vmem>>, vector<1x32xf32>
    %217 = vector.broadcast %216 : vector<1x32xf32> to vector<8x32xf32>
    %218 = arith.mulf %215, %217 : vector<8x32xf32>
    %c904 = arith.constant 904 : index
    %c0_80 = arith.constant 0 : index
    %219 = vector.load %arg1[%c904, %c0_80] : memref<2320x128xf32, #tpu.memory_space<vmem>>, vector<1x32xf32>
    %220 = vector.broadcast %219 : vector<1x32xf32> to vector<8x32xf32>
    %221 = arith.addf %218, %220 : vector<8x32xf32>
    %cst_81 = arith.constant dense<0.000000e+00> : vector<8xf32>
    %222 = vector.multi_reduction <add>, %221, %cst_81 [1] : vector<8x32xf32> to vector<8xf32>
    %223 = vector.shape_cast %222 : vector<8xf32> to vector<8x1xf32>
    %cst_82 = arith.constant 3.200000e+01 : f32
    %224 = vector.broadcast %cst_82 : f32 to vector<8x1xf32>
    %225 = arith.divf %223, %224 : vector<8x1xf32>
    %226 = arith.mulf %221, %221 : vector<8x32xf32>
    %cst_83 = arith.constant dense<0.000000e+00> : vector<8xf32>
    %227 = vector.multi_reduction <add>, %226, %cst_83 [1] : vector<8x32xf32> to vector<8xf32>
    %228 = vector.shape_cast %227 : vector<8xf32> to vector<8x1xf32>
    %cst_84 = arith.constant 3.200000e+01 : f32
    %229 = vector.broadcast %cst_84 : f32 to vector<8x1xf32>
    %230 = arith.divf %228, %229 : vector<8x1xf32>
    %231 = arith.mulf %225, %225 : vector<8x1xf32>
    %232 = arith.subf %230, %231 : vector<8x1xf32>
    %233 = vector.broadcast %225 : vector<8x1xf32> to vector<8x32xf32>
    %234 = arith.subf %221, %233 : vector<8x32xf32>
    %cst_85 = arith.constant 9.99999974E-6 : f32
    %235 = vector.broadcast %cst_85 : f32 to vector<8x1xf32>
    %236 = arith.addf %232, %235 : vector<8x1xf32>
    %237 = math.rsqrt %236 : vector<8x1xf32>
    %238 = vector.broadcast %237 : vector<8x1xf32> to vector<8x32xf32>
    %239 = arith.mulf %234, %238 : vector<8x32xf32>
    %c912 = arith.constant 912 : index
    %c0_86 = arith.constant 0 : index
    %240 = vector.load %arg1[%c912, %c0_86] : memref<2320x128xf32, #tpu.memory_space<vmem>>, vector<1x32xf32>
    %241 = vector.broadcast %240 : vector<1x32xf32> to vector<8x32xf32>
    %242 = arith.mulf %239, %241 : vector<8x32xf32>
    %c920 = arith.constant 920 : index
    %c0_87 = arith.constant 0 : index
    %243 = vector.load %arg1[%c920, %c0_87] : memref<2320x128xf32, #tpu.memory_space<vmem>>, vector<1x32xf32>
    %244 = vector.broadcast %243 : vector<1x32xf32> to vector<8x32xf32>
    %245 = arith.addf %242, %244 : vector<8x32xf32>
    %c1240 = arith.constant 1240 : index
    %c0_88 = arith.constant 0 : index
    %246 = vector.load %arg1[%c1240, %c0_88] : memref<2320x128xf32, #tpu.memory_space<vmem>>, vector<32x32xf32>
    %247 = vector.shape_cast %246 : vector<32x32xf32> to vector<4x8x32xf32>
    %c1272 = arith.constant 1272 : index
    %c0_89 = arith.constant 0 : index
    %248 = vector.load %arg1[%c1272, %c0_89] : memref<2320x128xf32, #tpu.memory_space<vmem>>, vector<32x8xf32>
    %249 = vector.shape_cast %248 : vector<32x8xf32> to vector<4x8x8xf32>
    %250 = vector.shape_cast %245 : vector<8x32xf32> to vector<1x8x32xf32>
    %251 = vector.broadcast %250 : vector<1x8x32xf32> to vector<4x8x32xf32>
    "tpu.trace_start"() <{level = 10 : i32, message = "hsd,hkd->hsk"}> : () -> ()
    %cst_90 = arith.constant dense<0.000000e+00> : vector<4x8x8xf32>
    %252 = tpu.matmul %251, %247, %cst_90 {dimension_numbers = #tpu.dot_dimension_numbers<[2], [2], [1], [1], [0, 0, 0, 1, 1, 1], [0], [0]>} : vector<4x8x32xf32>, vector<4x8x32xf32>, vector<4x8x8xf32> -> vector<4x8x8xf32>
    "tpu.trace_stop"() : () -> ()
    %253 = arith.addf %252, %249 : vector<4x8x8xf32>
    %c1304 = arith.constant 1304 : index
    %c0_91 = arith.constant 0 : index
    %254 = vector.load %arg1[%c1304, %c0_91] : memref<2320x128xf32, #tpu.memory_space<vmem>>, vector<32x32xf32>
    %255 = vector.shape_cast %254 : vector<32x32xf32> to vector<4x8x32xf32>
    %c1336 = arith.constant 1336 : index
    %c0_92 = arith.constant 0 : index
    %256 = vector.load %arg1[%c1336, %c0_92] : memref<2320x128xf32, #tpu.memory_space<vmem>>, vector<32x8xf32>
    %257 = vector.shape_cast %256 : vector<32x8xf32> to vector<4x8x8xf32>
    %258 = vector.shape_cast %245 : vector<8x32xf32> to vector<1x8x32xf32>
    %259 = vector.broadcast %258 : vector<1x8x32xf32> to vector<4x8x32xf32>
    "tpu.trace_start"() <{level = 10 : i32, message = "hsd,hkd->hsk"}> : () -> ()
    %cst_93 = arith.constant dense<0.000000e+00> : vector<4x8x8xf32>
    %260 = tpu.matmul %259, %255, %cst_93 {dimension_numbers = #tpu.dot_dimension_numbers<[2], [2], [1], [1], [0, 0, 0, 1, 1, 1], [0], [0]>} : vector<4x8x32xf32>, vector<4x8x32xf32>, vector<4x8x8xf32> -> vector<4x8x8xf32>
    "tpu.trace_stop"() : () -> ()
    %261 = arith.addf %260, %257 : vector<4x8x8xf32>
    %c1928 = arith.constant 1928 : index
    %c0_94 = arith.constant 0 : index
    %262 = vector.load %arg1[%c1928, %c0_94] : memref<2320x128xf32, #tpu.memory_space<vmem>>, vector<32x32xf32>
    %263 = vector.shape_cast %262 : vector<32x32xf32> to vector<4x8x32xf32>
    %c1960 = arith.constant 1960 : index
    %c0_95 = arith.constant 0 : index
    %264 = vector.load %arg1[%c1960, %c0_95] : memref<2320x128xf32, #tpu.memory_space<vmem>>, vector<32x8xf32>
    %265 = vector.shape_cast %264 : vector<32x8xf32> to vector<4x8x8xf32>
    %266 = vector.shape_cast %245 : vector<8x32xf32> to vector<1x8x32xf32>
    %267 = vector.broadcast %266 : vector<1x8x32xf32> to vector<4x8x32xf32>
    "tpu.trace_start"() <{level = 10 : i32, message = "hsd,hkd->hsk"}> : () -> ()
    %cst_96 = arith.constant dense<0.000000e+00> : vector<4x8x8xf32>
    %268 = tpu.matmul %267, %263, %cst_96 {dimension_numbers = #tpu.dot_dimension_numbers<[2], [2], [1], [1], [0, 0, 0, 1, 1, 1], [0], [0]>} : vector<4x8x32xf32>, vector<4x8x32xf32>, vector<4x8x8xf32> -> vector<4x8x8xf32>
    "tpu.trace_stop"() : () -> ()
    %269 = arith.addf %268, %265 : vector<4x8x8xf32>
    %c1992 = arith.constant 1992 : index
    %c0_97 = arith.constant 0 : index
    %270 = vector.load %arg1[%c1992, %c0_97] : memref<2320x128xf32, #tpu.memory_space<vmem>>, vector<32x32xf32>
    %271 = vector.shape_cast %270 : vector<32x32xf32> to vector<4x8x32xf32>
    %c2024 = arith.constant 2024 : index
    %c0_98 = arith.constant 0 : index
    %272 = vector.load %arg1[%c2024, %c0_98] : memref<2320x128xf32, #tpu.memory_space<vmem>>, vector<32x8xf32>
    %273 = vector.shape_cast %272 : vector<32x8xf32> to vector<4x8x8xf32>
    %274 = vector.shape_cast %245 : vector<8x32xf32> to vector<1x8x32xf32>
    %275 = vector.broadcast %274 : vector<1x8x32xf32> to vector<4x8x32xf32>
    "tpu.trace_start"() <{level = 10 : i32, message = "hsd,hkd->hsk"}> : () -> ()
    %cst_99 = arith.constant dense<0.000000e+00> : vector<4x8x8xf32>
    %276 = tpu.matmul %275, %271, %cst_99 {dimension_numbers = #tpu.dot_dimension_numbers<[2], [2], [1], [1], [0, 0, 0, 1, 1, 1], [0], [0]>} : vector<4x8x32xf32>, vector<4x8x32xf32>, vector<4x8x8xf32> -> vector<4x8x8xf32>
    "tpu.trace_stop"() : () -> ()
    %277 = arith.addf %276, %273 : vector<4x8x8xf32>
    %c928 = arith.constant 928 : index
    %c0_100 = arith.constant 0 : index
    %278 = vector.load %arg1[%c928, %c0_100] : memref<2320x128xf32, #tpu.memory_space<vmem>>, vector<32x32xf32>
    %279 = vector.shape_cast %278 : vector<32x32xf32> to vector<4x8x32xf32>
    %c960 = arith.constant 960 : index
    %c0_101 = arith.constant 0 : index
    %280 = vector.load %arg1[%c960, %c0_101] : memref<2320x128xf32, #tpu.memory_space<vmem>>, vector<32x8xf32>
    %281 = vector.shape_cast %280 : vector<32x8xf32> to vector<4x8x8xf32>
    %282 = vector.shape_cast %7 : vector<8x32xf32> to vector<1x8x32xf32>
    %283 = vector.broadcast %282 : vector<1x8x32xf32> to vector<4x8x32xf32>
    "tpu.trace_start"() <{level = 10 : i32, message = "hsd,hkd->hsk"}> : () -> ()
    %cst_102 = arith.constant dense<0.000000e+00> : vector<4x8x8xf32>
    %284 = tpu.matmul %283, %279, %cst_102 {dimension_numbers = #tpu.dot_dimension_numbers<[2], [2], [1], [1], [0, 0, 0, 1, 1, 1], [0], [0]>} : vector<4x8x32xf32>, vector<4x8x32xf32>, vector<4x8x8xf32> -> vector<4x8x8xf32>
    "tpu.trace_stop"() : () -> ()
    %285 = arith.addf %284, %281 : vector<4x8x8xf32>
    %c992 = arith.constant 992 : index
    %c0_103 = arith.constant 0 : index
    %286 = vector.load %arg1[%c992, %c0_103] : memref<2320x128xf32, #tpu.memory_space<vmem>>, vector<32x32xf32>
    %287 = vector.shape_cast %286 : vector<32x32xf32> to vector<4x8x32xf32>
    %c1024 = arith.constant 1024 : index
    %c0_104 = arith.constant 0 : index
    %288 = vector.load %arg1[%c1024, %c0_104] : memref<2320x128xf32, #tpu.memory_space<vmem>>, vector<32x8xf32>
    %289 = vector.shape_cast %288 : vector<32x8xf32> to vector<4x8x8xf32>
    %290 = vector.shape_cast %7 : vector<8x32xf32> to vector<1x8x32xf32>
    %291 = vector.broadcast %290 : vector<1x8x32xf32> to vector<4x8x32xf32>
    "tpu.trace_start"() <{level = 10 : i32, message = "hsd,hkd->hsk"}> : () -> ()
    %cst_105 = arith.constant dense<0.000000e+00> : vector<4x8x8xf32>
    %292 = tpu.matmul %291, %287, %cst_105 {dimension_numbers = #tpu.dot_dimension_numbers<[2], [2], [1], [1], [0, 0, 0, 1, 1, 1], [0], [0]>} : vector<4x8x32xf32>, vector<4x8x32xf32>, vector<4x8x8xf32> -> vector<4x8x8xf32>
    "tpu.trace_stop"() : () -> ()
    %293 = arith.addf %292, %289 : vector<4x8x8xf32>
    %c1056 = arith.constant 1056 : index
    %c0_106 = arith.constant 0 : index
    %294 = vector.load %arg1[%c1056, %c0_106] : memref<2320x128xf32, #tpu.memory_space<vmem>>, vector<32x32xf32>
    %295 = vector.shape_cast %294 : vector<32x32xf32> to vector<4x8x32xf32>
    %c1088 = arith.constant 1088 : index
    %c0_107 = arith.constant 0 : index
    %296 = vector.load %arg1[%c1088, %c0_107] : memref<2320x128xf32, #tpu.memory_space<vmem>>, vector<32x8xf32>
    %297 = vector.shape_cast %296 : vector<32x8xf32> to vector<4x8x8xf32>
    %298 = vector.shape_cast %7 : vector<8x32xf32> to vector<1x8x32xf32>
    %299 = vector.broadcast %298 : vector<1x8x32xf32> to vector<4x8x32xf32>
    "tpu.trace_start"() <{level = 10 : i32, message = "hsd,hkd->hsk"}> : () -> ()
    %cst_108 = arith.constant dense<0.000000e+00> : vector<4x8x8xf32>
    %300 = tpu.matmul %299, %295, %cst_108 {dimension_numbers = #tpu.dot_dimension_numbers<[2], [2], [1], [1], [0, 0, 0, 1, 1, 1], [0], [0]>} : vector<4x8x32xf32>, vector<4x8x32xf32>, vector<4x8x8xf32> -> vector<4x8x8xf32>
    "tpu.trace_stop"() : () -> ()
    %301 = arith.addf %300, %297 : vector<4x8x8xf32>
    "tpu.trace_start"() <{level = 10 : i32, message = "hqd,hkd->hqk"}> : () -> ()
    %cst_109 = arith.constant dense<0.000000e+00> : vector<4x8x8xf32>
    %302 = tpu.matmul %285, %293, %cst_109 {dimension_numbers = #tpu.dot_dimension_numbers<[2], [2], [1], [1], [0, 0, 0, 1, 1, 1], [0], [0]>} : vector<4x8x8xf32>, vector<4x8x8xf32>, vector<4x8x8xf32> -> vector<4x8x8xf32>
    "tpu.trace_stop"() : () -> ()
    %cst_110 = arith.constant 0.353553385 : f32
    %303 = vector.broadcast %cst_110 : f32 to vector<4x8x8xf32>
    %304 = arith.mulf %302, %303 : vector<4x8x8xf32>
    %cst_111 = arith.constant dense<0xFF800000> : vector<4x8xf32>
    %305 = vector.multi_reduction <maximumf>, %304, %cst_111 [2] : vector<4x8x8xf32> to vector<4x8xf32>
    %306 = vector.shape_cast %305 : vector<4x8xf32> to vector<4x8x1xf32>
    %307 = vector.broadcast %306 : vector<4x8x1xf32> to vector<4x8x8xf32>
    %308 = arith.subf %304, %307 : vector<4x8x8xf32>
    %309 = math.exp %308 : vector<4x8x8xf32>
    %cst_112 = arith.constant dense<0.000000e+00> : vector<4x8xf32>
    %310 = vector.multi_reduction <add>, %309, %cst_112 [2] : vector<4x8x8xf32> to vector<4x8xf32>
    %311 = vector.shape_cast %310 : vector<4x8xf32> to vector<4x8x1xf32>
    %312 = tpu.reciprocal %311 {approx = true} : vector<4x8x1xf32> -> vector<4x8x1xf32>
    %313 = vector.broadcast %312 : vector<4x8x1xf32> to vector<4x8x8xf32>
    %314 = arith.mulf %309, %313 : vector<4x8x8xf32>
    "tpu.trace_start"() <{level = 10 : i32, message = "hqk,hkd->hqd"}> : () -> ()
    %cst_113 = arith.constant dense<0.000000e+00> : vector<4x8x8xf32>
    %315 = tpu.matmul %314, %301, %cst_113 {dimension_numbers = #tpu.dot_dimension_numbers<[2], [1], [1], [2], [0, 0, 0, 1, 1, 2], [0], [0]>} : vector<4x8x8xf32>, vector<4x8x8xf32>, vector<4x8x8xf32> -> vector<4x8x8xf32>
    "tpu.trace_stop"() : () -> ()
    %c1120 = arith.constant 1120 : index
    %c0_114 = arith.constant 0 : index
    %316 = vector.load %arg1[%c1120, %c0_114] : memref<2320x128xf32, #tpu.memory_space<vmem>>, vector<32x32xf32>
    %317 = vector.shape_cast %316 : vector<32x32xf32> to vector<4x8x32xf32>
    "tpu.trace_start"() <{level = 10 : i32, message = "hqd,hdo->hqo"}> : () -> ()
    %cst_115 = arith.constant dense<0.000000e+00> : vector<4x8x32xf32>
    %318 = tpu.matmul %315, %317, %cst_115 {dimension_numbers = #tpu.dot_dimension_numbers<[2], [1], [1], [2], [0, 0, 0, 1, 1, 2], [0], [0]>} : vector<4x8x8xf32>, vector<4x8x32xf32>, vector<4x8x32xf32> -> vector<4x8x32xf32>
    "tpu.trace_stop"() : () -> ()
    %cst_116 = arith.constant dense<0.000000e+00> : vector<8x32xf32>
    %319 = vector.multi_reduction <add>, %318, %cst_116 [0] : vector<4x8x32xf32> to vector<8x32xf32>
    %c1152 = arith.constant 1152 : index
    %c0_117 = arith.constant 0 : index
    %320 = vector.load %arg1[%c1152, %c0_117] : memref<2320x128xf32, #tpu.memory_space<vmem>>, vector<1x32xf32>
    %321 = vector.broadcast %320 : vector<1x32xf32> to vector<8x32xf32>
    %322 = arith.addf %319, %321 : vector<8x32xf32>
    %323 = arith.addf %7, %322 : vector<8x32xf32>
    %cst_118 = arith.constant dense<0.000000e+00> : vector<8xf32>
    %324 = vector.multi_reduction <add>, %323, %cst_118 [1] : vector<8x32xf32> to vector<8xf32>
    %325 = vector.shape_cast %324 : vector<8xf32> to vector<8x1xf32>
    %cst_119 = arith.constant 3.200000e+01 : f32
    %326 = vector.broadcast %cst_119 : f32 to vector<8x1xf32>
    %327 = arith.divf %325, %326 : vector<8x1xf32>
    %328 = arith.mulf %323, %323 : vector<8x32xf32>
    %cst_120 = arith.constant dense<0.000000e+00> : vector<8xf32>
    %329 = vector.multi_reduction <add>, %328, %cst_120 [1] : vector<8x32xf32> to vector<8xf32>
    %330 = vector.shape_cast %329 : vector<8xf32> to vector<8x1xf32>
    %cst_121 = arith.constant 3.200000e+01 : f32
    %331 = vector.broadcast %cst_121 : f32 to vector<8x1xf32>
    %332 = arith.divf %330, %331 : vector<8x1xf32>
    %333 = arith.mulf %327, %327 : vector<8x1xf32>
    %334 = arith.subf %332, %333 : vector<8x1xf32>
    %335 = vector.broadcast %327 : vector<8x1xf32> to vector<8x32xf32>
    %336 = arith.subf %323, %335 : vector<8x32xf32>
    %cst_122 = arith.constant 9.99999974E-6 : f32
    %337 = vector.broadcast %cst_122 : f32 to vector<8x1xf32>
    %338 = arith.addf %334, %337 : vector<8x1xf32>
    %339 = math.rsqrt %338 : vector<8x1xf32>
    %340 = vector.broadcast %339 : vector<8x1xf32> to vector<8x32xf32>
    %341 = arith.mulf %336, %340 : vector<8x32xf32>
    %c1160 = arith.constant 1160 : index
    %c0_123 = arith.constant 0 : index
    %342 = vector.load %arg1[%c1160, %c0_123] : memref<2320x128xf32, #tpu.memory_space<vmem>>, vector<1x32xf32>
    %343 = vector.broadcast %342 : vector<1x32xf32> to vector<8x32xf32>
    %344 = arith.mulf %341, %343 : vector<8x32xf32>
    %c1168 = arith.constant 1168 : index
    %c0_124 = arith.constant 0 : index
    %345 = vector.load %arg1[%c1168, %c0_124] : memref<2320x128xf32, #tpu.memory_space<vmem>>, vector<1x32xf32>
    %346 = vector.broadcast %345 : vector<1x32xf32> to vector<8x32xf32>
    %347 = arith.addf %344, %346 : vector<8x32xf32>
    %c1176 = arith.constant 1176 : index
    %c0_125 = arith.constant 0 : index
    %348 = vector.load %arg1[%c1176, %c0_125] : memref<2320x128xf32, #tpu.memory_space<vmem>>, vector<32x32xf32>
    %349 = vector.shape_cast %348 : vector<32x32xf32> to vector<4x8x32xf32>
    %c1208 = arith.constant 1208 : index
    %c0_126 = arith.constant 0 : index
    %350 = vector.load %arg1[%c1208, %c0_126] : memref<2320x128xf32, #tpu.memory_space<vmem>>, vector<32x8xf32>
    %351 = vector.shape_cast %350 : vector<32x8xf32> to vector<4x8x8xf32>
    %352 = vector.shape_cast %347 : vector<8x32xf32> to vector<1x8x32xf32>
    %353 = vector.broadcast %352 : vector<1x8x32xf32> to vector<4x8x32xf32>
    "tpu.trace_start"() <{level = 10 : i32, message = "hsd,hkd->hsk"}> : () -> ()
    %cst_127 = arith.constant dense<0.000000e+00> : vector<4x8x8xf32>
    %354 = tpu.matmul %353, %349, %cst_127 {dimension_numbers = #tpu.dot_dimension_numbers<[2], [2], [1], [1], [0, 0, 0, 1, 1, 1], [0], [0]>} : vector<4x8x32xf32>, vector<4x8x32xf32>, vector<4x8x8xf32> -> vector<4x8x8xf32>
    "tpu.trace_stop"() : () -> ()
    %355 = arith.addf %354, %351 : vector<4x8x8xf32>
    "tpu.trace_start"() <{level = 10 : i32, message = "hqd,hkd->hqk"}> : () -> ()
    %cst_128 = arith.constant dense<0.000000e+00> : vector<4x8x8xf32>
    %356 = tpu.matmul %355, %253, %cst_128 {dimension_numbers = #tpu.dot_dimension_numbers<[2], [2], [1], [1], [0, 0, 0, 1, 1, 1], [0], [0]>} : vector<4x8x8xf32>, vector<4x8x8xf32>, vector<4x8x8xf32> -> vector<4x8x8xf32>
    "tpu.trace_stop"() : () -> ()
    %cst_129 = arith.constant 0.353553385 : f32
    %357 = vector.broadcast %cst_129 : f32 to vector<4x8x8xf32>
    %358 = arith.mulf %356, %357 : vector<4x8x8xf32>
    %cst_130 = arith.constant dense<0xFF800000> : vector<4x8xf32>
    %359 = vector.multi_reduction <maximumf>, %358, %cst_130 [2] : vector<4x8x8xf32> to vector<4x8xf32>
    %360 = vector.shape_cast %359 : vector<4x8xf32> to vector<4x8x1xf32>
    %361 = vector.broadcast %360 : vector<4x8x1xf32> to vector<4x8x8xf32>
    %362 = arith.subf %358, %361 : vector<4x8x8xf32>
    %363 = math.exp %362 : vector<4x8x8xf32>
    %cst_131 = arith.constant dense<0.000000e+00> : vector<4x8xf32>
    %364 = vector.multi_reduction <add>, %363, %cst_131 [2] : vector<4x8x8xf32> to vector<4x8xf32>
    %365 = vector.shape_cast %364 : vector<4x8xf32> to vector<4x8x1xf32>
    %366 = tpu.reciprocal %365 {approx = true} : vector<4x8x1xf32> -> vector<4x8x1xf32>
    %367 = vector.broadcast %366 : vector<4x8x1xf32> to vector<4x8x8xf32>
    %368 = arith.mulf %363, %367 : vector<4x8x8xf32>
    "tpu.trace_start"() <{level = 10 : i32, message = "hqk,hkd->hqd"}> : () -> ()
    %cst_132 = arith.constant dense<0.000000e+00> : vector<4x8x8xf32>
    %369 = tpu.matmul %368, %261, %cst_132 {dimension_numbers = #tpu.dot_dimension_numbers<[2], [1], [1], [2], [0, 0, 0, 1, 1, 2], [0], [0]>} : vector<4x8x8xf32>, vector<4x8x8xf32>, vector<4x8x8xf32> -> vector<4x8x8xf32>
    "tpu.trace_stop"() : () -> ()
    %c1368 = arith.constant 1368 : index
    %c0_133 = arith.constant 0 : index
    %370 = vector.load %arg1[%c1368, %c0_133] : memref<2320x128xf32, #tpu.memory_space<vmem>>, vector<32x32xf32>
    %371 = vector.shape_cast %370 : vector<32x32xf32> to vector<4x8x32xf32>
    "tpu.trace_start"() <{level = 10 : i32, message = "hqd,hdo->hqo"}> : () -> ()
    %cst_134 = arith.constant dense<0.000000e+00> : vector<4x8x32xf32>
    %372 = tpu.matmul %369, %371, %cst_134 {dimension_numbers = #tpu.dot_dimension_numbers<[2], [1], [1], [2], [0, 0, 0, 1, 1, 2], [0], [0]>} : vector<4x8x8xf32>, vector<4x8x32xf32>, vector<4x8x32xf32> -> vector<4x8x32xf32>
    "tpu.trace_stop"() : () -> ()
    %cst_135 = arith.constant dense<0.000000e+00> : vector<8x32xf32>
    %373 = vector.multi_reduction <add>, %372, %cst_135 [0] : vector<4x8x32xf32> to vector<8x32xf32>
    %c1400 = arith.constant 1400 : index
    %c0_136 = arith.constant 0 : index
    %374 = vector.load %arg1[%c1400, %c0_136] : memref<2320x128xf32, #tpu.memory_space<vmem>>, vector<1x32xf32>
    %375 = vector.broadcast %374 : vector<1x32xf32> to vector<8x32xf32>
    %376 = arith.addf %373, %375 : vector<8x32xf32>
    %377 = arith.addf %347, %376 : vector<8x32xf32>
    %cst_137 = arith.constant dense<0.000000e+00> : vector<8xf32>
    %378 = vector.multi_reduction <add>, %377, %cst_137 [1] : vector<8x32xf32> to vector<8xf32>
    %379 = vector.shape_cast %378 : vector<8xf32> to vector<8x1xf32>
    %cst_138 = arith.constant 3.200000e+01 : f32
    %380 = vector.broadcast %cst_138 : f32 to vector<8x1xf32>
    %381 = arith.divf %379, %380 : vector<8x1xf32>
    %382 = arith.mulf %377, %377 : vector<8x32xf32>
    %cst_139 = arith.constant dense<0.000000e+00> : vector<8xf32>
    %383 = vector.multi_reduction <add>, %382, %cst_139 [1] : vector<8x32xf32> to vector<8xf32>
    %384 = vector.shape_cast %383 : vector<8xf32> to vector<8x1xf32>
    %cst_140 = arith.constant 3.200000e+01 : f32
    %385 = vector.broadcast %cst_140 : f32 to vector<8x1xf32>
    %386 = arith.divf %384, %385 : vector<8x1xf32>
    %387 = arith.mulf %381, %381 : vector<8x1xf32>
    %388 = arith.subf %386, %387 : vector<8x1xf32>
    %389 = vector.broadcast %381 : vector<8x1xf32> to vector<8x32xf32>
    %390 = arith.subf %377, %389 : vector<8x32xf32>
    %cst_141 = arith.constant 9.99999974E-6 : f32
    %391 = vector.broadcast %cst_141 : f32 to vector<8x1xf32>
    %392 = arith.addf %388, %391 : vector<8x1xf32>
    %393 = math.rsqrt %392 : vector<8x1xf32>
    %394 = vector.broadcast %393 : vector<8x1xf32> to vector<8x32xf32>
    %395 = arith.mulf %390, %394 : vector<8x32xf32>
    %c1408 = arith.constant 1408 : index
    %c0_142 = arith.constant 0 : index
    %396 = vector.load %arg1[%c1408, %c0_142] : memref<2320x128xf32, #tpu.memory_space<vmem>>, vector<1x32xf32>
    %397 = vector.broadcast %396 : vector<1x32xf32> to vector<8x32xf32>
    %398 = arith.mulf %395, %397 : vector<8x32xf32>
    %c1416 = arith.constant 1416 : index
    %c0_143 = arith.constant 0 : index
    %399 = vector.load %arg1[%c1416, %c0_143] : memref<2320x128xf32, #tpu.memory_space<vmem>>, vector<1x32xf32>
    %400 = vector.broadcast %399 : vector<1x32xf32> to vector<8x32xf32>
    %401 = arith.addf %398, %400 : vector<8x32xf32>
    %c1424 = arith.constant 1424 : index
    %c0_144 = arith.constant 0 : index
    %402 = vector.load %arg1[%c1424, %c0_144] : memref<2320x128xf32, #tpu.memory_space<vmem>>, vector<32x128xf32>
    %cst_145 = arith.constant dense<0.000000e+00> : vector<8x128xf32>
    %403 = tpu.matmul %401, %402, %cst_145 {dimension_numbers = #tpu.dot_dimension_numbers<[1], [0], [0], [1], [0, 0, 1, 1], [], []>} : vector<8x32xf32>, vector<32x128xf32>, vector<8x128xf32> -> vector<8x128xf32>
    %c1456 = arith.constant 1456 : index
    %c0_146 = arith.constant 0 : index
    %404 = vector.load %arg1[%c1456, %c0_146] : memref<2320x128xf32, #tpu.memory_space<vmem>>, vector<1x128xf32>
    %405 = vector.broadcast %404 : vector<1x128xf32> to vector<8x128xf32>
    %406 = arith.addf %403, %405 : vector<8x128xf32>
    %cst_147 = arith.constant 0.000000e+00 : f32
    %407 = vector.broadcast %cst_147 : f32 to vector<8x128xf32>
    %408 = arith.maximumf %406, %407 : vector<8x128xf32>
    %c1464 = arith.constant 1464 : index
    %c0_148 = arith.constant 0 : index
    %409 = vector.load %arg1[%c1464, %c0_148] : memref<2320x128xf32, #tpu.memory_space<vmem>>, vector<128x32xf32>
    %cst_149 = arith.constant dense<0.000000e+00> : vector<8x32xf32>
    %410 = tpu.matmul %408, %409, %cst_149 {dimension_numbers = #tpu.dot_dimension_numbers<[1], [0], [0], [1], [0, 0, 1, 1], [], []>} : vector<8x128xf32>, vector<128x32xf32>, vector<8x32xf32> -> vector<8x32xf32>
    %c1592 = arith.constant 1592 : index
    %c0_150 = arith.constant 0 : index
    %411 = vector.load %arg1[%c1592, %c0_150] : memref<2320x128xf32, #tpu.memory_space<vmem>>, vector<1x32xf32>
    %412 = vector.broadcast %411 : vector<1x32xf32> to vector<8x32xf32>
    %413 = arith.addf %410, %412 : vector<8x32xf32>
    %414 = arith.addf %401, %413 : vector<8x32xf32>
    %cst_151 = arith.constant dense<0.000000e+00> : vector<8xf32>
    %415 = vector.multi_reduction <add>, %414, %cst_151 [1] : vector<8x32xf32> to vector<8xf32>
    %416 = vector.shape_cast %415 : vector<8xf32> to vector<8x1xf32>
    %cst_152 = arith.constant 3.200000e+01 : f32
    %417 = vector.broadcast %cst_152 : f32 to vector<8x1xf32>
    %418 = arith.divf %416, %417 : vector<8x1xf32>
    %419 = arith.mulf %414, %414 : vector<8x32xf32>
    %cst_153 = arith.constant dense<0.000000e+00> : vector<8xf32>
    %420 = vector.multi_reduction <add>, %419, %cst_153 [1] : vector<8x32xf32> to vector<8xf32>
    %421 = vector.shape_cast %420 : vector<8xf32> to vector<8x1xf32>
    %cst_154 = arith.constant 3.200000e+01 : f32
    %422 = vector.broadcast %cst_154 : f32 to vector<8x1xf32>
    %423 = arith.divf %421, %422 : vector<8x1xf32>
    %424 = arith.mulf %418, %418 : vector<8x1xf32>
    %425 = arith.subf %423, %424 : vector<8x1xf32>
    %426 = vector.broadcast %418 : vector<8x1xf32> to vector<8x32xf32>
    %427 = arith.subf %414, %426 : vector<8x32xf32>
    %cst_155 = arith.constant 9.99999974E-6 : f32
    %428 = vector.broadcast %cst_155 : f32 to vector<8x1xf32>
    %429 = arith.addf %425, %428 : vector<8x1xf32>
    %430 = math.rsqrt %429 : vector<8x1xf32>
    %431 = vector.broadcast %430 : vector<8x1xf32> to vector<8x32xf32>
    %432 = arith.mulf %427, %431 : vector<8x32xf32>
    %c1600 = arith.constant 1600 : index
    %c0_156 = arith.constant 0 : index
    %433 = vector.load %arg1[%c1600, %c0_156] : memref<2320x128xf32, #tpu.memory_space<vmem>>, vector<1x32xf32>
    %434 = vector.broadcast %433 : vector<1x32xf32> to vector<8x32xf32>
    %435 = arith.mulf %432, %434 : vector<8x32xf32>
    %c1608 = arith.constant 1608 : index
    %c0_157 = arith.constant 0 : index
    %436 = vector.load %arg1[%c1608, %c0_157] : memref<2320x128xf32, #tpu.memory_space<vmem>>, vector<1x32xf32>
    %437 = vector.broadcast %436 : vector<1x32xf32> to vector<8x32xf32>
    %438 = arith.addf %435, %437 : vector<8x32xf32>
    %c1616 = arith.constant 1616 : index
    %c0_158 = arith.constant 0 : index
    %439 = vector.load %arg1[%c1616, %c0_158] : memref<2320x128xf32, #tpu.memory_space<vmem>>, vector<32x32xf32>
    %440 = vector.shape_cast %439 : vector<32x32xf32> to vector<4x8x32xf32>
    %c1648 = arith.constant 1648 : index
    %c0_159 = arith.constant 0 : index
    %441 = vector.load %arg1[%c1648, %c0_159] : memref<2320x128xf32, #tpu.memory_space<vmem>>, vector<32x8xf32>
    %442 = vector.shape_cast %441 : vector<32x8xf32> to vector<4x8x8xf32>
    %443 = vector.shape_cast %438 : vector<8x32xf32> to vector<1x8x32xf32>
    %444 = vector.broadcast %443 : vector<1x8x32xf32> to vector<4x8x32xf32>
    "tpu.trace_start"() <{level = 10 : i32, message = "hsd,hkd->hsk"}> : () -> ()
    %cst_160 = arith.constant dense<0.000000e+00> : vector<4x8x8xf32>
    %445 = tpu.matmul %444, %440, %cst_160 {dimension_numbers = #tpu.dot_dimension_numbers<[2], [2], [1], [1], [0, 0, 0, 1, 1, 1], [0], [0]>} : vector<4x8x32xf32>, vector<4x8x32xf32>, vector<4x8x8xf32> -> vector<4x8x8xf32>
    "tpu.trace_stop"() : () -> ()
    %446 = arith.addf %445, %442 : vector<4x8x8xf32>
    %c1680 = arith.constant 1680 : index
    %c0_161 = arith.constant 0 : index
    %447 = vector.load %arg1[%c1680, %c0_161] : memref<2320x128xf32, #tpu.memory_space<vmem>>, vector<32x32xf32>
    %448 = vector.shape_cast %447 : vector<32x32xf32> to vector<4x8x32xf32>
    %c1712 = arith.constant 1712 : index
    %c0_162 = arith.constant 0 : index
    %449 = vector.load %arg1[%c1712, %c0_162] : memref<2320x128xf32, #tpu.memory_space<vmem>>, vector<32x8xf32>
    %450 = vector.shape_cast %449 : vector<32x8xf32> to vector<4x8x8xf32>
    %451 = vector.shape_cast %438 : vector<8x32xf32> to vector<1x8x32xf32>
    %452 = vector.broadcast %451 : vector<1x8x32xf32> to vector<4x8x32xf32>
    "tpu.trace_start"() <{level = 10 : i32, message = "hsd,hkd->hsk"}> : () -> ()
    %cst_163 = arith.constant dense<0.000000e+00> : vector<4x8x8xf32>
    %453 = tpu.matmul %452, %448, %cst_163 {dimension_numbers = #tpu.dot_dimension_numbers<[2], [2], [1], [1], [0, 0, 0, 1, 1, 1], [0], [0]>} : vector<4x8x32xf32>, vector<4x8x32xf32>, vector<4x8x8xf32> -> vector<4x8x8xf32>
    "tpu.trace_stop"() : () -> ()
    %454 = arith.addf %453, %450 : vector<4x8x8xf32>
    %c1744 = arith.constant 1744 : index
    %c0_164 = arith.constant 0 : index
    %455 = vector.load %arg1[%c1744, %c0_164] : memref<2320x128xf32, #tpu.memory_space<vmem>>, vector<32x32xf32>
    %456 = vector.shape_cast %455 : vector<32x32xf32> to vector<4x8x32xf32>
    %c1776 = arith.constant 1776 : index
    %c0_165 = arith.constant 0 : index
    %457 = vector.load %arg1[%c1776, %c0_165] : memref<2320x128xf32, #tpu.memory_space<vmem>>, vector<32x8xf32>
    %458 = vector.shape_cast %457 : vector<32x8xf32> to vector<4x8x8xf32>
    %459 = vector.shape_cast %438 : vector<8x32xf32> to vector<1x8x32xf32>
    %460 = vector.broadcast %459 : vector<1x8x32xf32> to vector<4x8x32xf32>
    "tpu.trace_start"() <{level = 10 : i32, message = "hsd,hkd->hsk"}> : () -> ()
    %cst_166 = arith.constant dense<0.000000e+00> : vector<4x8x8xf32>
    %461 = tpu.matmul %460, %456, %cst_166 {dimension_numbers = #tpu.dot_dimension_numbers<[2], [2], [1], [1], [0, 0, 0, 1, 1, 1], [0], [0]>} : vector<4x8x32xf32>, vector<4x8x32xf32>, vector<4x8x8xf32> -> vector<4x8x8xf32>
    "tpu.trace_stop"() : () -> ()
    %462 = arith.addf %461, %458 : vector<4x8x8xf32>
    "tpu.trace_start"() <{level = 10 : i32, message = "hqd,hkd->hqk"}> : () -> ()
    %cst_167 = arith.constant dense<0.000000e+00> : vector<4x8x8xf32>
    %463 = tpu.matmul %446, %454, %cst_167 {dimension_numbers = #tpu.dot_dimension_numbers<[2], [2], [1], [1], [0, 0, 0, 1, 1, 1], [0], [0]>} : vector<4x8x8xf32>, vector<4x8x8xf32>, vector<4x8x8xf32> -> vector<4x8x8xf32>
    "tpu.trace_stop"() : () -> ()
    %cst_168 = arith.constant 0.353553385 : f32
    %464 = vector.broadcast %cst_168 : f32 to vector<4x8x8xf32>
    %465 = arith.mulf %463, %464 : vector<4x8x8xf32>
    %cst_169 = arith.constant dense<0xFF800000> : vector<4x8xf32>
    %466 = vector.multi_reduction <maximumf>, %465, %cst_169 [2] : vector<4x8x8xf32> to vector<4x8xf32>
    %467 = vector.shape_cast %466 : vector<4x8xf32> to vector<4x8x1xf32>
    %468 = vector.broadcast %467 : vector<4x8x1xf32> to vector<4x8x8xf32>
    %469 = arith.subf %465, %468 : vector<4x8x8xf32>
    %470 = math.exp %469 : vector<4x8x8xf32>
    %cst_170 = arith.constant dense<0.000000e+00> : vector<4x8xf32>
    %471 = vector.multi_reduction <add>, %470, %cst_170 [2] : vector<4x8x8xf32> to vector<4x8xf32>
    %472 = vector.shape_cast %471 : vector<4x8xf32> to vector<4x8x1xf32>
    %473 = tpu.reciprocal %472 {approx = true} : vector<4x8x1xf32> -> vector<4x8x1xf32>
    %474 = vector.broadcast %473 : vector<4x8x1xf32> to vector<4x8x8xf32>
    %475 = arith.mulf %470, %474 : vector<4x8x8xf32>
    "tpu.trace_start"() <{level = 10 : i32, message = "hqk,hkd->hqd"}> : () -> ()
    %cst_171 = arith.constant dense<0.000000e+00> : vector<4x8x8xf32>
    %476 = tpu.matmul %475, %462, %cst_171 {dimension_numbers = #tpu.dot_dimension_numbers<[2], [1], [1], [2], [0, 0, 0, 1, 1, 2], [0], [0]>} : vector<4x8x8xf32>, vector<4x8x8xf32>, vector<4x8x8xf32> -> vector<4x8x8xf32>
    "tpu.trace_stop"() : () -> ()
    %c1808 = arith.constant 1808 : index
    %c0_172 = arith.constant 0 : index
    %477 = vector.load %arg1[%c1808, %c0_172] : memref<2320x128xf32, #tpu.memory_space<vmem>>, vector<32x32xf32>
    %478 = vector.shape_cast %477 : vector<32x32xf32> to vector<4x8x32xf32>
    "tpu.trace_start"() <{level = 10 : i32, message = "hqd,hdo->hqo"}> : () -> ()
    %cst_173 = arith.constant dense<0.000000e+00> : vector<4x8x32xf32>
    %479 = tpu.matmul %476, %478, %cst_173 {dimension_numbers = #tpu.dot_dimension_numbers<[2], [1], [1], [2], [0, 0, 0, 1, 1, 2], [0], [0]>} : vector<4x8x8xf32>, vector<4x8x32xf32>, vector<4x8x32xf32> -> vector<4x8x32xf32>
    "tpu.trace_stop"() : () -> ()
    %cst_174 = arith.constant dense<0.000000e+00> : vector<8x32xf32>
    %480 = vector.multi_reduction <add>, %479, %cst_174 [0] : vector<4x8x32xf32> to vector<8x32xf32>
    %c1840 = arith.constant 1840 : index
    %c0_175 = arith.constant 0 : index
    %481 = vector.load %arg1[%c1840, %c0_175] : memref<2320x128xf32, #tpu.memory_space<vmem>>, vector<1x32xf32>
    %482 = vector.broadcast %481 : vector<1x32xf32> to vector<8x32xf32>
    %483 = arith.addf %480, %482 : vector<8x32xf32>
    %484 = arith.addf %438, %483 : vector<8x32xf32>
    %cst_176 = arith.constant dense<0.000000e+00> : vector<8xf32>
    %485 = vector.multi_reduction <add>, %484, %cst_176 [1] : vector<8x32xf32> to vector<8xf32>
    %486 = vector.shape_cast %485 : vector<8xf32> to vector<8x1xf32>
    %cst_177 = arith.constant 3.200000e+01 : f32
    %487 = vector.broadcast %cst_177 : f32 to vector<8x1xf32>
    %488 = arith.divf %486, %487 : vector<8x1xf32>
    %489 = arith.mulf %484, %484 : vector<8x32xf32>
    %cst_178 = arith.constant dense<0.000000e+00> : vector<8xf32>
    %490 = vector.multi_reduction <add>, %489, %cst_178 [1] : vector<8x32xf32> to vector<8xf32>
    %491 = vector.shape_cast %490 : vector<8xf32> to vector<8x1xf32>
    %cst_179 = arith.constant 3.200000e+01 : f32
    %492 = vector.broadcast %cst_179 : f32 to vector<8x1xf32>
    %493 = arith.divf %491, %492 : vector<8x1xf32>
    %494 = arith.mulf %488, %488 : vector<8x1xf32>
    %495 = arith.subf %493, %494 : vector<8x1xf32>
    %496 = vector.broadcast %488 : vector<8x1xf32> to vector<8x32xf32>
    %497 = arith.subf %484, %496 : vector<8x32xf32>
    %cst_180 = arith.constant 9.99999974E-6 : f32
    %498 = vector.broadcast %cst_180 : f32 to vector<8x1xf32>
    %499 = arith.addf %495, %498 : vector<8x1xf32>
    %500 = math.rsqrt %499 : vector<8x1xf32>
    %501 = vector.broadcast %500 : vector<8x1xf32> to vector<8x32xf32>
    %502 = arith.mulf %497, %501 : vector<8x32xf32>
    %c1848 = arith.constant 1848 : index
    %c0_181 = arith.constant 0 : index
    %503 = vector.load %arg1[%c1848, %c0_181] : memref<2320x128xf32, #tpu.memory_space<vmem>>, vector<1x32xf32>
    %504 = vector.broadcast %503 : vector<1x32xf32> to vector<8x32xf32>
    %505 = arith.mulf %502, %504 : vector<8x32xf32>
    %c1856 = arith.constant 1856 : index
    %c0_182 = arith.constant 0 : index
    %506 = vector.load %arg1[%c1856, %c0_182] : memref<2320x128xf32, #tpu.memory_space<vmem>>, vector<1x32xf32>
    %507 = vector.broadcast %506 : vector<1x32xf32> to vector<8x32xf32>
    %508 = arith.addf %505, %507 : vector<8x32xf32>
    %c1864 = arith.constant 1864 : index
    %c0_183 = arith.constant 0 : index
    %509 = vector.load %arg1[%c1864, %c0_183] : memref<2320x128xf32, #tpu.memory_space<vmem>>, vector<32x32xf32>
    %510 = vector.shape_cast %509 : vector<32x32xf32> to vector<4x8x32xf32>
    %c1896 = arith.constant 1896 : index
    %c0_184 = arith.constant 0 : index
    %511 = vector.load %arg1[%c1896, %c0_184] : memref<2320x128xf32, #tpu.memory_space<vmem>>, vector<32x8xf32>
    %512 = vector.shape_cast %511 : vector<32x8xf32> to vector<4x8x8xf32>
    %513 = vector.shape_cast %508 : vector<8x32xf32> to vector<1x8x32xf32>
    %514 = vector.broadcast %513 : vector<1x8x32xf32> to vector<4x8x32xf32>
    "tpu.trace_start"() <{level = 10 : i32, message = "hsd,hkd->hsk"}> : () -> ()
    %cst_185 = arith.constant dense<0.000000e+00> : vector<4x8x8xf32>
    %515 = tpu.matmul %514, %510, %cst_185 {dimension_numbers = #tpu.dot_dimension_numbers<[2], [2], [1], [1], [0, 0, 0, 1, 1, 1], [0], [0]>} : vector<4x8x32xf32>, vector<4x8x32xf32>, vector<4x8x8xf32> -> vector<4x8x8xf32>
    "tpu.trace_stop"() : () -> ()
    %516 = arith.addf %515, %512 : vector<4x8x8xf32>
    "tpu.trace_start"() <{level = 10 : i32, message = "hqd,hkd->hqk"}> : () -> ()
    %cst_186 = arith.constant dense<0.000000e+00> : vector<4x8x8xf32>
    %517 = tpu.matmul %516, %269, %cst_186 {dimension_numbers = #tpu.dot_dimension_numbers<[2], [2], [1], [1], [0, 0, 0, 1, 1, 1], [0], [0]>} : vector<4x8x8xf32>, vector<4x8x8xf32>, vector<4x8x8xf32> -> vector<4x8x8xf32>
    "tpu.trace_stop"() : () -> ()
    %cst_187 = arith.constant 0.353553385 : f32
    %518 = vector.broadcast %cst_187 : f32 to vector<4x8x8xf32>
    %519 = arith.mulf %517, %518 : vector<4x8x8xf32>
    %cst_188 = arith.constant dense<0xFF800000> : vector<4x8xf32>
    %520 = vector.multi_reduction <maximumf>, %519, %cst_188 [2] : vector<4x8x8xf32> to vector<4x8xf32>
    %521 = vector.shape_cast %520 : vector<4x8xf32> to vector<4x8x1xf32>
    %522 = vector.broadcast %521 : vector<4x8x1xf32> to vector<4x8x8xf32>
    %523 = arith.subf %519, %522 : vector<4x8x8xf32>
    %524 = math.exp %523 : vector<4x8x8xf32>
    %cst_189 = arith.constant dense<0.000000e+00> : vector<4x8xf32>
    %525 = vector.multi_reduction <add>, %524, %cst_189 [2] : vector<4x8x8xf32> to vector<4x8xf32>
    %526 = vector.shape_cast %525 : vector<4x8xf32> to vector<4x8x1xf32>
    %527 = tpu.reciprocal %526 {approx = true} : vector<4x8x1xf32> -> vector<4x8x1xf32>
    %528 = vector.broadcast %527 : vector<4x8x1xf32> to vector<4x8x8xf32>
    %529 = arith.mulf %524, %528 : vector<4x8x8xf32>
    "tpu.trace_start"() <{level = 10 : i32, message = "hqk,hkd->hqd"}> : () -> ()
    %cst_190 = arith.constant dense<0.000000e+00> : vector<4x8x8xf32>
    %530 = tpu.matmul %529, %277, %cst_190 {dimension_numbers = #tpu.dot_dimension_numbers<[2], [1], [1], [2], [0, 0, 0, 1, 1, 2], [0], [0]>} : vector<4x8x8xf32>, vector<4x8x8xf32>, vector<4x8x8xf32> -> vector<4x8x8xf32>
    "tpu.trace_stop"() : () -> ()
    %c2056 = arith.constant 2056 : index
    %c0_191 = arith.constant 0 : index
    %531 = vector.load %arg1[%c2056, %c0_191] : memref<2320x128xf32, #tpu.memory_space<vmem>>, vector<32x32xf32>
    %532 = vector.shape_cast %531 : vector<32x32xf32> to vector<4x8x32xf32>
    "tpu.trace_start"() <{level = 10 : i32, message = "hqd,hdo->hqo"}> : () -> ()
    %cst_192 = arith.constant dense<0.000000e+00> : vector<4x8x32xf32>
    %533 = tpu.matmul %530, %532, %cst_192 {dimension_numbers = #tpu.dot_dimension_numbers<[2], [1], [1], [2], [0, 0, 0, 1, 1, 2], [0], [0]>} : vector<4x8x8xf32>, vector<4x8x32xf32>, vector<4x8x32xf32> -> vector<4x8x32xf32>
    "tpu.trace_stop"() : () -> ()
    %cst_193 = arith.constant dense<0.000000e+00> : vector<8x32xf32>
    %534 = vector.multi_reduction <add>, %533, %cst_193 [0] : vector<4x8x32xf32> to vector<8x32xf32>
    %c2088 = arith.constant 2088 : index
    %c0_194 = arith.constant 0 : index
    %535 = vector.load %arg1[%c2088, %c0_194] : memref<2320x128xf32, #tpu.memory_space<vmem>>, vector<1x32xf32>
    %536 = vector.broadcast %535 : vector<1x32xf32> to vector<8x32xf32>
    %537 = arith.addf %534, %536 : vector<8x32xf32>
    %538 = arith.addf %508, %537 : vector<8x32xf32>
    %cst_195 = arith.constant dense<0.000000e+00> : vector<8xf32>
    %539 = vector.multi_reduction <add>, %538, %cst_195 [1] : vector<8x32xf32> to vector<8xf32>
    %540 = vector.shape_cast %539 : vector<8xf32> to vector<8x1xf32>
    %cst_196 = arith.constant 3.200000e+01 : f32
    %541 = vector.broadcast %cst_196 : f32 to vector<8x1xf32>
    %542 = arith.divf %540, %541 : vector<8x1xf32>
    %543 = arith.mulf %538, %538 : vector<8x32xf32>
    %cst_197 = arith.constant dense<0.000000e+00> : vector<8xf32>
    %544 = vector.multi_reduction <add>, %543, %cst_197 [1] : vector<8x32xf32> to vector<8xf32>
    %545 = vector.shape_cast %544 : vector<8xf32> to vector<8x1xf32>
    %cst_198 = arith.constant 3.200000e+01 : f32
    %546 = vector.broadcast %cst_198 : f32 to vector<8x1xf32>
    %547 = arith.divf %545, %546 : vector<8x1xf32>
    %548 = arith.mulf %542, %542 : vector<8x1xf32>
    %549 = arith.subf %547, %548 : vector<8x1xf32>
    %550 = vector.broadcast %542 : vector<8x1xf32> to vector<8x32xf32>
    %551 = arith.subf %538, %550 : vector<8x32xf32>
    %cst_199 = arith.constant 9.99999974E-6 : f32
    %552 = vector.broadcast %cst_199 : f32 to vector<8x1xf32>
    %553 = arith.addf %549, %552 : vector<8x1xf32>
    %554 = math.rsqrt %553 : vector<8x1xf32>
    %555 = vector.broadcast %554 : vector<8x1xf32> to vector<8x32xf32>
    %556 = arith.mulf %551, %555 : vector<8x32xf32>
    %c2096 = arith.constant 2096 : index
    %c0_200 = arith.constant 0 : index
    %557 = vector.load %arg1[%c2096, %c0_200] : memref<2320x128xf32, #tpu.memory_space<vmem>>, vector<1x32xf32>
    %558 = vector.broadcast %557 : vector<1x32xf32> to vector<8x32xf32>
    %559 = arith.mulf %556, %558 : vector<8x32xf32>
    %c2104 = arith.constant 2104 : index
    %c0_201 = arith.constant 0 : index
    %560 = vector.load %arg1[%c2104, %c0_201] : memref<2320x128xf32, #tpu.memory_space<vmem>>, vector<1x32xf32>
    %561 = vector.broadcast %560 : vector<1x32xf32> to vector<8x32xf32>
    %562 = arith.addf %559, %561 : vector<8x32xf32>
    %c2112 = arith.constant 2112 : index
    %c0_202 = arith.constant 0 : index
    %563 = vector.load %arg1[%c2112, %c0_202] : memref<2320x128xf32, #tpu.memory_space<vmem>>, vector<32x128xf32>
    %cst_203 = arith.constant dense<0.000000e+00> : vector<8x128xf32>
    %564 = tpu.matmul %562, %563, %cst_203 {dimension_numbers = #tpu.dot_dimension_numbers<[1], [0], [0], [1], [0, 0, 1, 1], [], []>} : vector<8x32xf32>, vector<32x128xf32>, vector<8x128xf32> -> vector<8x128xf32>
    %c2144 = arith.constant 2144 : index
    %c0_204 = arith.constant 0 : index
    %565 = vector.load %arg1[%c2144, %c0_204] : memref<2320x128xf32, #tpu.memory_space<vmem>>, vector<1x128xf32>
    %566 = vector.broadcast %565 : vector<1x128xf32> to vector<8x128xf32>
    %567 = arith.addf %564, %566 : vector<8x128xf32>
    %cst_205 = arith.constant 0.000000e+00 : f32
    %568 = vector.broadcast %cst_205 : f32 to vector<8x128xf32>
    %569 = arith.maximumf %567, %568 : vector<8x128xf32>
    %c2152 = arith.constant 2152 : index
    %c0_206 = arith.constant 0 : index
    %570 = vector.load %arg1[%c2152, %c0_206] : memref<2320x128xf32, #tpu.memory_space<vmem>>, vector<128x32xf32>
    %cst_207 = arith.constant dense<0.000000e+00> : vector<8x32xf32>
    %571 = tpu.matmul %569, %570, %cst_207 {dimension_numbers = #tpu.dot_dimension_numbers<[1], [0], [0], [1], [0, 0, 1, 1], [], []>} : vector<8x128xf32>, vector<128x32xf32>, vector<8x32xf32> -> vector<8x32xf32>
    %c2280 = arith.constant 2280 : index
    %c0_208 = arith.constant 0 : index
    %572 = vector.load %arg1[%c2280, %c0_208] : memref<2320x128xf32, #tpu.memory_space<vmem>>, vector<1x32xf32>
    %573 = vector.broadcast %572 : vector<1x32xf32> to vector<8x32xf32>
    %574 = arith.addf %571, %573 : vector<8x32xf32>
    %575 = arith.addf %562, %574 : vector<8x32xf32>
    %cst_209 = arith.constant dense<0.000000e+00> : vector<8xf32>
    %576 = vector.multi_reduction <add>, %575, %cst_209 [1] : vector<8x32xf32> to vector<8xf32>
    %577 = vector.shape_cast %576 : vector<8xf32> to vector<8x1xf32>
    %cst_210 = arith.constant 3.200000e+01 : f32
    %578 = vector.broadcast %cst_210 : f32 to vector<8x1xf32>
    %579 = arith.divf %577, %578 : vector<8x1xf32>
    %580 = arith.mulf %575, %575 : vector<8x32xf32>
    %cst_211 = arith.constant dense<0.000000e+00> : vector<8xf32>
    %581 = vector.multi_reduction <add>, %580, %cst_211 [1] : vector<8x32xf32> to vector<8xf32>
    %582 = vector.shape_cast %581 : vector<8xf32> to vector<8x1xf32>
    %cst_212 = arith.constant 3.200000e+01 : f32
    %583 = vector.broadcast %cst_212 : f32 to vector<8x1xf32>
    %584 = arith.divf %582, %583 : vector<8x1xf32>
    %585 = arith.mulf %579, %579 : vector<8x1xf32>
    %586 = arith.subf %584, %585 : vector<8x1xf32>
    %587 = vector.broadcast %579 : vector<8x1xf32> to vector<8x32xf32>
    %588 = arith.subf %575, %587 : vector<8x32xf32>
    %cst_213 = arith.constant 9.99999974E-6 : f32
    %589 = vector.broadcast %cst_213 : f32 to vector<8x1xf32>
    %590 = arith.addf %586, %589 : vector<8x1xf32>
    %591 = math.rsqrt %590 : vector<8x1xf32>
    %592 = vector.broadcast %591 : vector<8x1xf32> to vector<8x32xf32>
    %593 = arith.mulf %588, %592 : vector<8x32xf32>
    %c2288 = arith.constant 2288 : index
    %c0_214 = arith.constant 0 : index
    %594 = vector.load %arg1[%c2288, %c0_214] : memref<2320x128xf32, #tpu.memory_space<vmem>>, vector<1x32xf32>
    %595 = vector.broadcast %594 : vector<1x32xf32> to vector<8x32xf32>
    %596 = arith.mulf %593, %595 : vector<8x32xf32>
    %c2296 = arith.constant 2296 : index
    %c0_215 = arith.constant 0 : index
    %597 = vector.load %arg1[%c2296, %c0_215] : memref<2320x128xf32, #tpu.memory_space<vmem>>, vector<1x32xf32>
    %598 = vector.broadcast %597 : vector<1x32xf32> to vector<8x32xf32>
    %599 = arith.addf %596, %598 : vector<8x32xf32>
    %cst_216 = arith.constant dense<0.000000e+00> : vector<8xf32>
    %600 = vector.multi_reduction <add>, %599, %cst_216 [1] : vector<8x32xf32> to vector<8xf32>
    %601 = vector.shape_cast %600 : vector<8xf32> to vector<8x1xf32>
    %cst_217 = arith.constant 3.200000e+01 : f32
    %602 = vector.broadcast %cst_217 : f32 to vector<8x1xf32>
    %603 = arith.divf %601, %602 : vector<8x1xf32>
    %604 = arith.mulf %599, %599 : vector<8x32xf32>
    %cst_218 = arith.constant dense<0.000000e+00> : vector<8xf32>
    %605 = vector.multi_reduction <add>, %604, %cst_218 [1] : vector<8x32xf32> to vector<8xf32>
    %606 = vector.shape_cast %605 : vector<8xf32> to vector<8x1xf32>
    %cst_219 = arith.constant 3.200000e+01 : f32
    %607 = vector.broadcast %cst_219 : f32 to vector<8x1xf32>
    %608 = arith.divf %606, %607 : vector<8x1xf32>
    %609 = arith.mulf %603, %603 : vector<8x1xf32>
    %610 = arith.subf %608, %609 : vector<8x1xf32>
    %611 = vector.broadcast %603 : vector<8x1xf32> to vector<8x32xf32>
    %612 = arith.subf %599, %611 : vector<8x32xf32>
    %cst_220 = arith.constant 9.99999974E-6 : f32
    %613 = vector.broadcast %cst_220 : f32 to vector<8x1xf32>
    %614 = arith.addf %610, %613 : vector<8x1xf32>
    %615 = math.rsqrt %614 : vector<8x1xf32>
    %616 = vector.broadcast %615 : vector<8x1xf32> to vector<8x32xf32>
    %617 = arith.mulf %612, %616 : vector<8x32xf32>
    %c2304 = arith.constant 2304 : index
    %c0_221 = arith.constant 0 : index
    %618 = vector.load %arg1[%c2304, %c0_221] : memref<2320x128xf32, #tpu.memory_space<vmem>>, vector<1x32xf32>
    %619 = vector.broadcast %618 : vector<1x32xf32> to vector<8x32xf32>
    %620 = arith.mulf %617, %619 : vector<8x32xf32>
    %c2312 = arith.constant 2312 : index
    %c0_222 = arith.constant 0 : index
    %621 = vector.load %arg1[%c2312, %c0_222] : memref<2320x128xf32, #tpu.memory_space<vmem>>, vector<1x32xf32>
    %622 = vector.broadcast %621 : vector<1x32xf32> to vector<8x32xf32>
    %623 = arith.addf %620, %622 : vector<8x32xf32>
    %c0_223 = arith.constant 0 : index
    %c0_224 = arith.constant 0 : index
    %624 = vector.load %arg2[%c0_223, %c0_224] : memref<8x32xf32, #tpu.memory_space<vmem>>, vector<8x32xf32>
    tpu.vector_store %arg2[%c0_223, %c0_224], %623 {strides = array<i32>} : memref<8x32xf32, #tpu.memory_space<vmem>>, vector<8x32xf32>,
    return
  }
}

</mosaic_0001>

<bundles_post_ra>
// kernel: forward.1
= control target key start
LH: loop header
LB: loop body
LE: loop exit
PB: predicated region body
PF: predicated region fallthrough
CT: control target
= control target key end

     0   :  { %7 = vsyncpa [#allocation3], 0  ;;  %s15143_s0 = inlined_call_operand.vmem [shape: s32[8,1], index: 0, kind: input, shape index: {}]   ;;  %s15144_s1 = inlined_call_operand.hbm [shape: f32[2320,128], index: 1, kind: input, shape index: {}]   ;;  %s15145_s2 = inlined_call_operand.hbm [shape: f32[8,32], index: 2, kind: output, shape index: {}]  }
   0x1   :  { %8 = vsyncpa [#allocation4], 0  ;;  %s14049_s9 = smov [#allocation2]  }
   0x2   :  { %s16_s10 = sshll.u32 %s14049_s9, 4  ;;  %s17_s10 = int_to_ptr.vmem [resolvable:$true] %s16_s10 }
   0x3   :  { %s14013_s11 = scalar_lea.vmem %s17_s10, 37120  ;;  %p14018_p1 = scmp.lt.s32.totalorder %s17_s10, %s17_s10 }
   0x4   :  { %p14014_p0 = scmp.ne.s32.totalorder %s17_s10, %s14013_s11  ;;  %p14019_p2 = scmp.lt.s32.totalorder %s14013_s11, %s14013_s11 }
   0x6   :  { %p14020_p3 = por %p14019_p2, %p14018_p1 }
   0x8   :  { %p14021_p4 = pnand %p14020_p3, %p14014_p0 }
   0xa   :  { %14024 = shalt.err (!%p14021_p4)
}
   0xb   :  { %s14050_s12 = smov 128   ;;  %s14051_s13 = smov 8  }
   0xc   :  { %22 = dma.hbm_to_vmem [thread:$0]  %s15144_s1, 37120, %s17_s10, [#allocation3], %s14050_s12, %s14050_s12, %s14051_s13  }
   0xd   :  { %14045 = dma.done.wait [#allocation3], 37120  }
   0xe   :  { %14046 = vsyncadd [#allocation3], 4294930176  ;;  %v14052_v0 = vmov 0   ;;  %v14053_v1 = vmov 0.0   ;;  %vm14054_vm0 = vmmov 0   ;;  %v26_v2 = vld [vmem:[%s15143_s0] sm:$0xff]  ;;  %v27_v8 = vlaneseq }
   0xf   :  { %13884 = vset.pattern.permute.xlu0 %v14052_v0  ;;  %12962 = vmatprep.subr.mxu0 %v14053_v1  ;;  %v38_v3 = vld [vmem:[#allocation2 + $0x18] sm:$0xff]  ;;  %v37_v4 = vld [vmem:[#allocation2 + $0x10] sm:$0xff]  ;;  %v36_v5 = vld [vmem:[#allocation2 + $0x8] sm:$0xff]  ;;  %vm39_vm1 = vcmask 261120   ;;  %vm1016_vm3 = vcmask 64512   ;;  %s14055_s0 = smov [#allocation5]  }
  0x10   :  { %12998 = vmatprep.subr.mxu1 %v14053_v1  ;;  %12970 = vmatprep.mubr.msk.f32.mxu0 %vm14054_vm0, %v14053_v1  ;;  %v417_v6 = vld [vmem:[#allocation2 + $0x68] sm:$0xff]  ;;  %v35_v7 = vld [vmem:[#allocation2] sm:$0xff]  ;;  %v28_v9 = vand.u32 127, %v27_v8  ;;  %v419_v14 = vld [vmem:[#allocation2 + $0x78] sm:$0xff]  ;;  %s12288_s1 = sshll.u32 %s14055_s0, 4  ;;  %s12289_s1 = int_to_ptr.vmem [resolvable:$true] %s12288_s1 }
  0x11   :  { %13000 = vmatprep.mubr.msk.f32.mxu1 %vm14054_vm0, %v14053_v1  ;;  %30 = vperm.xlu0 %13884, %v26_v2   ;;  %v113_v11 = vld [vmem:[#allocation2 + $0x20] sm:$0xff]  ;;  %v114_v13 = vld [vmem:[#allocation2 + $0x28] sm:$0xff]  ;;  %v115_v17 = vld [vmem:[#allocation2 + $0x30] sm:$0xff]  ;;  %s14025_s18 = scalar_lea.vmem %s12289_s1, 128  ;;  %p14030_p6 = scmp.lt.s32.totalorder %s12289_s1, %s12289_s1 }
  0x12   :  { %12963 = vmatpush3.msra.mxu0 %v38_v3  ;;  %12999 = vmatpush3.xpose.msk.msra.mxu1 %vm39_vm1, %v417_v6  ;;  %v717_v18 = vld [vmem:[#allocation2 + $0xa8] sm:$0xff]  ;;  %v116_v19 = vld [vmem:[#allocation2 + $0x38] sm:$0xff]  ;;  %v416_v21 = vld [vmem:[#allocation2 + $0x60] sm:$0xff]  ;;  %p14026_p5 = scmp.ne.s32.totalorder %s12289_s1, %s14025_s18  ;;  %p14031_p7 = scmp.lt.s32.totalorder %s14025_s18, %s14025_s18 }
  0x13   :  { %12964 = vmatprep.subr.mxu0 %v14053_v1  ;;  %13008 = vmatprep.subr.mxu1 %v14053_v1  ;;  %v719_v20 = vld [vmem:[#allocation2 + $0xb8] sm:$0xff]  ;;  %v418_v22 = vld [vmem:[#allocation2 + $0x70] sm:$0xff]  ;;  %v716_v23 = vld [vmem:[#allocation2 + $0xa0] sm:$0xff] }
  0x14   :  { %12965 = vmatpush3.msra.mxu0 %v37_v4  ;;  %v718_v24 = vld [vmem:[#allocation2 + $0xb0] sm:$0xff]  ;;  %v421_v25 = vld [vmem:[#allocation2 + $0x88] sm:$0xff]  ;;  %v423_v32 = vld [vmem:[#allocation2 + $0x98] sm:$0xff]  ;;  %p14032_p8 = por %p14031_p7, %p14030_p6 }
  0x15   :  { %12966 = vmatprep.subr.mxu0 %v14053_v1  ;;  %v118_v31 = vld [vmem:[#allocation2 + $0x48] sm:$0xff]  ;;  %v120_v43 = vld [vmem:[#allocation2 + $0x58] sm:$0xff]  ;;  %v420_v51 = vld [vmem:[#allocation2 + $0x80] sm:$0xff] }
  0x16   :  { %12967 = vmatpush3.msra.mxu0 %v36_v5  ;;  %v721_v44 = vld [vmem:[#allocation2 + $0xc8] sm:$0xff]  ;;  %v117_v53 = vld [vmem:[#allocation2 + $0x40] sm:$0xff]  ;;  %v422_v56 = vld [vmem:[#allocation2 + $0x90] sm:$0xff]  ;;  %p14033_p9 = pnand %p14032_p8, %p14026_p5 }
  0x17   :  { %12968 = vmatprep.subr.mxu0 %v14053_v1  ;;  %v119_v59 = vld [vmem:[#allocation2 + $0x50] sm:$0xff]  ;;  %v720_v62 = vld [vmem:[#allocation2 + $0xc0] sm:$0xff] }
  0x18   :  { %12969 = vmatpush3.msra.mxu0 %v35_v7 }
  0x19   :  { %12973 = vmatprep.subr.mxu0 %v14053_v1 }
  0x8c   :  { %v31_v10 = vpop.permute.xlu0 %30 }
  0x8d   :  { %vm32_vm2 = vcmp.eq.s32.totalorder %v31_v10, %v28_v9 }
  0x8e   :  { %v12297_v12 = vsel %vm32_vm2, 1.0, %v14053_v1 }
  0x8f   :  { %12971 = vmatmul.mubr.msk.f32.vlgmr.msra.gmra.mxu0 %vm39_vm1, %v12297_v12 }
  0x90   :  { %12974 = vmatpush3.xpose.msk.msra.mxu0 %vm39_vm1, %v113_v11  ;;  %12975 = vmatprep.mubr.msk.f32.mxu0 %vm14054_vm0, %v14053_v1 }
  0x91   :  { %12978 = vmatprep.subr.mxu0 %v14053_v1 }
 0x14f   :  { %v14095_v15 = vpop.f32.mrf.mxu0 }
 0x150   :  { %12976 = vmatmul.mubr.msk.f32.vlgmr.msra.gmra.mxu0 %vm39_vm1, %v14095_v15  ;;  %13001 = vmatmul.mubr.msk.f32.vlgmr.msra.gmra.mxu1 %vm39_vm1, %v14095_v15 }
 0x151   :  { %v12972_v16 = vpop.f32.mrf.mxu0  ;;  %12979 = vmatpush3.xpose.msk.msra.mxu0 %vm39_vm1, %v114_v13  ;;  %13009 = vmatpush3.xpose.msk.msra.mxu1 %vm39_vm1, %v419_v14 }
 0x152   :  { %12980 = vmatprep.mubr.msk.f32.mxu0 %vm14054_vm0, %v14053_v1  ;;  %13010 = vmatprep.mubr.msk.f32.mxu1 %vm14054_vm0, %v14053_v1 }
 0x153   :  { %12983 = vmatprep.subr.mxu0 %v14053_v1  ;;  %13018 = vmatprep.subr.mxu1 %v14053_v1 }
 0x154   :  { %12981 = vmatmul.mubr.msk.f32.vlgmr.msra.gmra.mxu0 %vm39_vm1, %v14095_v15  ;;  %13011 = vmatmul.mubr.msk.f32.vlgmr.msra.gmra.mxu1 %vm39_vm1, %v14095_v15 }
 0x155   :  { %12984 = vmatpush3.xpose.msk.msra.mxu0 %vm39_vm1, %v115_v17  ;;  %13019 = vmatpush3.xpose.msk.msra.mxu1 %vm39_vm1, %v717_v18 }
 0x156   :  { %12985 = vmatprep.mubr.msk.f32.mxu0 %vm14054_vm0, %v14053_v1  ;;  %13020 = vmatprep.mubr.msk.f32.mxu1 %vm14054_vm0, %v14053_v1 }
 0x157   :  { %12988 = vmatprep.subr.mxu0 %v14053_v1  ;;  %13028 = vmatprep.subr.mxu1 %v14053_v1 }
 0x158   :  { %12986 = vmatmul.mubr.msk.f32.vlgmr.msra.gmra.mxu0 %vm39_vm1, %v14095_v15  ;;  %13021 = vmatmul.mubr.msk.f32.vlgmr.msra.gmra.mxu1 %vm39_vm1, %v14095_v15 }
 0x159   :  { %12989 = vmatpush3.xpose.msk.msra.mxu0 %vm39_vm1, %v116_v19  ;;  %13029 = vmatpush3.xpose.msk.msra.mxu1 %vm39_vm1, %v719_v20 }
 0x15a   :  { %12990 = vmatprep.mubr.msk.f32.mxu0 %vm14054_vm0, %v14053_v1  ;;  %13030 = vmatprep.mubr.msk.f32.mxu1 %vm14054_vm0, %v14053_v1 }
 0x15b   :  { %12993 = vmatprep.subr.mxu0 %v14053_v1  ;;  %13038 = vmatprep.subr.mxu1 %v14053_v1 }
 0x15c   :  { %12991 = vmatmul.mubr.msk.f32.vlgmr.msra.gmra.mxu0 %vm39_vm1, %v14095_v15  ;;  %13031 = vmatmul.mubr.msk.f32.vlgmr.msra.gmra.mxu1 %vm39_vm1, %v14095_v15 }
 0x15d   :  { %12994 = vmatpush3.xpose.msk.msra.mxu0 %vm39_vm1, %v416_v21  ;;  %12995 = vmatprep.mubr.msk.f32.mxu0 %vm14054_vm0, %v14053_v1 }
 0x15e   :  { %13003 = vmatprep.subr.mxu0 %v14053_v1  ;;  %13040 = vmatprep.mubr.msk.f32.mxu1 %vm14054_vm0, %v14053_v1 }
 0x160   :  { %12996 = vmatmul.mubr.msk.f32.vlgmr.msra.gmra.mxu0 %vm39_vm1, %v14095_v15 }
 0x161   :  { %13004 = vmatpush3.xpose.msk.msra.mxu0 %vm39_vm1, %v418_v22  ;;  %13005 = vmatprep.mubr.msk.f32.mxu0 %vm14054_vm0, %v14053_v1 }
 0x162   :  { %13013 = vmatprep.subr.mxu0 %v14053_v1 }
 0x164   :  { %13006 = vmatmul.mubr.msk.f32.vlgmr.msra.gmra.mxu0 %vm39_vm1, %v14095_v15 }
 0x165   :  { %13014 = vmatpush3.xpose.msk.msra.mxu0 %vm39_vm1, %v716_v23  ;;  %13015 = vmatprep.mubr.msk.f32.mxu0 %vm14054_vm0, %v14053_v1 }
 0x166   :  { %13023 = vmatprep.subr.mxu0 %v14053_v1 }
 0x168   :  { %13016 = vmatmul.mubr.msk.f32.vlgmr.msra.gmra.mxu0 %vm39_vm1, %v14095_v15 }
 0x169   :  { %13024 = vmatpush3.xpose.msk.msra.mxu0 %vm39_vm1, %v718_v24  ;;  %13025 = vmatprep.mubr.msk.f32.mxu0 %vm14054_vm0, %v14053_v1 }
 0x16a   :  { %13033 = vmatprep.subr.mxu0 %v14053_v1 }
 0x16c   :  { %13026 = vmatmul.mubr.msk.f32.vlgmr.msra.gmra.mxu0 %vm39_vm1, %v14095_v15 }
 0x16d   :  { %13035 = vmatprep.mubr.msk.f32.mxu0 %vm14054_vm0, %v14053_v1 }
 0x210   :  { %v193_v26 = vpop.f32.mrf.mxu0  ;;  %v566_v27 = vpop.f32.mrf.mxu1 }
 0x211   :  { %v567_v28 = vadd.f32 %v566_v27, %v421_v25  ;;  %v194_v57 = vadd.f32 %v193_v26, %v117_v53 }
 0x212   :  { %v12977_v29 = vpop.f32.mrf.mxu0  ;;  %v13002_v30 = vpop.f32.mrf.mxu1 }
 0x213   :  { %13039 = vmatpush3.xpose.msk.msra.mxu1 %vm1016_vm3, %v567_v28 }
 0x214   :  { %v266_v33 = vpop.f32.mrf.mxu0  ;;  %v712_v34 = vpop.f32.mrf.mxu1  ;;  %13048 = vmatprep.subr.mxu1 %v14053_v1 }
 0x215   :  { %v267_v35 = vadd.f32 %v266_v33, %v118_v31  ;;  %v713_v36 = vadd.f32 %v712_v34, %v423_v32 }
 0x216   :  { %v12982_v37 = vpop.f32.mrf.mxu0  ;;  %v13012_v38 = vpop.f32.mrf.mxu1 }
 0x217   :  { %13041 = vmatmul.mubr.msk.f32.vlgmr.msra.gmra.mxu1 %vm1016_vm3, %v267_v35 }
 0x218   :  { %13049 = vmatpush3.xpose.msk.msra.mxu1 %vm1016_vm3, %v713_v36  ;;  %v339_v39 = vpop.f32.mrf.mxu0  ;;  %v866_v40 = vpop.f32.mrf.mxu1  ;;  %13050 = vmatprep.mubr.msk.f32.mxu1 %vm14054_vm0, %v14053_v1 }
 0x219   :  { %13058 = vmatprep.subr.mxu1 %v14053_v1  ;;  %v867_v48 = vadd.f32 %v866_v40, %v721_v44  ;;  %v340_v63 = vadd.f32 %v339_v39, %v119_v59  ;;  %v723_v44 = vld [vmem:[#allocation2 + $0xd8] sm:$0xff]  ;;  %v1662_v59 = vld [vmem:[#allocation2 + $0xe8] sm:$0xff] }
 0x21a   :  { %v12987_v41 = vpop.f32.mrf.mxu0  ;;  %v13022_v42 = vpop.f32.mrf.mxu1 }
 0x21c   :  { %v412_v45 = vpop.f32.mrf.mxu0  ;;  %v14172_v46 = vpop.f32.mrf.mxu1 }
 0x21d   :  { %v413_v47 = vadd.f32 %v412_v45, %v120_v43 }
 0x21e   :  { %v12992_v49 = vpop.f32.mrf.mxu0  ;;  %v13032_v50 = vpop.f32.mrf.mxu1 }
 0x21f   :  { %13051 = vmatmul.mubr.msk.f32.vlgmr.msra.gmra.mxu1 %vm1016_vm3, %v413_v47  ;;  %v1013_v49 = vadd.f32 %v14172_v46, %v723_v44  ;;  %v2087_v44 = vld [vmem:[#allocation2 + $0x168] sm:$0xff] }
 0x220   :  { %13059 = vmatpush3.msra.mxu1 %v867_v48  ;;  %v493_v52 = vpop.f32.mrf.mxu0  ;;  %13060 = vmatprep.mubr.msk.f32.mxu1 %vm14054_vm0, %v14053_v1 }
 0x221   :  { %v494_v54 = vadd.f32 %v493_v52, %v420_v51  ;;  %13068 = vmatprep.subr.mxu1 %v14053_v1  ;;  %v722_v52 = vld [vmem:[#allocation2 + $0xd0] sm:$0xff] }
 0x222   :  { %v12997_v55 = vpop.f32.mrf.mxu0 }
 0x223   :  { %13034 = vmatpush3.xpose.msk.msra.mxu0 %vm1016_vm3, %v494_v54 }
 0x224   :  { %v639_v58 = vpop.f32.mrf.mxu0  ;;  %13043 = vmatprep.subr.mxu0 %v14053_v1 }
 0x225   :  { %v640_v60 = vadd.f32 %v639_v58, %v422_v56 }
 0x226   :  { %v13007_v61 = vpop.f32.mrf.mxu0  ;;  %13036 = vmatmul.mubr.msk.f32.vlgmr.msra.gmra.mxu0 %vm1016_vm3, %v194_v57 }
 0x227   :  { %13044 = vmatpush3.xpose.msk.msra.mxu0 %vm1016_vm3, %v640_v60  ;;  %13045 = vmatprep.mubr.msk.f32.mxu0 %vm14054_vm0, %v14053_v1  ;;  %v1661_v60 = vld [vmem:[#allocation2 + $0xe0] sm:$0xff]  ;;  %v1664_v61 = vld [vmem:[#allocation2 + $0xf8] sm:$0xff] }
 0x228   :  { %v793_v0 = vpop.f32.mrf.mxu0  ;;  %13053 = vmatprep.subr.mxu0 %v14053_v1 }
 0x229   :  { %v794_v2 = vadd.f32 %v793_v0, %v720_v62  ;;  %v1663_v0 = vld [vmem:[#allocation2 + $0xf0] sm:$0xff] }
 0x22a   :  { %v13017_v3 = vpop.f32.mrf.mxu0  ;;  %13046 = vmatmul.mubr.msk.f32.vlgmr.msra.gmra.mxu0 %vm1016_vm3, %v340_v63 }
 0x22b   :  { %13054 = vmatpush3.msra.mxu0 %v794_v2  ;;  %13055 = vmatprep.mubr.msk.f32.mxu0 %vm14054_vm0, %v14053_v1 }
 0x22c   :  { %v14188_v4 = vpop.f32.mrf.mxu0  ;;  %13063 = vmatprep.subr.mxu0 %v14053_v1 }
 0x22d   :  { %v940_v55 = vadd.f32 %v14188_v4, %v722_v52 }
 0x22e   :  { %v13027_v5 = vpop.f32.mrf.mxu0 }
 0x2d7   :  { %v1165_v6 = vpop.f32.mrf.mxu1 }
 0x2d8   :  { %v1322_v7 = vmul.f32 0.35355338, %v1165_v6 }
 0x2d9   :  { %v13042_v8 = vpop.f32.mrf.mxu1 }
 0x2da   :  { %v1328_v9 = vsel %vm1016_vm3, %v1322_v7, -inf }
 0x2db   :  { %1329 = vmax.xlane.f32.xlu1 %v1328_v9 }
 0x2df   :  { %v1317_v10 = vpop.f32.mrf.mxu1 }
 0x2e0   :  { %v1324_v20 = vmul.f32 0.35355338, %v1317_v10 }
 0x2e1   :  { %v13052_v11 = vpop.f32.mrf.mxu1 }
 0x2e2   :  { %v1334_v22 = vsel %vm1016_vm3, %v1324_v20, -inf }
 0x2e6   :  { %v1089_v12 = vpop.f32.mrf.mxu0 }
 0x2e7   :  { %v1321_v13 = vmul.f32 0.35355338, %v1089_v12 }
 0x2e8   :  { %v13037_v14 = vpop.f32.mrf.mxu0 }
 0x2e9   :  { %v1325_v16 = vsel %vm1016_vm3, %v1321_v13, -inf }
 0x2ea   :  { %1326 = vmax.xlane.f32.xlu0 %v1325_v16  ;;  %v1241_v17 = vpop.f32.mrf.mxu0 }
 0x2eb   :  { %v1323_v18 = vmul.f32 0.35355338, %v1241_v17 }
 0x2ec   :  { %v13047_v19 = vpop.f32.mrf.mxu0 }
 0x2ed   :  { %v1331_v21 = vsel %vm1016_vm3, %v1323_v18, -inf }
 0x2ee   :  { %1332 = vmax.xlane.f32.xlu1 %v1331_v21 }
 0x2f2   :  { %1335 = vmax.xlane.f32.xlu1 %v1334_v22  ;;  %v12339_v22 = vld [vmem:[#allocation2 + $0x100] ss:$0 sm:$0xff] }
 0x364   :  { %v1330_v23 = vpop.xlane.xlu1 %1329 }
 0x365   :  { %v1338_v24 = vsub.f32 %v1322_v7, %v1330_v23 }
 0x367   :  { %v1343_v25 = vmul.f32 1.442695, %v1338_v24 }
 0x369   :  { %13885 = vpow2.f32 %v1343_v25 }
 0x373   :  { %v1327_v26 = vpop.xlane.xlu0 %1326 }
 0x374   :  { %v1337_v27 = vsub.f32 %v1321_v13, %v1327_v26 }
 0x376   :  { %v13886_v28 = vpop.eup %13885  ;;  %v1341_v29 = vmul.f32 1.442695, %v1337_v27 }
 0x377   :  { %v1333_v30 = vpop.xlane.xlu1 %1332  ;;  %v1352_v31 = vsel %vm1016_vm3, %v13886_v28, 0.0 }
 0x378   :  { %13887 = vpow2.f32 %v1341_v29  ;;  %v1339_v32 = vsub.f32 %v1323_v18, %v1333_v30  ;;  %1353 = vadd.xlane.f32.xlu1 %v1352_v31  ;;  %v2002_v30 = vld [vmem:[#allocation2 + $0x130] sm:$0xff]  ;;  %v2001_v31 = vld [vmem:[#allocation2 + $0x128] sm:$0xff] }
 0x37a   :  { %v1345_v33 = vmul.f32 1.442695, %v1339_v32  ;;  %v2000_v32 = vld [vmem:[#allocation2 + $0x120] sm:$0xff] }
 0x37b   :  { %v1336_v34 = vpop.xlane.xlu1 %1335 }
 0x37c   :  { %13889 = vpow2.f32 %v1345_v33  ;;  %v1340_v35 = vsub.f32 %v1324_v20, %v1336_v34  ;;  %v1999_v33 = vld [vmem:[#allocation2 + $0x118] sm:$0xff] }
 0x37d   :  { %v2097_v34 = vld [vmem:[#allocation2 + $0x1b8] sm:$0xff] }
 0x37e   :  { %v1347_v36 = vmul.f32 1.442695, %v1340_v35  ;;  %v2096_v35 = vld [vmem:[#allocation2 + $0x1b0] sm:$0xff] }
 0x380   :  { %13891 = vpow2.f32 %v1347_v36  ;;  %v2095_v36 = vld [vmem:[#allocation2 + $0x1a8] sm:$0xff] }
 0x385   :  { %v13888_v37 = vpop.eup %13887 }
 0x386   :  { %v1349_v38 = vsel %vm1016_vm3, %v13888_v37, 0.0 }
 0x387   :  { %1350 = vadd.xlane.f32.xlu1 %v1349_v38  ;;  %v2093_v38 = vld [vmem:[#allocation2 + $0x198] sm:$0xff] }
 0x389   :  { %v13890_v39 = vpop.eup %13889 }
 0x38a   :  { %v1355_v40 = vsel %vm1016_vm3, %v13890_v39, 0.0 }
 0x38b   :  { %1356 = vadd.xlane.f32.xlu1 %v1355_v40  ;;  %v2091_v40 = vld [vmem:[#allocation2 + $0x188] sm:$0xff] }
 0x38d   :  { %v13892_v41 = vpop.eup %13891 }
 0x38e   :  { %v1358_v42 = vsel %vm1016_vm3, %v13892_v41, 0.0 }
 0x38f   :  { %1359 = vadd.xlane.f32.xlu1 %v1358_v42  ;;  %v2089_v42 = vld [vmem:[#allocation2 + $0x178] sm:$0xff] }
 0x401   :  { %v1354_v43 = vpop.xlane.xlu1 %1353 }
 0x402   :  { %13893 = vrcp.f32 %v1354_v43  ;;  %v2088_v43 = vld [vmem:[#allocation2 + $0x170] sm:$0xff] }
 0x40f   :  { %v13894_v45 = vpop.eup %13893 }
 0x410   :  { %v1351_v47 = vpop.xlane.xlu1 %1350  ;;  %v1366_v48 = vmul.f32 %v13894_v45, %v13886_v28  ;;  %v2086_v45 = vld [vmem:[#allocation2 + $0x160] sm:$0xff] }
 0x411   :  { %13895 = vrcp.f32 %v1351_v47  ;;  %v2085_v47 = vld [vmem:[#allocation2 + $0x158] sm:$0xff] }
 0x412   :  { %13061 = vmatmul.mubr.msk.f32.vlgmr.msra.gmra.mxu1 %vm1016_vm3, %v1366_v48 }
 0x413   :  { %13069 = vmatpush3.msra.mxu1 %v1013_v49  ;;  %13070 = vmatprep.mubr.msk.f32.mxu1 %vm14054_vm0, %v14053_v1 }
 0x414   :  { %v1357_v50 = vpop.xlane.xlu1 %1356  ;;  %13078 = vmatprep.subr.mxu1 %v14053_v1 }
 0x415   :  { %13897 = vrcp.f32 %v1357_v50 }
 0x418   :  { %v1360_v51 = vpop.xlane.xlu1 %1359 }
 0x419   :  { %13899 = vrcp.f32 %v1360_v51 }
 0x41e   :  { %v13896_v53 = vpop.eup %13895 }
 0x41f   :  { %v1365_v54 = vmul.f32 %v13896_v53, %v13888_v37  ;;  %v2094_v37 = vld [vmem:[#allocation2 + $0x1a0] sm:$0xff] }
 0x421   :  { %13056 = vmatmul.mubr.msk.f32.vlgmr.msra.gmra.mxu0 %vm1016_vm3, %v1365_v54 }
 0x422   :  { %v13898_v46 = vpop.eup %13897  ;;  %13064 = vmatpush3.msra.mxu0 %v940_v55  ;;  %13065 = vmatprep.mubr.msk.f32.mxu0 %vm14054_vm0, %v14053_v1 }
 0x423   :  { %v1367_v56 = vmul.f32 %v13898_v46, %v13890_v39  ;;  %13073 = vmatprep.subr.mxu0 %v14053_v1  ;;  %v2092_v39 = vld [vmem:[#allocation2 + $0x190] sm:$0xff] }
 0x425   :  { %13066 = vmatmul.mubr.msk.f32.vlgmr.msra.gmra.mxu0 %vm1016_vm3, %v1367_v56  ;;  %v12340_v56 = vld [vmem:[#allocation2 + $0x108] ss:$0 sm:$0xff] }
 0x426   :  { %v13900_v57 = vpop.eup %13899  ;;  %13075 = vmatprep.mubr.msk.f32.mxu0 %vm14054_vm0, %v14053_v1  ;;  %13074 = vmatpush3.msra.mxu0 %v1661_v60 }
 0x427   :  { %v1368_v58 = vmul.f32 %v13900_v57, %v13892_v41  ;;  %13083 = vmatprep.subr.mxu0 %v14053_v1  ;;  %v2090_v41 = vld [vmem:[#allocation2 + $0x180] sm:$0xff] }
 0x429   :  { %13071 = vmatmul.mubr.msk.f32.vlgmr.msra.gmra.mxu1 %vm1016_vm3, %v1368_v58  ;;  %v12341_v58 = vld [vmem:[#allocation2 + $0x110] ss:$0 sm:$0xff] }
 0x42a   :  { %13080 = vmatprep.mubr.msk.f32.mxu1 %vm14054_vm0, %v14053_v1  ;;  %13079 = vmatpush3.msra.mxu1 %v1662_v59 }
 0x42b   :  { %13088 = vmatprep.subr.mxu1 %v14053_v1 }
 0x4d2   :  { %v1511_v62 = vpop.f32.mrf.mxu1 }
 0x4d3   :  { %13081 = vmatmul.mubr.msk.f32.vlgmr.msra.gmra.mxu1 %vm1016_vm3, %v1511_v62  ;;  %v2083_v62 = vld [vmem:[#allocation2 + $0x148] sm:$0xff] }
 0x4d4   :  { %v13062_v63 = vpop.f32.mrf.mxu1  ;;  %13089 = vmatpush3.msra.mxu1 %v1664_v61  ;;  %13090 = vmatprep.mubr.msk.f32.mxu1 %vm14054_vm0, %v14053_v1  ;;  %v2084_v61 = vld [vmem:[#allocation2 + $0x150] sm:$0xff] }
 0x4d5   :  { %13104 = vmatprep.subr.mxu1 %v14053_v1  ;;  %v2082_v63 = vld [vmem:[#allocation2 + $0x140] sm:$0xff] }
 0x4e1   :  { %v1438_v2 = vpop.f32.mrf.mxu0 }
 0x4e2   :  { %13076 = vmatmul.mubr.msk.f32.vlgmr.msra.gmra.mxu0 %vm1016_vm3, %v1438_v2 }
 0x4e3   :  { %v13057_v3 = vpop.f32.mrf.mxu0  ;;  %13084 = vmatpush3.msra.mxu0 %v1663_v0  ;;  %13085 = vmatprep.mubr.msk.f32.mxu0 %vm14054_vm0, %v14053_v1  ;;  %v12342_v0 = vld [vmem:[#allocation2 + $0x138] ss:$0 sm:$0xff] }
 0x4e4   :  { %13093 = vmatprep.subr.mxu0 %v14053_v1 }
 0x4e5   :  { %v1584_v4 = vpop.f32.mrf.mxu0 }
 0x4e6   :  { %13086 = vmatmul.mubr.msk.f32.vlgmr.msra.gmra.mxu0 %vm1016_vm3, %v1584_v4 }
 0x4e7   :  { %v13067_v5 = vpop.f32.mrf.mxu0  ;;  %13101 = vmatprep.mubr.msk.f32.mxu0 %vm14054_vm0, %v14053_v1  ;;  %13094 = vmatpush3.msra.mxu0 %v2002_v30 }
 0x4e8   :  { %13095 = vmatprep.subr.mxu0 %v14053_v1 }
 0x4e9   :  { %v1657_v6 = vpop.f32.mrf.mxu1  ;;  %13096 = vmatpush3.msra.mxu0 %v2001_v31  ;;  %v2202_v31 = vld [vmem:[#allocation2 + $0x1e0] sm:$0xff] }
 0x4ea   :  { %13091 = vmatmul.mubr.msk.f32.vlgmr.msra.gmra.mxu1 %vm1016_vm3, %v1657_v6  ;;  %13097 = vmatprep.subr.mxu0 %v14053_v1  ;;  %v12344_v6 = vld [vmem:[#allocation2 + $0x1c0] ss:$0 sm:$0xff] }
 0x4eb   :  { %v13072_v7 = vpop.f32.mrf.mxu1  ;;  %13136 = vmatprep.mubr.msk.f32.mxu1 %vm14054_vm0, %v14053_v1  ;;  %13098 = vmatpush3.msra.mxu0 %v2000_v32  ;;  %v2805_v32 = vld [vmem:[#allocation2 + $0x260] sm:$0xff] }
 0x4ec   :  { %13099 = vmatprep.subr.mxu0 %v14053_v1  ;;  %13105 = vmatpush3.msra.mxu1 %v2097_v34  ;;  %v2807_v34 = vld [vmem:[#allocation2 + $0x270] sm:$0xff] }
 0x4ed   :  { %13100 = vmatpush3.msra.mxu0 %v1999_v33  ;;  %13106 = vmatprep.subr.mxu1 %v14053_v1  ;;  %v2203_v33 = vld [vmem:[#allocation2 + $0x1e8] sm:$0xff] }
 0x4ee   :  { %13139 = vmatprep.subr.mxu0 %v14053_v1  ;;  %13107 = vmatpush3.msra.mxu1 %v2096_v35  ;;  %v2204_v35 = vld [vmem:[#allocation2 + $0x1f0] sm:$0xff] }
 0x4ef   :  { %13108 = vmatprep.subr.mxu1 %v14053_v1 }
 0x4f0   :  { %13109 = vmatpush3.msra.mxu1 %v2095_v36  ;;  %v2504_v36 = vld [vmem:[#allocation2 + $0x218] sm:$0xff] }
 0x4f1   :  { %13110 = vmatprep.subr.mxu1 %v14053_v1 }
 0x4f2   :  { %13111 = vmatpush3.msra.mxu1 %v2094_v37  ;;  %v2505_v37 = vld [vmem:[#allocation2 + $0x220] sm:$0xff] }
 0x4f3   :  { %13112 = vmatprep.subr.mxu1 %v14053_v1 }
 0x4f4   :  { %13113 = vmatpush3.msra.mxu1 %v2093_v38  ;;  %v2506_v38 = vld [vmem:[#allocation2 + $0x228] sm:$0xff] }
 0x4f5   :  { %13114 = vmatprep.subr.mxu1 %v14053_v1 }
 0x4f6   :  { %13115 = vmatpush3.msra.mxu1 %v2092_v39  ;;  %v2804_v39 = vld [vmem:[#allocation2 + $0x258] sm:$0xff] }
 0x4f7   :  { %13116 = vmatprep.subr.mxu1 %v14053_v1 }
 0x4f8   :  { %13117 = vmatpush3.msra.mxu1 %v2091_v40  ;;  %v2806_v40 = vld [vmem:[#allocation2 + $0x268] sm:$0xff] }
 0x4f9   :  { %13118 = vmatprep.subr.mxu1 %v14053_v1 }
 0x4fa   :  { %13119 = vmatpush3.msra.mxu1 %v2090_v41 }
 0x4fb   :  { %13120 = vmatprep.subr.mxu1 %v14053_v1 }
 0x4fc   :  { %13121 = vmatpush3.msra.mxu1 %v2089_v42 }
 0x4fd   :  { %13122 = vmatprep.subr.mxu1 %v14053_v1 }
 0x4fe   :  { %13123 = vmatpush3.msra.mxu1 %v2088_v43 }
 0x4ff   :  { %13124 = vmatprep.subr.mxu1 %v14053_v1 }
 0x500   :  { %13125 = vmatpush3.msra.mxu1 %v2087_v44 }
 0x501   :  { %13126 = vmatprep.subr.mxu1 %v14053_v1 }
 0x502   :  { %13127 = vmatpush3.msra.mxu1 %v2086_v45 }
 0x503   :  { %13128 = vmatprep.subr.mxu1 %v14053_v1 }
 0x504   :  { %13129 = vmatpush3.msra.mxu1 %v2085_v47 }
 0x505   :  { %13130 = vmatprep.subr.mxu1 %v14053_v1 }
 0x506   :  { %13131 = vmatpush3.msra.mxu1 %v2084_v61 }
 0x507   :  { %13132 = vmatprep.subr.mxu1 %v14053_v1 }
 0x508   :  { %13133 = vmatpush3.msra.mxu1 %v2083_v62 }
 0x509   :  { %13134 = vmatprep.subr.mxu1 %v14053_v1 }
 0x50a   :  { %13135 = vmatpush3.msra.mxu1 %v2082_v63  ;;  %v2206_v63 = vld [vmem:[#allocation2 + $0x200] sm:$0xff] }
 0x50b   :  { %13174 = vmatprep.subr.mxu1 %v14053_v1 }
 0x593   :  { %v1807_v8 = vpop.f32.mrf.mxu1 }
 0x594   :  { %v1958_v14 = vsel %vm39_vm1, %v1807_v8, 0.0 }
 0x595   :  { %v13082_v9 = vpop.f32.mrf.mxu1 }
 0x5a2   :  { %v1734_v10 = vpop.f32.mrf.mxu0 }
 0x5a3   :  { %v1957_v12 = vsel %vm39_vm1, %v1734_v10, 0.0 }
 0x5a4   :  { %v13077_v11 = vpop.f32.mrf.mxu0  ;;  %v1959_v17 = vadd.f32 %v1958_v14, %v1957_v12  ;;  %v2201_v14 = vld [vmem:[#allocation2 + $0x1d8] sm:$0xff] }
 0x5a6   :  { %v1880_v13 = vpop.f32.mrf.mxu0 }
 0x5a7   :  { %v1960_v16 = vsel %vm39_vm1, %v1880_v13, 0.0 }
 0x5a8   :  { %v13087_v18 = vpop.f32.mrf.mxu0  ;;  %v1961_v19 = vadd.f32 %v1960_v16, %v1959_v17  ;;  %v2507_v16 = vld [vmem:[#allocation2 + $0x230] sm:$0xff] }
 0x5aa   :  { %v1953_v20 = vpop.f32.mrf.mxu1 }
 0x5ab   :  { %v1962_v21 = vsel %vm39_vm1, %v1953_v20, 0.0 }
 0x5ac   :  { %v1963_v23 = vadd.f32 %v1962_v21, %v1961_v19  ;;  %v13092_v24 = vpop.f32.mrf.mxu1 }
 0x5ae   :  { %v1969_v25 = vadd.f32 %v12339_v22, %v1963_v23 }
 0x5b0   :  { %v14236_v26 = vadd.f32 %v1969_v25, %v14095_v15 }
 0x5b2   :  { %v1971_v27 = vsel %vm39_vm1, %v14236_v26, 0.0  ;;  %v1976_v28 = vmul.f32 %v14236_v26, %v14236_v26 }
 0x5b3   :  { %1972 = vadd.xlane.f32.xlu1 %v1971_v27 }
 0x5b4   :  { %v1977_v29 = vsel %vm39_vm1, %v1976_v28, 0.0  ;;  %v12346_v28 = vld [vmem:[#allocation2 + $0x1d0] ss:$0 sm:$0xff] }
 0x5b7   :  { %1978 = vadd.xlane.f32.xlu1 %v1977_v29 }
 0x63c   :  { %v1973_v48 = vpop.xlane.xlu1 %1972 }
 0x63d   :  { %v1975_v49 = vmul.f32 0.03125, %v1973_v48 }
 0x63f   :  { %v1981_v51 = vmul.f32 %v1975_v49, %v1975_v49  ;;  %v1983_v55 = vsub.f32 %v14236_v26, %v1975_v49  ;;  %v12345_v26 = vld [vmem:[#allocation2 + $0x1c8] ss:$0 sm:$0xff] }
 0x640   :  { %v1979_v50 = vpop.xlane.xlu1 %1978 }
 0x641   :  { %v1980_v52 = vmul.f32 0.03125, %v1979_v50 }
 0x643   :  { %v1982_v53 = vsub.f32 %v1980_v52, %v1981_v51 }
 0x645   :  { %v1984_v54 = vadd.f32 1e-05, %v1982_v53 }
 0x647   :  { %13901 = vrsqrt.f32 %v1984_v54 }
 0x654   :  { %v13902_v46 = vpop.eup %13901 }
 0x655   :  { %v1986_v57 = vmul.f32 %v13902_v46, %v1983_v55  ;;  %v2508_v46 = vld [vmem:[#allocation2 + $0x238] sm:$0xff] }
 0x657   :  { %v1992_v59 = vmul.f32 %v12340_v56, %v1986_v57  ;;  %v2205_v57 = vld [vmem:[#allocation2 + $0x1f8] sm:$0xff] }
 0x659   :  { %v1998_v60 = vadd.f32 %v12341_v58, %v1992_v59 }
 0x65b   :  { %13102 = vmatmul.mubr.msk.f32.vlgmr.msra.gmra.mxu0 %vm39_vm1, %v1998_v60 }
 0x65c   :  { %13141 = vmatprep.mubr.msk.f32.mxu0 %vm14054_vm0, %v14053_v1  ;;  %13140 = vmatpush3.xpose.msk.msra.mxu0 %vm39_vm1, %v2201_v14 }
 0x65d   :  { %13144 = vmatprep.subr.mxu0 %v14053_v1 }
 0x71b   :  { %v2077_v2 = vpop.f32.mrf.mxu0 }
 0x71c   :  { %v2078_v3 = vadd.f32 %v12342_v0, %v2077_v2  ;;  %v2511_v2 = vld [vmem:[#allocation2 + $0x250] sm:$0xff] }
 0x71d   :  { %v13103_v4 = vpop.f32.mrf.mxu0 }
 0x71e   :  { %v2081_v5 = vmax.f32 %v2078_v3, 0.0  ;;  %v2510_v4 = vld [vmem:[#allocation2 + $0x248] sm:$0xff] }
 0x720   :  { %13137 = vmatmul.mubr.f32.vlgmr.msra.gmra.mxu1 %v2081_v5 }
 0x721   :  { %13176 = vmatprep.mubr.msk.f32.mxu1 %vm14054_vm0, %v14053_v1  ;;  %13175 = vmatpush3.xpose.msk.msra.mxu1 %vm39_vm1, %v2507_v16 }
 0x722   :  { %13184 = vmatprep.subr.mxu1 %v14053_v1 }
 0x7e0   :  { %v2169_v7 = vpop.f32.mrf.mxu1 }
 0x7e1   :  { %v2170_v8 = vadd.f32 %v12344_v6, %v2169_v7 }
 0x7e2   :  { %v13138_v9 = vpop.f32.mrf.mxu1 }
 0x7e3   :  { %v2173_v10 = vadd.f32 %v2170_v8, %v1998_v60  ;;  %v2509_v60 = vld [vmem:[#allocation2 + $0x240] sm:$0xff]  ;;  %v2207_v8 = vld [vmem:[#allocation2 + $0x208] sm:$0xff]  ;;  %v2208_v9 = vld [vmem:[#allocation2 + $0x210] sm:$0xff] }
 0x7e5   :  { %v2174_v11 = vsel %vm39_vm1, %v2173_v10, 0.0  ;;  %v2178_v12 = vmul.f32 %v2173_v10, %v2173_v10 }
 0x7e6   :  { %2175 = vadd.xlane.f32.xlu0 %v2174_v11  ;;  %v2809_v11 = vld [vmem:[#allocation2 + $0x280] sm:$0xff] }
 0x7e7   :  { %v2179_v13 = vsel %vm39_vm1, %v2178_v12, 0.0 }
 0x7e8   :  { %2180 = vadd.xlane.f32.xlu1 %v2179_v13  ;;  %v2808_v13 = vld [vmem:[#allocation2 + $0x278] sm:$0xff] }
 0x86f   :  { %v2176_v17 = vpop.xlane.xlu0 %2175 }
 0x870   :  { %v2177_v18 = vmul.f32 0.03125, %v2176_v17 }
 0x871   :  { %v2181_v19 = vpop.xlane.xlu1 %2180 }
 0x872   :  { %v2183_v20 = vmul.f32 %v2177_v18, %v2177_v18  ;;  %v2182_v21 = vmul.f32 0.03125, %v2181_v19  ;;  %v2185_v24 = vsub.f32 %v2173_v10, %v2177_v18 }
 0x874   :  { %v2184_v22 = vsub.f32 %v2182_v21, %v2183_v20 }
 0x876   :  { %v2186_v23 = vadd.f32 1e-05, %v2184_v22 }
 0x878   :  { %13903 = vrsqrt.f32 %v2186_v23 }
 0x885   :  { %v13904_v25 = vpop.eup %13903 }
 0x886   :  { %v2188_v27 = vmul.f32 %v13904_v25, %v2185_v24 }
 0x888   :  { %v2194_v29 = vmul.f32 %v12345_v26, %v2188_v27 }
 0x88a   :  { %v14275_v30 = vadd.f32 %v12346_v28, %v2194_v29 }
 0x88c   :  { %13142 = vmatmul.mubr.msk.f32.vlgmr.msra.gmra.mxu0 %vm39_vm1, %v14275_v30  ;;  %13177 = vmatmul.mubr.msk.f32.vlgmr.msra.gmra.mxu1 %vm39_vm1, %v14275_v30 }
 0x88d   :  { %13145 = vmatpush3.xpose.msk.msra.mxu0 %vm39_vm1, %v2202_v31  ;;  %13185 = vmatpush3.xpose.msk.msra.mxu1 %vm39_vm1, %v2805_v32 }
 0x88e   :  { %13146 = vmatprep.mubr.msk.f32.mxu0 %vm14054_vm0, %v14053_v1  ;;  %13186 = vmatprep.mubr.msk.f32.mxu1 %vm14054_vm0, %v14053_v1 }
 0x88f   :  { %13149 = vmatprep.subr.mxu0 %v14053_v1  ;;  %13194 = vmatprep.subr.mxu1 %v14053_v1 }
 0x890   :  { %13147 = vmatmul.mubr.msk.f32.vlgmr.msra.gmra.mxu0 %vm39_vm1, %v14275_v30  ;;  %13187 = vmatmul.mubr.msk.f32.vlgmr.msra.gmra.mxu1 %vm39_vm1, %v14275_v30 }
 0x891   :  { %13150 = vmatpush3.xpose.msk.msra.mxu0 %vm39_vm1, %v2203_v33  ;;  %13195 = vmatpush3.xpose.msk.msra.mxu1 %vm39_vm1, %v2807_v34 }
 0x892   :  { %13151 = vmatprep.mubr.msk.f32.mxu0 %vm14054_vm0, %v14053_v1  ;;  %13196 = vmatprep.mubr.msk.f32.mxu1 %vm14054_vm0, %v14053_v1 }
 0x893   :  { %13154 = vmatprep.subr.mxu0 %v14053_v1  ;;  %13204 = vmatprep.subr.mxu1 %v14053_v1 }
 0x894   :  { %13152 = vmatmul.mubr.msk.f32.vlgmr.msra.gmra.mxu0 %vm39_vm1, %v14275_v30  ;;  %13197 = vmatmul.mubr.msk.f32.vlgmr.msra.gmra.mxu1 %vm39_vm1, %v14275_v30 }
 0x895   :  { %13155 = vmatpush3.xpose.msk.msra.mxu0 %vm39_vm1, %v2204_v35  ;;  %13156 = vmatprep.mubr.msk.f32.mxu0 %vm14054_vm0, %v14053_v1 }
 0x896   :  { %13159 = vmatprep.subr.mxu0 %v14053_v1  ;;  %13206 = vmatprep.mubr.msk.f32.mxu1 %vm14054_vm0, %v14053_v1 }
 0x898   :  { %13157 = vmatmul.mubr.msk.f32.vlgmr.msra.gmra.mxu0 %vm39_vm1, %v14275_v30 }
 0x899   :  { %13160 = vmatpush3.xpose.msk.msra.mxu0 %vm39_vm1, %v2504_v36  ;;  %13161 = vmatprep.mubr.msk.f32.mxu0 %vm14054_vm0, %v14053_v1 }
 0x89a   :  { %13164 = vmatprep.subr.mxu0 %v14053_v1 }
 0x89c   :  { %13162 = vmatmul.mubr.msk.f32.vlgmr.msra.gmra.mxu0 %vm39_vm1, %v14275_v30 }
 0x89d   :  { %13165 = vmatpush3.xpose.msk.msra.mxu0 %vm39_vm1, %v2505_v37  ;;  %13166 = vmatprep.mubr.msk.f32.mxu0 %vm14054_vm0, %v14053_v1 }
 0x89e   :  { %13169 = vmatprep.subr.mxu0 %v14053_v1 }
 0x8a0   :  { %13167 = vmatmul.mubr.msk.f32.vlgmr.msra.gmra.mxu0 %vm39_vm1, %v14275_v30 }
 0x8a1   :  { %13170 = vmatpush3.xpose.msk.msra.mxu0 %vm39_vm1, %v2506_v38  ;;  %13171 = vmatprep.mubr.msk.f32.mxu0 %vm14054_vm0, %v14053_v1 }
 0x8a2   :  { %13179 = vmatprep.subr.mxu0 %v14053_v1 }
 0x8a4   :  { %13172 = vmatmul.mubr.msk.f32.vlgmr.msra.gmra.mxu0 %vm39_vm1, %v14275_v30 }
 0x8a5   :  { %13180 = vmatpush3.xpose.msk.msra.mxu0 %vm39_vm1, %v2804_v39  ;;  %13181 = vmatprep.mubr.msk.f32.mxu0 %vm14054_vm0, %v14053_v1 }
 0x8a6   :  { %13189 = vmatprep.subr.mxu0 %v14053_v1 }
 0x8a8   :  { %13182 = vmatmul.mubr.msk.f32.vlgmr.msra.gmra.mxu0 %vm39_vm1, %v14275_v30 }
 0x8a9   :  { %13190 = vmatpush3.xpose.msk.msra.mxu0 %vm39_vm1, %v2806_v40  ;;  %13191 = vmatprep.mubr.msk.f32.mxu0 %vm14054_vm0, %v14053_v1 }
 0x8aa   :  { %13199 = vmatprep.subr.mxu0 %v14053_v1 }
 0x8ac   :  { %13192 = vmatmul.mubr.msk.f32.vlgmr.msra.gmra.mxu0 %vm39_vm1, %v14275_v30 }
 0x8ad   :  { %13201 = vmatprep.mubr.msk.f32.mxu0 %vm14054_vm0, %v14053_v1 }
 0x94c   :  { %v2281_v41 = vpop.f32.mrf.mxu0  ;;  %v2800_v42 = vpop.f32.mrf.mxu1 }
 0x94d   :  { %v2282_v61 = vadd.f32 %v2281_v41, %v2205_v57  ;;  %v2801_v7 = vadd.f32 %v2800_v42, %v2511_v2  ;;  %v2810_v2 = vld [vmem:[#allocation2 + $0x288] sm:$0xff] }
 0x94e   :  { %v13143_v43 = vpop.f32.mrf.mxu0  ;;  %v13178_v44 = vpop.f32.mrf.mxu1 }
 0x950   :  { %v2354_v45 = vpop.f32.mrf.mxu0  ;;  %v2954_v47 = vpop.f32.mrf.mxu1 }
 0x951   :  { %v2355_v5 = vadd.f32 %v2354_v45, %v2206_v63  ;;  %v2955_v18 = vadd.f32 %v2954_v47, %v2809_v11 }
 0x952   :  { %v13148_v48 = vpop.f32.mrf.mxu0  ;;  %v13188_v49 = vpop.f32.mrf.mxu1 }
 0x954   :  { %v2427_v50 = vpop.f32.mrf.mxu0  ;;  %v14345_v51 = vpop.f32.mrf.mxu1 }
 0x955   :  { %v2428_v14 = vadd.f32 %v2427_v50, %v2207_v8 }
 0x956   :  { %v13153_v52 = vpop.f32.mrf.mxu0  ;;  %v13198_v53 = vpop.f32.mrf.mxu1 }
 0x958   :  { %v2500_v54 = vpop.f32.mrf.mxu0 }
 0x959   :  { %v2501_v16 = vadd.f32 %v2500_v54, %v2208_v9 }
 0x95a   :  { %v13158_v55 = vpop.f32.mrf.mxu0 }
 0x95c   :  { %v2581_v56 = vpop.f32.mrf.mxu0 }
 0x95d   :  { %v2582_v58 = vadd.f32 %v2581_v56, %v2508_v46 }
 0x95e   :  { %v13163_v59 = vpop.f32.mrf.mxu0 }
 0x95f   :  { %13200 = vmatpush3.xpose.msk.msra.mxu0 %vm1016_vm3, %v2582_v58 }
 0x960   :  { %v2654_v62 = vpop.f32.mrf.mxu0  ;;  %13209 = vmatprep.subr.mxu0 %v14053_v1 }
 0x961   :  { %v2655_v0 = vadd.f32 %v2654_v62, %v2509_v60 }
 0x962   :  { %v13168_v3 = vpop.f32.mrf.mxu0  ;;  %13202 = vmatmul.mubr.msk.f32.vlgmr.msra.gmra.mxu0 %vm1016_vm3, %v2282_v61 }
 0x963   :  { %13205 = vmatpush3.xpose.msk.msra.mxu1 %vm1016_vm3, %v2655_v0  ;;  %13211 = vmatprep.mubr.msk.f32.mxu0 %vm14054_vm0, %v14053_v1 }
 0x964   :  { %v2727_v6 = vpop.f32.mrf.mxu0  ;;  %13214 = vmatprep.subr.mxu1 %v14053_v1 }
 0x965   :  { %v2728_v10 = vadd.f32 %v2727_v6, %v2510_v4  ;;  %v2811_v6 = vld [vmem:[#allocation2 + $0x290] sm:$0xff] }
 0x966   :  { %v13173_v12 = vpop.f32.mrf.mxu0  ;;  %13207 = vmatmul.mubr.msk.f32.vlgmr.msra.gmra.mxu1 %vm1016_vm3, %v2355_v5  ;;  %v3101_v9 = vadd.f32 %v14345_v51, %v2811_v6  ;;  %v3748_v51 = vld [vmem:[#allocation2 + $0x298] sm:$0xff] }
 0x967   :  { %13210 = vmatpush3.xpose.msk.msra.mxu0 %vm1016_vm3, %v2728_v10  ;;  %13215 = vmatpush3.xpose.msk.msra.mxu1 %vm1016_vm3, %v2801_v7 }
 0x968   :  { %v2881_v17 = vpop.f32.mrf.mxu0  ;;  %13216 = vmatprep.mubr.msk.f32.mxu1 %vm14054_vm0, %v14053_v1  ;;  %13219 = vmatprep.subr.mxu0 %v14053_v1 }
 0x969   :  { %v2882_v19 = vadd.f32 %v2881_v17, %v2808_v13  ;;  %13224 = vmatprep.subr.mxu1 %v14053_v1 }
 0x96a   :  { %v13183_v20 = vpop.f32.mrf.mxu0  ;;  %13212 = vmatmul.mubr.msk.f32.vlgmr.msra.gmra.mxu0 %vm1016_vm3, %v2428_v14  ;;  %13217 = vmatmul.mubr.msk.f32.vlgmr.msra.gmra.mxu1 %vm1016_vm3, %v2501_v16  ;;  %v3749_v14 = vld [vmem:[#allocation2 + $0x2a0] sm:$0xff]  ;;  %v3750_v16 = vld [vmem:[#allocation2 + $0x2a8] sm:$0xff] }
 0x96b   :  { %13220 = vmatpush3.msra.mxu0 %v2882_v19  ;;  %13225 = vmatpush3.msra.mxu1 %v2955_v18  ;;  %v3751_v19 = vld [vmem:[#allocation2 + $0x2b0] sm:$0xff] }
 0x96c   :  { %v14363_v21 = vpop.f32.mrf.mxu0  ;;  %13221 = vmatprep.mubr.msk.f32.mxu0 %vm14054_vm0, %v14053_v1  ;;  %13229 = vmatprep.subr.mxu0 %v14053_v1 }
 0x96d   :  { %13226 = vmatprep.mubr.msk.f32.mxu1 %vm14054_vm0, %v14053_v1  ;;  %13234 = vmatprep.subr.mxu1 %v14053_v1  ;;  %v3028_v5 = vadd.f32 %v14363_v21, %v2810_v2 }
 0x96e   :  { %v13193_v22 = vpop.f32.mrf.mxu0 }
 0xa22   :  { %v3176_v23 = vpop.f32.mrf.mxu0 }
 0xa23   :  { %v3408_v24 = vmul.f32 0.35355338, %v3176_v23 }
 0xa24   :  { %v13203_v25 = vpop.f32.mrf.mxu0 }
 0xa25   :  { %v3412_v26 = vsel %vm1016_vm3, %v3408_v24, -inf }
 0xa26   :  { %v3252_v27 = vpop.f32.mrf.mxu1  ;;  %3413 = vmax.xlane.f32.xlu0 %v3412_v26 }
 0xa27   :  { %v3409_v28 = vmul.f32 0.35355338, %v3252_v27 }
 0xa28   :  { %v13208_v29 = vpop.f32.mrf.mxu1 }
 0xa29   :  { %v3415_v31 = vsel %vm1016_vm3, %v3409_v28, -inf }
 0xa2a   :  { %3416 = vmax.xlane.f32.xlu1 %v3415_v31  ;;  %v3328_v32 = vpop.f32.mrf.mxu0  ;;  %v3404_v33 = vpop.f32.mrf.mxu1 }
 0xa2b   :  { %v3410_v34 = vmul.f32 0.35355338, %v3328_v32  ;;  %v3411_v35 = vmul.f32 0.35355338, %v3404_v33 }
 0xa2c   :  { %v13213_v36 = vpop.f32.mrf.mxu0  ;;  %v13218_v37 = vpop.f32.mrf.mxu1 }
 0xa2d   :  { %v3421_v38 = vsel %vm1016_vm3, %v3411_v35, -inf  ;;  %v3418_v39 = vsel %vm1016_vm3, %v3410_v34, -inf }
 0xa2e   :  { %3422 = vmax.xlane.f32.xlu1 %v3421_v38  ;;  %3419 = vmax.xlane.f32.xlu0 %v3418_v39 }
 0xaaf   :  { %v3414_v40 = vpop.xlane.xlu0 %3413 }
 0xab0   :  { %v3424_v41 = vsub.f32 %v3408_v24, %v3414_v40 }
 0xab2   :  { %v3428_v42 = vmul.f32 1.442695, %v3424_v41  ;;  %v12387_v41 = vld [vmem:[#allocation2 + $0x2b8] ss:$0 sm:$0xff] }
 0xab3   :  { %v3417_v43 = vpop.xlane.xlu1 %3416 }
 0xab4   :  { %13905 = vpow2.f32 %v3428_v42  ;;  %v3425_v44 = vsub.f32 %v3409_v28, %v3417_v43 }
 0xab6   :  { %v3430_v45 = vmul.f32 1.442695, %v3425_v44 }
 0xab7   :  { %v3423_v47 = vpop.xlane.xlu1 %3422  ;;  %v3420_v48 = vpop.xlane.xlu0 %3419 }
 0xab8   :  { %13907 = vpow2.f32 %v3430_v45  ;;  %v3427_v49 = vsub.f32 %v3411_v35, %v3423_v47  ;;  %v3426_v50 = vsub.f32 %v3410_v34, %v3420_v48 }
 0xaba   :  { %v3434_v52 = vmul.f32 1.442695, %v3427_v49  ;;  %v3432_v53 = vmul.f32 1.442695, %v3426_v50  ;;  %v4088_v49 = vld [vmem:[#allocation2 + $0x2e8] sm:$0xff]  ;;  %v4087_v50 = vld [vmem:[#allocation2 + $0x2e0] sm:$0xff] }
 0xabc   :  { %13909 = vpow2.f32 %v3434_v52  ;;  %v4086_v52 = vld [vmem:[#allocation2 + $0x2d8] sm:$0xff] }
 0xabd   :  { %13911 = vpow2.f32 %v3432_v53  ;;  %v4183_v53 = vld [vmem:[#allocation2 + $0x370] sm:$0xff] }
 0xac1   :  { %v13906_v54 = vpop.eup %13905 }
 0xac2   :  { %v3436_v55 = vsel %vm1016_vm3, %v13906_v54, 0.0 }
 0xac3   :  { %3437 = vadd.xlane.f32.xlu0 %v3436_v55  ;;  %v4181_v55 = vld [vmem:[#allocation2 + $0x360] sm:$0xff] }
 0xac5   :  { %v13908_v46 = vpop.eup %13907 }
 0xac6   :  { %v3439_v56 = vsel %vm1016_vm3, %v13908_v46, 0.0 }
 0xac7   :  { %3440 = vadd.xlane.f32.xlu1 %v3439_v56  ;;  %v4179_v56 = vld [vmem:[#allocation2 + $0x350] sm:$0xff] }
 0xac9   :  { %v13910_v57 = vpop.eup %13909 }
 0xaca   :  { %v13912_v58 = vpop.eup %13911  ;;  %v3445_v59 = vsel %vm1016_vm3, %v13910_v57, 0.0 }
 0xacb   :  { %3446 = vadd.xlane.f32.xlu1 %v3445_v59  ;;  %v3442_v60 = vsel %vm1016_vm3, %v13912_v58, 0.0  ;;  %v4176_v59 = vld [vmem:[#allocation2 + $0x338] sm:$0xff] }
 0xacc   :  { %3443 = vadd.xlane.f32.xlu0 %v3442_v60  ;;  %v4175_v60 = vld [vmem:[#allocation2 + $0x330] sm:$0xff] }
 0xb4c   :  { %v3438_v61 = vpop.xlane.xlu0 %3437 }
 0xb4d   :  { %13913 = vrcp.f32 %v3438_v61  ;;  %v4174_v61 = vld [vmem:[#allocation2 + $0x328] sm:$0xff] }
 0xb50   :  { %v3441_v62 = vpop.xlane.xlu1 %3440 }
 0xb51   :  { %13915 = vrcp.f32 %v3441_v62  ;;  %v4173_v62 = vld [vmem:[#allocation2 + $0x320] sm:$0xff] }
 0xb54   :  { %v3447_v63 = vpop.xlane.xlu1 %3446 }
 0xb55   :  { %13917 = vrcp.f32 %v3447_v63  ;;  %v3444_v0 = vpop.xlane.xlu0 %3443  ;;  %v4172_v63 = vld [vmem:[#allocation2 + $0x318] sm:$0xff] }
 0xb56   :  { %13919 = vrcp.f32 %v3444_v0  ;;  %v4171_v0 = vld [vmem:[#allocation2 + $0x310] sm:$0xff] }
 0xb5a   :  { %v13914_v3 = vpop.eup %13913 }
 0xb5b   :  { %v3452_v4 = vmul.f32 %v13914_v3, %v13906_v54  ;;  %v4182_v54 = vld [vmem:[#allocation2 + $0x368] sm:$0xff] }
 0xb5d   :  { %13222 = vmatmul.mubr.msk.f32.vlgmr.msra.gmra.mxu0 %vm1016_vm3, %v3452_v4 }
 0xb5e   :  { %v13916_v7 = vpop.eup %13915  ;;  %13230 = vmatpush3.msra.mxu0 %v3028_v5  ;;  %13231 = vmatprep.mubr.msk.f32.mxu0 %vm14054_vm0, %v14053_v1 }
 0xb5f   :  { %v3453_v8 = vmul.f32 %v13916_v7, %v13908_v46  ;;  %13239 = vmatprep.subr.mxu0 %v14053_v1  ;;  %v4180_v46 = vld [vmem:[#allocation2 + $0x358] sm:$0xff] }
 0xb61   :  { %13227 = vmatmul.mubr.msk.f32.vlgmr.msra.gmra.mxu1 %vm1016_vm3, %v3453_v8 }
 0xb62   :  { %v13918_v10 = vpop.eup %13917  ;;  %13235 = vmatpush3.msra.mxu1 %v3101_v9  ;;  %13236 = vmatprep.mubr.msk.f32.mxu1 %vm14054_vm0, %v14053_v1 }
 0xb63   :  { %v13920_v11 = vpop.eup %13919  ;;  %v3455_v12 = vmul.f32 %v13918_v10, %v13910_v57  ;;  %13244 = vmatprep.subr.mxu1 %v14053_v1  ;;  %v4178_v57 = vld [vmem:[#allocation2 + $0x348] sm:$0xff] }
 0xb64   :  { %v3454_v13 = vmul.f32 %v13920_v11, %v13912_v58  ;;  %v4177_v58 = vld [vmem:[#allocation2 + $0x340] sm:$0xff] }
 0xb65   :  { %13237 = vmatmul.mubr.msk.f32.vlgmr.msra.gmra.mxu1 %vm1016_vm3, %v3455_v12  ;;  %v12388_v11 = vld [vmem:[#allocation2 + $0x2c0] ss:$0 sm:$0xff] }
 0xb66   :  { %13232 = vmatmul.mubr.msk.f32.vlgmr.msra.gmra.mxu0 %vm1016_vm3, %v3454_v13  ;;  %13246 = vmatprep.mubr.msk.f32.mxu1 %vm14054_vm0, %v14053_v1  ;;  %v12389_v13 = vld [vmem:[#allocation2 + $0x2c8] ss:$0 sm:$0xff] }
 0xb67   :  { %13241 = vmatprep.mubr.msk.f32.mxu0 %vm14054_vm0, %v14053_v1  ;;  %13240 = vmatpush3.msra.mxu0 %v3748_v51 }
 0xb68   :  { %13249 = vmatprep.subr.mxu0 %v14053_v1  ;;  %13245 = vmatpush3.msra.mxu1 %v3749_v14 }
 0xb69   :  { %13254 = vmatprep.subr.mxu1 %v14053_v1 }
 0xc1d   :  { %v3525_v17 = vpop.f32.mrf.mxu0 }
 0xc1e   :  { %13242 = vmatmul.mubr.msk.f32.vlgmr.msra.gmra.mxu0 %vm1016_vm3, %v3525_v17  ;;  %v4169_v17 = vld [vmem:[#allocation2 + $0x300] sm:$0xff] }
 0xc1f   :  { %v13223_v18 = vpop.f32.mrf.mxu0  ;;  %13250 = vmatpush3.msra.mxu0 %v3750_v16  ;;  %13251 = vmatprep.mubr.msk.f32.mxu0 %vm14054_vm0, %v14053_v1  ;;  %v4170_v16 = vld [vmem:[#allocation2 + $0x308] sm:$0xff] }
 0xc20   :  { %13259 = vmatprep.subr.mxu0 %v14053_v1  ;;  %v4168_v18 = vld [vmem:[#allocation2 + $0x2f8] sm:$0xff] }
 0xc21   :  { %v3598_v20 = vpop.f32.mrf.mxu1 }
 0xc22   :  { %13247 = vmatmul.mubr.msk.f32.vlgmr.msra.gmra.mxu1 %vm1016_vm3, %v3598_v20 }
 0xc23   :  { %v13228_v21 = vpop.f32.mrf.mxu1  ;;  %13255 = vmatpush3.msra.mxu1 %v3751_v19  ;;  %13256 = vmatprep.mubr.msk.f32.mxu1 %vm14054_vm0, %v14053_v1  ;;  %v12390_v19 = vld [vmem:[#allocation2 + $0x2f0] ss:$0 sm:$0xff] }
 0xc24   :  { %13270 = vmatprep.subr.mxu1 %v14053_v1 }
 0xc25   :  { %v3744_v22 = vpop.f32.mrf.mxu1 }
 0xc26   :  { %v3671_v23 = vpop.f32.mrf.mxu0  ;;  %13257 = vmatmul.mubr.msk.f32.vlgmr.msra.gmra.mxu1 %vm1016_vm3, %v3744_v22 }
 0xc27   :  { %13252 = vmatmul.mubr.msk.f32.vlgmr.msra.gmra.mxu0 %vm1016_vm3, %v3671_v23  ;;  %v13238_v24 = vpop.f32.mrf.mxu1  ;;  %13302 = vmatprep.mubr.msk.f32.mxu1 %vm14054_vm0, %v14053_v1 }
 0xc28   :  { %v13233_v25 = vpop.f32.mrf.mxu0  ;;  %13267 = vmatprep.mubr.msk.f32.mxu0 %vm14054_vm0, %v14053_v1  ;;  %13260 = vmatpush3.msra.mxu0 %v4088_v49  ;;  %v12392_v24 = vld [vmem:[#allocation2 + $0x378] ss:$0 sm:$0xff] }
 0xc29   :  { %13261 = vmatprep.subr.mxu0 %v14053_v1  ;;  %13271 = vmatpush3.msra.mxu1 %v4183_v53 }
 0xc2a   :  { %13262 = vmatpush3.msra.mxu0 %v4087_v50  ;;  %13272 = vmatprep.subr.mxu1 %v14053_v1 }
 0xc2b   :  { %13263 = vmatprep.subr.mxu0 %v14053_v1  ;;  %13273 = vmatpush3.msra.mxu1 %v4182_v54 }
 0xc2c   :  { %13264 = vmatpush3.msra.mxu0 %v4086_v52  ;;  %13274 = vmatprep.subr.mxu1 %v14053_v1  ;;  %v4314_v52 = vld [vmem:[#allocation2 + $0x4d8] sm:$0xff] }
 0xc2d   :  { %13265 = vmatprep.subr.mxu0 %v14053_v1  ;;  %13275 = vmatpush3.msra.mxu1 %v4181_v55 }
 0xc2e   :  { %13276 = vmatprep.subr.mxu1 %v14053_v1 }
 0xc2f   :  { %13277 = vmatpush3.msra.mxu1 %v4180_v46 }
 0xc30   :  { %13278 = vmatprep.subr.mxu1 %v14053_v1 }
 0xc31   :  { %13279 = vmatpush3.msra.mxu1 %v4179_v56 }
 0xc32   :  { %13280 = vmatprep.subr.mxu1 %v14053_v1 }
 0xc33   :  { %13281 = vmatpush3.msra.mxu1 %v4178_v57 }
 0xc34   :  { %13282 = vmatprep.subr.mxu1 %v14053_v1 }
 0xc35   :  { %13283 = vmatpush3.msra.mxu1 %v4177_v58 }
 0xc36   :  { %13284 = vmatprep.subr.mxu1 %v14053_v1 }
 0xc37   :  { %13285 = vmatpush3.msra.mxu1 %v4176_v59 }
 0xc38   :  { %13286 = vmatprep.subr.mxu1 %v14053_v1 }
 0xc39   :  { %13287 = vmatpush3.msra.mxu1 %v4175_v60 }
 0xc3a   :  { %13288 = vmatprep.subr.mxu1 %v14053_v1 }
 0xc3b   :  { %13289 = vmatpush3.msra.mxu1 %v4174_v61  ;;  %v12395_v61 = vld [vmem:[#allocation2 + $0x390] ss:$0 sm:$0xff] }
 0xc3c   :  { %13290 = vmatprep.subr.mxu1 %v14053_v1 }
 0xc3d   :  { %13291 = vmatpush3.msra.mxu1 %v4173_v62 }
 0xc3e   :  { %13292 = vmatprep.subr.mxu1 %v14053_v1 }
 0xc3f   :  { %13293 = vmatpush3.msra.mxu1 %v4172_v63  ;;  %v12396_v63 = vld [vmem:[#allocation2 + $0x398] ss:$0 sm:$0xff] }
 0xc40   :  { %13294 = vmatprep.subr.mxu1 %v14053_v1 }
 0xc41   :  { %13295 = vmatpush3.msra.mxu1 %v4171_v0 }
 0xc42   :  { %13296 = vmatprep.subr.mxu1 %v14053_v1 }
 0xc43   :  { %13297 = vmatpush3.msra.mxu1 %v4170_v16  ;;  %v5818_v16 = vld [vmem:[#allocation2 + $0x3e8] sm:$0xff] }
 0xc44   :  { %13298 = vmatprep.subr.mxu1 %v14053_v1 }
 0xc45   :  { %13299 = vmatpush3.msra.mxu1 %v4169_v17  ;;  %v4919_v17 = vld [vmem:[#allocation2 + $0x798] sm:$0xff] }
 0xc46   :  { %13300 = vmatprep.subr.mxu1 %v14053_v1 }
 0xc47   :  { %13301 = vmatpush3.msra.mxu1 %v4168_v18  ;;  %v5820_v18 = vld [vmem:[#allocation2 + $0x3f8] sm:$0xff] }
 0xc48   :  { %13340 = vmatprep.subr.mxu1 %v14053_v1 }
 0xcde   :  { %v3821_v26 = vpop.f32.mrf.mxu0 }
 0xcdf   :  { %v4044_v32 = vsel %vm39_vm1, %v3821_v26, 0.0 }
 0xce0   :  { %v13243_v27 = vpop.f32.mrf.mxu0 }
 0xce2   :  { %v3894_v28 = vpop.f32.mrf.mxu1 }
 0xce3   :  { %v4045_v29 = vsel %vm39_vm1, %v3894_v28, 0.0 }
 0xce4   :  { %v13248_v31 = vpop.f32.mrf.mxu1  ;;  %v4046_v34 = vadd.f32 %v4045_v29, %v4044_v32 }
 0xce6   :  { %v4040_v33 = vpop.f32.mrf.mxu1 }
 0xce7   :  { %v3967_v35 = vpop.f32.mrf.mxu0  ;;  %v4049_v40 = vsel %vm39_vm1, %v4040_v33, 0.0 }
 0xce8   :  { %v4047_v36 = vsel %vm39_vm1, %v3967_v35, 0.0  ;;  %v13258_v37 = vpop.f32.mrf.mxu1 }
 0xce9   :  { %v4048_v38 = vadd.f32 %v4047_v36, %v4046_v34  ;;  %v13253_v39 = vpop.f32.mrf.mxu0 }
 0xceb   :  { %v4050_v42 = vadd.f32 %v4049_v40, %v4048_v38 }
 0xced   :  { %v4056_v43 = vadd.f32 %v12387_v41, %v4050_v42  ;;  %v12393_v42 = vld [vmem:[#allocation2 + $0x380] ss:$0 sm:$0xff] }
 0xcef   :  { %v14416_v44 = vadd.f32 %v4056_v43, %v14275_v30  ;;  %v4085_v30 = vld [vmem:[#allocation2 + $0x2d0] sm:$0xff] }
 0xcf0   :  { %13266 = vmatpush3.msra.mxu0 %v4085_v30  ;;  %v4620_v30 = vld [vmem:[#allocation2 + $0x530] sm:$0xff] }
 0xcf1   :  { %v4058_v45 = vsel %vm39_vm1, %v14416_v44, 0.0  ;;  %v4062_v47 = vmul.f32 %v14416_v44, %v14416_v44  ;;  %13305 = vmatprep.subr.mxu0 %v14053_v1 }
 0xcf2   :  { %4059 = vadd.xlane.f32.xlu0 %v4058_v45 }
 0xcf3   :  { %v4063_v48 = vsel %vm39_vm1, %v4062_v47, 0.0 }
 0xcf4   :  { %4064 = vadd.xlane.f32.xlu1 %v4063_v48 }
 0xd7b   :  { %v4060_v2 = vpop.xlane.xlu0 %4059 }
 0xd7c   :  { %v4061_v3 = vmul.f32 0.03125, %v4060_v2 }
 0xd7d   :  { %v4065_v4 = vpop.xlane.xlu1 %4064 }
 0xd7e   :  { %v4067_v5 = vmul.f32 %v4061_v3, %v4061_v3  ;;  %v4066_v6 = vmul.f32 0.03125, %v4065_v4  ;;  %v4069_v9 = vsub.f32 %v14416_v44, %v4061_v3  ;;  %v12394_v44 = vld [vmem:[#allocation2 + $0x388] ss:$0 sm:$0xff]  ;;  %v4315_v3 = vld [vmem:[#allocation2 + $0x4e0] sm:$0xff]  ;;  %v4918_v4 = vld [vmem:[#allocation2 + $0x790] sm:$0xff] }
 0xd80   :  { %v4068_v7 = vsub.f32 %v4066_v6, %v4067_v5  ;;  %v4316_v5 = vld [vmem:[#allocation2 + $0x4e8] sm:$0xff]  ;;  %v4920_v6 = vld [vmem:[#allocation2 + $0x7a0] sm:$0xff] }
 0xd82   :  { %v4070_v8 = vadd.f32 1e-05, %v4068_v7  ;;  %v4317_v7 = vld [vmem:[#allocation2 + $0x4f0] sm:$0xff] }
 0xd84   :  { %13921 = vrsqrt.f32 %v4070_v8  ;;  %v5218_v8 = vld [vmem:[#allocation2 + $0x7d0] sm:$0xff] }
 0xd91   :  { %v13922_v10 = vpop.eup %13921 }
 0xd92   :  { %v4072_v12 = vmul.f32 %v13922_v10, %v4069_v9  ;;  %v4617_v9 = vld [vmem:[#allocation2 + $0x518] sm:$0xff]  ;;  %v5220_v10 = vld [vmem:[#allocation2 + $0x7e0] sm:$0xff] }
 0xd94   :  { %v4078_v51 = vmul.f32 %v12388_v11, %v4072_v12  ;;  %v4618_v11 = vld [vmem:[#allocation2 + $0x520] sm:$0xff]  ;;  %v5518_v12 = vld [vmem:[#allocation2 + $0x3a8] sm:$0xff] }
 0xd96   :  { %v4084_v14 = vadd.f32 %v12389_v13, %v4078_v51  ;;  %v4619_v13 = vld [vmem:[#allocation2 + $0x528] sm:$0xff]  ;;  %v5520_v51 = vld [vmem:[#allocation2 + $0x3b8] sm:$0xff] }
 0xd98   :  { %13268 = vmatmul.mubr.msk.f32.vlgmr.msra.gmra.mxu0 %vm39_vm1, %v4084_v14 }
 0xd99   :  { %13307 = vmatprep.mubr.msk.f32.mxu0 %vm14054_vm0, %v14053_v1  ;;  %13306 = vmatpush3.xpose.msk.msra.mxu0 %vm39_vm1, %v4314_v52 }
 0xd9a   :  { %13310 = vmatprep.subr.mxu0 %v14053_v1 }
 0xe58   :  { %v4163_v20 = vpop.f32.mrf.mxu0 }
 0xe59   :  { %v4164_v21 = vadd.f32 %v12390_v19, %v4163_v20  ;;  %v5217_v19 = vld [vmem:[#allocation2 + $0x7c8] sm:$0xff] }
 0xe5a   :  { %v13269_v22 = vpop.f32.mrf.mxu0  ;;  %v6118_v20 = vld [vmem:[#allocation2 + $0x428] sm:$0xff] }
 0xe5b   :  { %v4167_v23 = vmax.f32 %v4164_v21, 0.0  ;;  %v5219_v21 = vld [vmem:[#allocation2 + $0x7d8] sm:$0xff] }
 0xe5c   :  { %v6120_v22 = vld [vmem:[#allocation2 + $0x438] sm:$0xff] }
 0xe5d   :  { %13303 = vmatmul.mubr.f32.vlgmr.msra.gmra.mxu1 %v4167_v23  ;;  %v5517_v23 = vld [vmem:[#allocation2 + $0x3a0] sm:$0xff] }
 0xe5e   :  { %13342 = vmatprep.mubr.msk.f32.mxu1 %vm14054_vm0, %v14053_v1  ;;  %13341 = vmatpush3.xpose.msk.msra.mxu1 %vm39_vm1, %v4620_v30 }
 0xe5f   :  { %13350 = vmatprep.subr.mxu1 %v14053_v1 }
 0xf1d   :  { %v4255_v25 = vpop.f32.mrf.mxu1 }
 0xf1e   :  { %v4256_v26 = vadd.f32 %v12392_v24, %v4255_v25  ;;  %v5519_v24 = vld [vmem:[#allocation2 + $0x3b0] sm:$0xff]  ;;  %v5817_v25 = vld [vmem:[#allocation2 + $0x3e0] sm:$0xff] }
 0xf1f   :  { %v13304_v27 = vpop.f32.mrf.mxu1 }
 0xf20   :  { %v4259_v28 = vadd.f32 %v4256_v26, %v4084_v14  ;;  %v4917_v14 = vld [vmem:[#allocation2 + $0x788] sm:$0xff]  ;;  %v5819_v26 = vld [vmem:[#allocation2 + $0x3f0] sm:$0xff]  ;;  %v6117_v27 = vld [vmem:[#allocation2 + $0x420] sm:$0xff] }
 0xf22   :  { %v4260_v29 = vsel %vm39_vm1, %v4259_v28, 0.0  ;;  %v4264_v31 = vmul.f32 %v4259_v28, %v4259_v28 }
 0xf23   :  { %4261 = vadd.xlane.f32.xlu0 %v4260_v29 }
 0xf24   :  { %v4265_v32 = vsel %vm39_vm1, %v4264_v31, 0.0 }
 0xf25   :  { %4266 = vadd.xlane.f32.xlu1 %v4265_v32 }
 0xfac   :  { %v4262_v33 = vpop.xlane.xlu0 %4261 }
 0xfad   :  { %v4263_v34 = vmul.f32 0.03125, %v4262_v33 }
 0xfae   :  { %v4267_v35 = vpop.xlane.xlu1 %4266 }
 0xfaf   :  { %v4269_v36 = vmul.f32 %v4263_v34, %v4263_v34  ;;  %v4268_v37 = vmul.f32 0.03125, %v4267_v35  ;;  %v4271_v40 = vsub.f32 %v4259_v28, %v4263_v34  ;;  %v6119_v28 = vld [vmem:[#allocation2 + $0x430] sm:$0xff] }
 0xfb1   :  { %v4270_v38 = vsub.f32 %v4268_v37, %v4269_v36 }
 0xfb3   :  { %v4272_v39 = vadd.f32 1e-05, %v4270_v38 }
 0xfb5   :  { %13923 = vrsqrt.f32 %v4272_v39 }
 0xfc2   :  { %v13924_v41 = vpop.eup %13923 }
 0xfc3   :  { %v4274_v43 = vmul.f32 %v13924_v41, %v4271_v40 }
 0xfc5   :  { %v4280_v45 = vmul.f32 %v12393_v42, %v4274_v43 }
 0xfc7   :  { %v4286_v47 = vadd.f32 %v12394_v44, %v4280_v45 }
 0xfc9   :  { %v4287_v48 = vsel %vm39_vm1, %v4286_v47, 0.0  ;;  %v4291_v49 = vmul.f32 %v4286_v47, %v4286_v47 }
 0xfca   :  { %4288 = vadd.xlane.f32.xlu0 %v4287_v48 }
 0xfcb   :  { %v4292_v50 = vsel %vm39_vm1, %v4291_v49, 0.0 }
 0xfcc   :  { %4293 = vadd.xlane.f32.xlu1 %v4292_v50 }
0x1053   :  { %v4289_v53 = vpop.xlane.xlu0 %4288 }
0x1054   :  { %v4290_v54 = vmul.f32 0.03125, %v4289_v53 }
0x1055   :  { %v4294_v55 = vpop.xlane.xlu1 %4293 }
0x1056   :  { %v4296_v46 = vmul.f32 %v4290_v54, %v4290_v54  ;;  %v4295_v56 = vmul.f32 0.03125, %v4294_v55  ;;  %v4298_v59 = vsub.f32 %v4286_v47, %v4290_v54 }
0x1058   :  { %v4297_v57 = vsub.f32 %v4295_v56, %v4296_v46 }
0x105a   :  { %v4299_v58 = vadd.f32 1e-05, %v4297_v57 }
0x105c   :  { %13925 = vrsqrt.f32 %v4299_v58  ;;  %v5822_v58 = vld [vmem:[#allocation2 + $0x408] sm:$0xff] }
0x1069   :  { %v13926_v60 = vpop.eup %13925 }
0x106a   :  { %v4301_v62 = vmul.f32 %v13926_v60, %v4298_v59 }
0x106c   :  { %v4307_v0 = vmul.f32 %v12395_v61, %v4301_v62  ;;  %v5522_v61 = vld [vmem:[#allocation2 + $0x3c8] sm:$0xff] }
0x106e   :  { %v14457_v2 = vadd.f32 %v12396_v63, %v4307_v0 }
0x1070   :  { %13308 = vmatmul.mubr.msk.f32.vlgmr.msra.gmra.mxu0 %vm39_vm1, %v14457_v2  ;;  %13343 = vmatmul.mubr.msk.f32.vlgmr.msra.gmra.mxu1 %vm39_vm1, %v14457_v2 }
0x1071   :  { %13311 = vmatpush3.xpose.msk.msra.mxu0 %vm39_vm1, %v4315_v3  ;;  %13351 = vmatpush3.xpose.msk.msra.mxu1 %vm39_vm1, %v4918_v4 }
0x1072   :  { %13312 = vmatprep.mubr.msk.f32.mxu0 %vm14054_vm0, %v14053_v1  ;;  %13352 = vmatprep.mubr.msk.f32.mxu1 %vm14054_vm0, %v14053_v1 }
0x1073   :  { %13315 = vmatprep.subr.mxu0 %v14053_v1  ;;  %13360 = vmatprep.subr.mxu1 %v14053_v1 }
0x1074   :  { %13313 = vmatmul.mubr.msk.f32.vlgmr.msra.gmra.mxu0 %vm39_vm1, %v14457_v2  ;;  %13353 = vmatmul.mubr.msk.f32.vlgmr.msra.gmra.mxu1 %vm39_vm1, %v14457_v2 }
0x1075   :  { %13316 = vmatpush3.xpose.msk.msra.mxu0 %vm39_vm1, %v4316_v5  ;;  %13361 = vmatpush3.xpose.msk.msra.mxu1 %vm39_vm1, %v4920_v6  ;;  %v5524_v6 = vld [vmem:[#allocation2 + $0x3d8] sm:$0xff] }
0x1076   :  { %13317 = vmatprep.mubr.msk.f32.mxu0 %vm14054_vm0, %v14053_v1  ;;  %13362 = vmatprep.mubr.msk.f32.mxu1 %vm14054_vm0, %v14053_v1 }
0x1077   :  { %13320 = vmatprep.subr.mxu0 %v14053_v1  ;;  %13370 = vmatprep.subr.mxu1 %v14053_v1 }
0x1078   :  { %13318 = vmatmul.mubr.msk.f32.vlgmr.msra.gmra.mxu0 %vm39_vm1, %v14457_v2  ;;  %13363 = vmatmul.mubr.msk.f32.vlgmr.msra.gmra.mxu1 %vm39_vm1, %v14457_v2 }
0x1079   :  { %13321 = vmatpush3.xpose.msk.msra.mxu0 %vm39_vm1, %v4317_v7  ;;  %13371 = vmatpush3.xpose.msk.msra.mxu1 %vm39_vm1, %v5218_v8 }
0x107a   :  { %13322 = vmatprep.mubr.msk.f32.mxu0 %vm14054_vm0, %v14053_v1  ;;  %13372 = vmatprep.mubr.msk.f32.mxu1 %vm14054_vm0, %v14053_v1 }
0x107b   :  { %13325 = vmatprep.subr.mxu0 %v14053_v1  ;;  %13380 = vmatprep.subr.mxu1 %v14053_v1 }
0x107c   :  { %13323 = vmatmul.mubr.msk.f32.vlgmr.msra.gmra.mxu0 %vm39_vm1, %v14457_v2  ;;  %13373 = vmatmul.mubr.msk.f32.vlgmr.msra.gmra.mxu1 %vm39_vm1, %v14457_v2 }
0x107d   :  { %13326 = vmatpush3.xpose.msk.msra.mxu0 %vm39_vm1, %v4617_v9  ;;  %13381 = vmatpush3.xpose.msk.msra.mxu1 %vm39_vm1, %v5220_v10  ;;  %v6122_v10 = vld [vmem:[#allocation2 + $0x448] sm:$0xff] }
0x107e   :  { %13327 = vmatprep.mubr.msk.f32.mxu0 %vm14054_vm0, %v14053_v1  ;;  %13382 = vmatprep.mubr.msk.f32.mxu1 %vm14054_vm0, %v14053_v1 }
0x107f   :  { %13330 = vmatprep.subr.mxu0 %v14053_v1  ;;  %13390 = vmatprep.subr.mxu1 %v14053_v1 }
0x1080   :  { %13328 = vmatmul.mubr.msk.f32.vlgmr.msra.gmra.mxu0 %vm39_vm1, %v14457_v2  ;;  %13383 = vmatmul.mubr.msk.f32.vlgmr.msra.gmra.mxu1 %vm39_vm1, %v14457_v2 }
0x1081   :  { %13331 = vmatpush3.xpose.msk.msra.mxu0 %vm39_vm1, %v4618_v11  ;;  %13391 = vmatpush3.xpose.msk.msra.mxu1 %vm39_vm1, %v5518_v12 }
0x1082   :  { %13332 = vmatprep.mubr.msk.f32.mxu0 %vm14054_vm0, %v14053_v1  ;;  %13392 = vmatprep.mubr.msk.f32.mxu1 %vm14054_vm0, %v14053_v1 }
0x1083   :  { %13335 = vmatprep.subr.mxu0 %v14053_v1  ;;  %13400 = vmatprep.subr.mxu1 %v14053_v1 }
0x1084   :  { %13333 = vmatmul.mubr.msk.f32.vlgmr.msra.gmra.mxu0 %vm39_vm1, %v14457_v2  ;;  %13393 = vmatmul.mubr.msk.f32.vlgmr.msra.gmra.mxu1 %vm39_vm1, %v14095_v15 }
0x1085   :  { %13336 = vmatpush3.xpose.msk.msra.mxu0 %vm39_vm1, %v4619_v13  ;;  %13401 = vmatpush3.xpose.msk.msra.mxu1 %vm39_vm1, %v5520_v51 }
0x1086   :  { %13337 = vmatprep.mubr.msk.f32.mxu0 %vm14054_vm0, %v14053_v1  ;;  %13402 = vmatprep.mubr.msk.f32.mxu1 %vm14054_vm0, %v14053_v1 }
0x1087   :  { %13345 = vmatprep.subr.mxu0 %v14053_v1  ;;  %13410 = vmatprep.subr.mxu1 %v14053_v1 }
0x1088   :  { %13338 = vmatmul.mubr.msk.f32.vlgmr.msra.gmra.mxu0 %vm39_vm1, %v14457_v2  ;;  %13403 = vmatmul.mubr.msk.f32.vlgmr.msra.gmra.mxu1 %vm39_vm1, %v14095_v15 }
0x1089   :  { %13346 = vmatpush3.xpose.msk.msra.mxu0 %vm39_vm1, %v4917_v14  ;;  %13411 = vmatpush3.xpose.msk.msra.mxu1 %vm39_vm1, %v5818_v16 }
0x108a   :  { %13347 = vmatprep.mubr.msk.f32.mxu0 %vm14054_vm0, %v14053_v1  ;;  %13412 = vmatprep.mubr.msk.f32.mxu1 %vm14054_vm0, %v14053_v1 }
0x108b   :  { %13355 = vmatprep.subr.mxu0 %v14053_v1  ;;  %13420 = vmatprep.subr.mxu1 %v14053_v1 }
0x108c   :  { %13348 = vmatmul.mubr.msk.f32.vlgmr.msra.gmra.mxu0 %vm39_vm1, %v14457_v2  ;;  %13413 = vmatmul.mubr.msk.f32.vlgmr.msra.gmra.mxu1 %vm39_vm1, %v14095_v15 }
0x108d   :  { %13356 = vmatpush3.xpose.msk.msra.mxu0 %vm39_vm1, %v4919_v17  ;;  %13421 = vmatpush3.xpose.msk.msra.mxu1 %vm39_vm1, %v5820_v18 }
0x108e   :  { %13357 = vmatprep.mubr.msk.f32.mxu0 %vm14054_vm0, %v14053_v1  ;;  %13422 = vmatprep.mubr.msk.f32.mxu1 %vm14054_vm0, %v14053_v1 }
0x108f   :  { %13365 = vmatprep.subr.mxu0 %v14053_v1  ;;  %13430 = vmatprep.subr.mxu1 %v14053_v1 }
0x1090   :  { %13358 = vmatmul.mubr.msk.f32.vlgmr.msra.gmra.mxu0 %vm39_vm1, %v14457_v2  ;;  %13423 = vmatmul.mubr.msk.f32.vlgmr.msra.gmra.mxu1 %vm39_vm1, %v14095_v15 }
0x1091   :  { %13366 = vmatpush3.xpose.msk.msra.mxu0 %vm39_vm1, %v5217_v19  ;;  %13431 = vmatpush3.xpose.msk.msra.mxu1 %vm39_vm1, %v6118_v20 }
0x1092   :  { %13367 = vmatprep.mubr.msk.f32.mxu0 %vm14054_vm0, %v14053_v1  ;;  %13432 = vmatprep.mubr.msk.f32.mxu1 %vm14054_vm0, %v14053_v1 }
0x1093   :  { %13375 = vmatprep.subr.mxu0 %v14053_v1  ;;  %13440 = vmatprep.subr.mxu1 %v14053_v1 }
0x1094   :  { %13368 = vmatmul.mubr.msk.f32.vlgmr.msra.gmra.mxu0 %vm39_vm1, %v14457_v2  ;;  %13433 = vmatmul.mubr.msk.f32.vlgmr.msra.gmra.mxu1 %vm39_vm1, %v14095_v15 }
0x1095   :  { %13376 = vmatpush3.xpose.msk.msra.mxu0 %vm39_vm1, %v5219_v21  ;;  %13441 = vmatpush3.xpose.msk.msra.mxu1 %vm39_vm1, %v6120_v22 }
0x1096   :  { %13377 = vmatprep.mubr.msk.f32.mxu0 %vm14054_vm0, %v14053_v1  ;;  %13442 = vmatprep.mubr.msk.f32.mxu1 %vm14054_vm0, %v14053_v1 }
0x1097   :  { %13385 = vmatprep.subr.mxu0 %v14053_v1  ;;  %13450 = vmatprep.subr.mxu1 %v14053_v1 }
0x1098   :  { %13378 = vmatmul.mubr.msk.f32.vlgmr.msra.gmra.mxu0 %vm39_vm1, %v14457_v2  ;;  %13443 = vmatmul.mubr.msk.f32.vlgmr.msra.gmra.mxu1 %vm39_vm1, %v14095_v15  ;;  %v5824_v2 = vld [vmem:[#allocation2 + $0x418] sm:$0xff] }
0x1099   :  { %13386 = vmatpush3.xpose.msk.msra.mxu0 %vm39_vm1, %v5517_v23  ;;  %13387 = vmatprep.mubr.msk.f32.mxu0 %vm14054_vm0, %v14053_v1 }
0x109a   :  { %13395 = vmatprep.subr.mxu0 %v14053_v1  ;;  %13452 = vmatprep.mubr.msk.f32.mxu1 %vm14054_vm0, %v14053_v1 }
0x109c   :  { %13388 = vmatmul.mubr.msk.f32.vlgmr.msra.gmra.mxu0 %vm39_vm1, %v14095_v15 }
0x109d   :  { %13396 = vmatpush3.xpose.msk.msra.mxu0 %vm39_vm1, %v5519_v24  ;;  %13397 = vmatprep.mubr.msk.f32.mxu0 %vm14054_vm0, %v14053_v1 }
0x109e   :  { %13405 = vmatprep.subr.mxu0 %v14053_v1 }
0x10a0   :  { %13398 = vmatmul.mubr.msk.f32.vlgmr.msra.gmra.mxu0 %vm39_vm1, %v14095_v15 }
0x10a1   :  { %13406 = vmatpush3.xpose.msk.msra.mxu0 %vm39_vm1, %v5817_v25  ;;  %13407 = vmatprep.mubr.msk.f32.mxu0 %vm14054_vm0, %v14053_v1  ;;  %v5821_v25 = vld [vmem:[#allocation2 + $0x400] sm:$0xff] }
0x10a2   :  { %13415 = vmatprep.subr.mxu0 %v14053_v1 }
0x10a4   :  { %13408 = vmatmul.mubr.msk.f32.vlgmr.msra.gmra.mxu0 %vm39_vm1, %v14095_v15 }
0x10a5   :  { %13416 = vmatpush3.xpose.msk.msra.mxu0 %vm39_vm1, %v5819_v26  ;;  %13417 = vmatprep.mubr.msk.f32.mxu0 %vm14054_vm0, %v14053_v1 }
0x10a6   :  { %13425 = vmatprep.subr.mxu0 %v14053_v1 }
0x10a8   :  { %13418 = vmatmul.mubr.msk.f32.vlgmr.msra.gmra.mxu0 %vm39_vm1, %v14095_v15 }
0x10a9   :  { %13426 = vmatpush3.xpose.msk.msra.mxu0 %vm39_vm1, %v6117_v27  ;;  %13427 = vmatprep.mubr.msk.f32.mxu0 %vm14054_vm0, %v14053_v1  ;;  %v5521_v27 = vld [vmem:[#allocation2 + $0x3c0] sm:$0xff] }
0x10aa   :  { %13435 = vmatprep.subr.mxu0 %v14053_v1 }
0x10ac   :  { %13428 = vmatmul.mubr.msk.f32.vlgmr.msra.gmra.mxu0 %vm39_vm1, %v14095_v15 }
0x10ad   :  { %13436 = vmatpush3.xpose.msk.msra.mxu0 %vm39_vm1, %v6119_v28  ;;  %13437 = vmatprep.mubr.msk.f32.mxu0 %vm14054_vm0, %v14053_v1 }
0x10ae   :  { %13445 = vmatprep.subr.mxu0 %v14053_v1 }
0x10b0   :  { %13438 = vmatmul.mubr.msk.f32.vlgmr.msra.gmra.mxu0 %vm39_vm1, %v14095_v15 }
0x10b1   :  { %13447 = vmatprep.mubr.msk.f32.mxu0 %vm14054_vm0, %v14053_v1 }
0x1130   :  { %v14623_v29 = vpop.f32.mrf.mxu0  ;;  %v14625_v31 = vpop.f32.mrf.mxu1 }
0x1132   :  { %v13309_v32 = vpop.f32.mrf.mxu0  ;;  %v13344_v33 = vpop.f32.mrf.mxu1 }
0x1133   :  { %v5823_v33 = vld [vmem:[#allocation2 + $0x410] sm:$0xff] }
0x1134   :  { %v14627_v34 = vpop.f32.mrf.mxu0  ;;  %v14629_v35 = vpop.f32.mrf.mxu1 }
0x1136   :  { %v13314_v36 = vpop.f32.mrf.mxu0  ;;  %v13354_v37 = vpop.f32.mrf.mxu1 }
0x1138   :  { %v14631_v38 = vpop.f32.mrf.mxu0  ;;  %v14633_v39 = vpop.f32.mrf.mxu1 }
0x113a   :  { %v13319_v40 = vpop.f32.mrf.mxu0  ;;  %v13364_v41 = vpop.f32.mrf.mxu1 }
0x113b   :  { %v5523_v40 = vld [vmem:[#allocation2 + $0x3d0] sm:$0xff] }
0x113c   :  { %v14635_v42 = vpop.f32.mrf.mxu0  ;;  %v14637_v43 = vpop.f32.mrf.mxu1 }
0x113e   :  { %v13324_v44 = vpop.f32.mrf.mxu0  ;;  %v13374_v45 = vpop.f32.mrf.mxu1 }
0x113f   :  { %v6121_v45 = vld [vmem:[#allocation2 + $0x440] sm:$0xff] }
0x1140   :  { %v14639_v47 = vpop.f32.mrf.mxu0  ;;  %v14641_v48 = vpop.f32.mrf.mxu1 }
0x1142   :  { %v13329_v49 = vpop.f32.mrf.mxu0  ;;  %v13384_v50 = vpop.f32.mrf.mxu1 }
0x1144   :  { %v14643_v52 = vpop.f32.mrf.mxu0  ;;  %v5667_v30 = vpop.f32.mrf.mxu1 }
0x1145   :  { %v5668_v3 = vadd.f32 %v5667_v30, %v5522_v61 }
0x1146   :  { %v13334_v53 = vpop.f32.mrf.mxu0  ;;  %v13394_v54 = vpop.f32.mrf.mxu1 }
0x1148   :  { %v14645_v55 = vpop.f32.mrf.mxu0  ;;  %v5813_v46 = vpop.f32.mrf.mxu1 }
0x1149   :  { %v5814_v11 = vadd.f32 %v5813_v46, %v5524_v6 }
0x114a   :  { %v13339_v56 = vpop.f32.mrf.mxu0  ;;  %v13404_v57 = vpop.f32.mrf.mxu1 }
0x114c   :  { %v14647_v59 = vpop.f32.mrf.mxu0  ;;  %v5967_v60 = vpop.f32.mrf.mxu1 }
0x114d   :  { %v5968_v62 = vadd.f32 %v5967_v60, %v5822_v58 }
0x114e   :  { %v13349_v63 = vpop.f32.mrf.mxu0  ;;  %v13414_v0 = vpop.f32.mrf.mxu1 }
0x114f   :  { %13451 = vmatpush3.xpose.msk.msra.mxu1 %vm1016_vm3, %v5968_v62 }
0x1150   :  { %v14650_v4 = vpop.f32.mrf.mxu0  ;;  %v6113_v5 = vpop.f32.mrf.mxu1  ;;  %13460 = vmatprep.subr.mxu1 %v14053_v1 }
0x1151   :  { %v6114_v7 = vadd.f32 %v6113_v5, %v5824_v2 }
0x1152   :  { %v13359_v8 = vpop.f32.mrf.mxu0  ;;  %v13424_v9 = vpop.f32.mrf.mxu1  ;;  %13453 = vmatmul.mubr.msk.f32.vlgmr.msra.gmra.mxu1 %vm1016_vm3, %v5668_v3 }
0x1153   :  { %13461 = vmatpush3.xpose.msk.msra.mxu1 %vm1016_vm3, %v6114_v7  ;;  %13462 = vmatprep.mubr.msk.f32.mxu1 %vm14054_vm0, %v14053_v1 }
0x1154   :  { %v14657_v12 = vpop.f32.mrf.mxu0  ;;  %v6267_v13 = vpop.f32.mrf.mxu1  ;;  %13470 = vmatprep.subr.mxu1 %v14053_v1 }
0x1155   :  { %v6268_v51 = vadd.f32 %v6267_v13, %v6122_v10 }
0x1156   :  { %v13369_v14 = vpop.f32.mrf.mxu0  ;;  %v13434_v16 = vpop.f32.mrf.mxu1  ;;  %13463 = vmatmul.mubr.msk.f32.vlgmr.msra.gmra.mxu1 %vm1016_vm3, %v5814_v11 }
0x1157   :  { %13471 = vmatpush3.msra.mxu1 %v6268_v51  ;;  %13472 = vmatprep.mubr.msk.f32.mxu1 %vm14054_vm0, %v14053_v1 }
0x1158   :  { %v14663_v17 = vpop.f32.mrf.mxu0  ;;  %v14665_v18 = vpop.f32.mrf.mxu1  ;;  %13480 = vmatprep.subr.mxu1 %v14053_v1 }
0x115a   :  { %v13379_v19 = vpop.f32.mrf.mxu0  ;;  %v13444_v20 = vpop.f32.mrf.mxu1 }
0x115c   :  { %v5594_v21 = vpop.f32.mrf.mxu0 }
0x115d   :  { %v5595_v36 = vadd.f32 %v5594_v21, %v5521_v27 }
0x115e   :  { %v13389_v22 = vpop.f32.mrf.mxu0 }
0x1160   :  { %v5740_v23 = vpop.f32.mrf.mxu0 }
0x1161   :  { %v5741_v49 = vadd.f32 %v5740_v23, %v5523_v40 }
0x1162   :  { %v13399_v24 = vpop.f32.mrf.mxu0 }
0x1164   :  { %v5894_v26 = vpop.f32.mrf.mxu0 }
0x1165   :  { %v5895_v28 = vadd.f32 %v5894_v26, %v5821_v25 }
0x1166   :  { %v13409_v32 = vpop.f32.mrf.mxu0 }
0x1167   :  { %13446 = vmatpush3.xpose.msk.msra.mxu0 %vm1016_vm3, %v5895_v28 }
0x1168   :  { %v6040_v37 = vpop.f32.mrf.mxu0  ;;  %13455 = vmatprep.subr.mxu0 %v14053_v1 }
0x1169   :  { %v6041_v41 = vadd.f32 %v6040_v37, %v5823_v33 }
0x116a   :  { %v13419_v44 = vpop.f32.mrf.mxu0  ;;  %13448 = vmatmul.mubr.msk.f32.vlgmr.msra.gmra.mxu0 %vm1016_vm3, %v5595_v36 }
0x116b   :  { %13456 = vmatpush3.xpose.msk.msra.mxu0 %vm1016_vm3, %v6041_v41  ;;  %13457 = vmatprep.mubr.msk.f32.mxu0 %vm14054_vm0, %v14053_v1 }
0x116c   :  { %v6194_v50 = vpop.f32.mrf.mxu0  ;;  %13465 = vmatprep.subr.mxu0 %v14053_v1 }
0x116d   :  { %v6195_v30 = vadd.f32 %v6194_v50, %v6121_v45  ;;  %v6124_v45 = vld [vmem:[#allocation2 + $0x458] sm:$0xff] }
0x116e   :  { %v13429_v53 = vpop.f32.mrf.mxu0  ;;  %13458 = vmatmul.mubr.msk.f32.vlgmr.msra.gmra.mxu0 %vm1016_vm3, %v5741_v49 }
0x116f   :  { %13466 = vmatpush3.msra.mxu0 %v6195_v30  ;;  %13467 = vmatprep.mubr.msk.f32.mxu0 %vm14054_vm0, %v14053_v1  ;;  %v6414_v30 = vadd.f32 %v14665_v18, %v6124_v45  ;;  %v6123_v18 = vld [vmem:[#allocation2 + $0x450] sm:$0xff] }
0x1170   :  { %v14678_v54 = vpop.f32.mrf.mxu0  ;;  %13475 = vmatprep.subr.mxu0 %v14053_v1 }
0x1172   :  { %v13439_v46 = vpop.f32.mrf.mxu0 }
0x1212   :  { %v6565_v56 = vpop.f32.mrf.mxu1 }
0x1213   :  { %v6722_v57 = vmul.f32 0.35355338, %v6565_v56 }
0x1214   :  { %v13454_v58 = vpop.f32.mrf.mxu1 }
0x1215   :  { %v6728_v60 = vsel %vm1016_vm3, %v6722_v57, -inf }
0x1216   :  { %6729 = vmax.xlane.f32.xlu1 %v6728_v60  ;;  %v6717_v61 = vpop.f32.mrf.mxu1 }
0x1217   :  { %v6724_v62 = vmul.f32 0.35355338, %v6717_v61  ;;  %v6341_v61 = vadd.f32 %v14678_v54, %v6123_v18  ;;  %v7061_v54 = vld [vmem:[#allocation2 + $0x460] sm:$0xff] }
0x1218   :  { %v13464_v63 = vpop.f32.mrf.mxu1 }
0x1219   :  { %v6734_v0 = vsel %vm1016_vm3, %v6724_v62, -inf }
0x121a   :  { %6735 = vmax.xlane.f32.xlu1 %v6734_v0  ;;  %v7062_v0 = vld [vmem:[#allocation2 + $0x468] sm:$0xff] }
0x122a   :  { %v6489_v2 = vpop.f32.mrf.mxu0 }
0x122b   :  { %v6721_v3 = vmul.f32 0.35355338, %v6489_v2  ;;  %v7064_v2 = vld [vmem:[#allocation2 + $0x478] sm:$0xff] }
0x122c   :  { %v13449_v5 = vpop.f32.mrf.mxu0 }
0x122d   :  { %v6725_v6 = vsel %vm1016_vm3, %v6721_v3, -inf }
0x122e   :  { %6726 = vmax.xlane.f32.xlu0 %v6725_v6  ;;  %v6641_v7 = vpop.f32.mrf.mxu0 }
0x122f   :  { %v6723_v8 = vmul.f32 0.35355338, %v6641_v7 }
0x1230   :  { %v13459_v9 = vpop.f32.mrf.mxu0 }
0x1231   :  { %v6731_v10 = vsel %vm1016_vm3, %v6723_v8, -inf }
0x1232   :  { %6732 = vmax.xlane.f32.xlu0 %v6731_v10 }
0x129f   :  { %v6730_v11 = vpop.xlane.xlu1 %6729 }
0x12a0   :  { %v6738_v13 = vsub.f32 %v6722_v57, %v6730_v11 }
0x12a2   :  { %v6743_v51 = vmul.f32 1.442695, %v6738_v13 }
0x12a3   :  { %v6736_v14 = vpop.xlane.xlu1 %6735 }
0x12a4   :  { %13927 = vpow2.f32 %v6743_v51  ;;  %v6740_v16 = vsub.f32 %v6724_v62, %v6736_v14 }
0x12a6   :  { %v6747_v19 = vmul.f32 1.442695, %v6740_v16 }
0x12a8   :  { %13929 = vpow2.f32 %v6747_v19 }
0x12b1   :  { %v13928_v20 = vpop.eup %13927 }
0x12b2   :  { %v6752_v21 = vsel %vm1016_vm3, %v13928_v20, 0.0 }
0x12b3   :  { %6753 = vadd.xlane.f32.xlu1 %v6752_v21 }
0x12b5   :  { %v13930_v22 = vpop.eup %13929 }
0x12b6   :  { %v6758_v23 = vsel %vm1016_vm3, %v13930_v22, 0.0 }
0x12b7   :  { %6759 = vadd.xlane.f32.xlu1 %v6758_v23  ;;  %v6727_v24 = vpop.xlane.xlu0 %6726 }
0x12b8   :  { %v6737_v25 = vsub.f32 %v6721_v3, %v6727_v24 }
0x12ba   :  { %v6741_v26 = vmul.f32 1.442695, %v6737_v25 }
0x12bb   :  { %v6733_v27 = vpop.xlane.xlu0 %6732 }
0x12bc   :  { %13931 = vpow2.f32 %v6741_v26  ;;  %v6739_v28 = vsub.f32 %v6723_v8, %v6733_v27  ;;  %v7063_v8 = vld [vmem:[#allocation2 + $0x470] sm:$0xff] }
0x12be   :  { %v6745_v32 = vmul.f32 1.442695, %v6739_v28 }
0x12c0   :  { %13933 = vpow2.f32 %v6745_v32 }
0x12c9   :  { %v13932_v33 = vpop.eup %13931 }
0x12ca   :  { %v6749_v36 = vsel %vm1016_vm3, %v13932_v33, 0.0 }
0x12cb   :  { %6750 = vadd.xlane.f32.xlu0 %v6749_v36 }
0x12cd   :  { %v13934_v37 = vpop.eup %13933 }
0x12ce   :  { %v6755_v40 = vsel %vm1016_vm3, %v13934_v37, 0.0 }
0x12cf   :  { %6756 = vadd.xlane.f32.xlu0 %v6755_v40 }
0x133c   :  { %v6754_v41 = vpop.xlane.xlu1 %6753 }
0x133d   :  { %13935 = vrcp.f32 %v6754_v41 }
0x1340   :  { %v6760_v44 = vpop.xlane.xlu1 %6759 }
0x1341   :  { %13937 = vrcp.f32 %v6760_v44 }
0x134a   :  { %v13936_v49 = vpop.eup %13935 }
0x134b   :  { %v6766_v50 = vmul.f32 %v13936_v49, %v13928_v20  ;;  %v7398_v49 = vld [vmem:[#allocation2 + $0x498] sm:$0xff] }
0x134d   :  { %13473 = vmatmul.mubr.msk.f32.vlgmr.msra.gmra.mxu1 %vm1016_vm3, %v6766_v50  ;;  %v7399_v50 = vld [vmem:[#allocation2 + $0x4a0] sm:$0xff] }
0x134e   :  { %v13938_v53 = vpop.eup %13937  ;;  %13481 = vmatpush3.msra.mxu1 %v6414_v30  ;;  %13482 = vmatprep.mubr.msk.f32.mxu1 %vm14054_vm0, %v14053_v1 }
0x134f   :  { %v6768_v46 = vmul.f32 %v13938_v53, %v13930_v22  ;;  %13490 = vmatprep.subr.mxu1 %v14053_v1 }
0x1351   :  { %13483 = vmatmul.mubr.msk.f32.vlgmr.msra.gmra.mxu1 %vm1016_vm3, %v6768_v46 }
0x1352   :  { %13492 = vmatprep.mubr.msk.f32.mxu1 %vm14054_vm0, %v14053_v1  ;;  %13491 = vmatpush3.msra.mxu1 %v7062_v0 }
0x1353   :  { %13500 = vmatprep.subr.mxu1 %v14053_v1 }
0x1354   :  { %v6751_v56 = vpop.xlane.xlu0 %6750 }
0x1355   :  { %13939 = vrcp.f32 %v6751_v56 }
0x1358   :  { %v6757_v57 = vpop.xlane.xlu0 %6756 }
0x1359   :  { %13941 = vrcp.f32 %v6757_v57 }
0x1362   :  { %v13940_v58 = vpop.eup %13939 }
0x1363   :  { %v6765_v60 = vmul.f32 %v13940_v58, %v13932_v33  ;;  %v12469_v33 = vld [vmem:[#allocation2 + $0x480] ss:$0 sm:$0xff] }
0x1365   :  { %13468 = vmatmul.mubr.msk.f32.vlgmr.msra.gmra.mxu0 %vm1016_vm3, %v6765_v60 }
0x1366   :  { %v13942_v62 = vpop.eup %13941  ;;  %13476 = vmatpush3.msra.mxu0 %v6341_v61  ;;  %13477 = vmatprep.mubr.msk.f32.mxu0 %vm14054_vm0, %v14053_v1  ;;  %v12470_v61 = vld [vmem:[#allocation2 + $0x488] ss:$0 sm:$0xff] }
0x1367   :  { %v6767_v63 = vmul.f32 %v13942_v62, %v13934_v37  ;;  %13485 = vmatprep.subr.mxu0 %v14053_v1 }
0x1369   :  { %13478 = vmatmul.mubr.msk.f32.vlgmr.msra.gmra.mxu0 %vm1016_vm3, %v6767_v63  ;;  %v12471_v63 = vld [vmem:[#allocation2 + $0x490] ss:$0 sm:$0xff] }
0x136a   :  { %13487 = vmatprep.mubr.msk.f32.mxu0 %vm14054_vm0, %v14053_v1  ;;  %13486 = vmatpush3.msra.mxu0 %v7061_v54 }
0x136b   :  { %13495 = vmatprep.subr.mxu0 %v14053_v1 }
0x140d   :  { %v6911_v3 = vpop.f32.mrf.mxu1 }
0x140e   :  { %13493 = vmatmul.mubr.msk.f32.vlgmr.msra.gmra.mxu1 %vm1016_vm3, %v6911_v3  ;;  %v7401_v3 = vld [vmem:[#allocation2 + $0x4b0] sm:$0xff] }
0x140f   :  { %v13474_v5 = vpop.f32.mrf.mxu1  ;;  %13501 = vmatpush3.msra.mxu1 %v7064_v2  ;;  %13502 = vmatprep.mubr.msk.f32.mxu1 %vm14054_vm0, %v14053_v1  ;;  %v7400_v2 = vld [vmem:[#allocation2 + $0x4a8] sm:$0xff] }
0x1410   :  { %13510 = vmatprep.subr.mxu1 %v14053_v1  ;;  %v4318_v5 = vld [vmem:[#allocation2 + $0x4f8] sm:$0xff] }
0x1411   :  { %v7057_v6 = vpop.f32.mrf.mxu1 }
0x1412   :  { %13503 = vmatmul.mubr.msk.f32.vlgmr.msra.gmra.mxu1 %vm1016_vm3, %v7057_v6  ;;  %v4319_v6 = vld [vmem:[#allocation2 + $0x500] sm:$0xff] }
0x1413   :  { %v13484_v7 = vpop.f32.mrf.mxu1  ;;  %13512 = vmatprep.mubr.msk.f32.mxu1 %vm14054_vm0, %v14053_v1  ;;  %13511 = vmatpush3.xpose.msk.msra.mxu1 %vm39_vm1, %v7399_v50 }
0x1414   :  { %13520 = vmatprep.subr.mxu1 %v14053_v1  ;;  %v4395_v7 = vadd.f32 %v14623_v29, %v4318_v5  ;;  %v7402_v29 = vld [vmem:[#allocation2 + $0x4b8] sm:$0xff] }
0x1425   :  { %v6838_v9 = vpop.f32.mrf.mxu0 }
0x1426   :  { %13488 = vmatmul.mubr.msk.f32.vlgmr.msra.gmra.mxu0 %vm1016_vm3, %v6838_v9  ;;  %v4320_v9 = vld [vmem:[#allocation2 + $0x508] sm:$0xff] }
0x1427   :  { %v13469_v10 = vpop.f32.mrf.mxu0  ;;  %13496 = vmatpush3.msra.mxu0 %v7063_v8  ;;  %13497 = vmatprep.mubr.msk.f32.mxu0 %vm14054_vm0, %v14053_v1  ;;  %v4468_v8 = vadd.f32 %v14627_v34, %v4319_v6  ;;  %v7403_v34 = vld [vmem:[#allocation2 + $0x4c0] sm:$0xff] }
0x1428   :  { %13505 = vmatprep.subr.mxu0 %v14053_v1  ;;  %v4321_v10 = vld [vmem:[#allocation2 + $0x510] sm:$0xff] }
0x1429   :  { %v6984_v11 = vpop.f32.mrf.mxu0 }
0x142a   :  { %13498 = vmatmul.mubr.msk.f32.vlgmr.msra.gmra.mxu0 %vm1016_vm3, %v6984_v11 }
0x142b   :  { %v13479_v13 = vpop.f32.mrf.mxu0  ;;  %13507 = vmatprep.mubr.msk.f32.mxu0 %vm14054_vm0, %v14053_v1  ;;  %13506 = vmatpush3.xpose.msk.msra.mxu0 %vm39_vm1, %v7398_v49 }
0x142c   :  { %13515 = vmatprep.subr.mxu0 %v14053_v1 }
0x14ce   :  { %v7207_v51 = vpop.f32.mrf.mxu1 }
0x14cf   :  { %v7358_v23 = vsel %vm39_vm1, %v7207_v51, 0.0 }
0x14d0   :  { %v13494_v14 = vpop.f32.mrf.mxu1 }
0x14d2   :  { %v7353_v16 = vpop.f32.mrf.mxu1 }
0x14d3   :  { %v7362_v32 = vsel %vm39_vm1, %v7353_v16, 0.0  ;;  %v4541_v16 = vadd.f32 %v14631_v38, %v4320_v9 }
0x14d4   :  { %v13504_v19 = vpop.f32.mrf.mxu1 }
0x14d5   :  { %v4614_v19 = vadd.f32 %v14635_v42, %v4321_v10 }
0x14e6   :  { %v7134_v20 = vpop.f32.mrf.mxu0 }
0x14e7   :  { %v7357_v21 = vsel %vm39_vm1, %v7134_v20, 0.0 }
0x14e8   :  { %v13489_v22 = vpop.f32.mrf.mxu0  ;;  %v7359_v24 = vadd.f32 %v7358_v23, %v7357_v21  ;;  %v7405_v23 = vld [vmem:[#allocation2 + $0x4d0] sm:$0xff] }
0x14e9   :  { %v7404_v22 = vld [vmem:[#allocation2 + $0x4c8] sm:$0xff] }
0x14ea   :  { %v7280_v25 = vpop.f32.mrf.mxu0 }
0x14eb   :  { %v7360_v26 = vsel %vm39_vm1, %v7280_v25, 0.0  ;;  %v4622_v25 = vld [vmem:[#allocation2 + $0x540] sm:$0xff] }
0x14ec   :  { %v7361_v27 = vadd.f32 %v7360_v26, %v7359_v24  ;;  %v13499_v28 = vpop.f32.mrf.mxu0  ;;  %v4621_v24 = vld [vmem:[#allocation2 + $0x538] sm:$0xff] }
0x14ed   :  { %v4695_v42 = vadd.f32 %v14639_v47, %v4621_v24  ;;  %v4623_v24 = vld [vmem:[#allocation2 + $0x548] sm:$0xff] }
0x14ee   :  { %v7363_v36 = vadd.f32 %v7362_v32, %v7361_v27  ;;  %v4768_v32 = vadd.f32 %v14643_v52, %v4622_v25 }
0x14f0   :  { %v7369_v37 = vadd.f32 %v12469_v33, %v7363_v36 }
0x14f2   :  { %v7370_v40 = vadd.f32 %v7369_v37, %v14095_v15 }
0x14f4   :  { %v7371_v41 = vsel %vm39_vm1, %v7370_v40, 0.0  ;;  %v7375_v44 = vmul.f32 %v7370_v40, %v7370_v40 }
0x14f5   :  { %7372 = vadd.xlane.f32.xlu0 %v7371_v41 }
0x14f6   :  { %v7376_v45 = vsel %vm39_vm1, %v7375_v44, 0.0 }
0x14f7   :  { %7377 = vadd.xlane.f32.xlu1 %v7376_v45 }
0x157e   :  { %v7373_v30 = vpop.xlane.xlu0 %7372 }
0x157f   :  { %v7374_v53 = vmul.f32 0.03125, %v7373_v30 }
0x1580   :  { %v7378_v15 = vpop.xlane.xlu1 %7377 }
0x1581   :  { %v7380_v46 = vmul.f32 %v7374_v53, %v7374_v53  ;;  %v7379_v56 = vmul.f32 0.03125, %v7378_v15  ;;  %v7382_v58 = vsub.f32 %v7370_v40, %v7374_v53 }
0x1583   :  { %v7381_v57 = vsub.f32 %v7379_v56, %v7380_v46 }
0x1585   :  { %v7383_v18 = vadd.f32 1e-05, %v7381_v57 }
0x1587   :  { %13943 = vrsqrt.f32 %v7383_v18 }
0x1594   :  { %v13944_v60 = vpop.eup %13943 }
0x1595   :  { %v7385_v62 = vmul.f32 %v13944_v60, %v7382_v58 }
0x1597   :  { %v7391_v0 = vmul.f32 %v12470_v61, %v7385_v62 }
0x1599   :  { %v14732_v54 = vadd.f32 %v12471_v63, %v7391_v0 }
0x159b   :  { %13508 = vmatmul.mubr.msk.f32.vlgmr.msra.gmra.mxu0 %vm39_vm1, %v14732_v54  ;;  %13513 = vmatmul.mubr.msk.f32.vlgmr.msra.gmra.mxu1 %vm39_vm1, %v14732_v54 }
0x159c   :  { %13516 = vmatpush3.xpose.msk.msra.mxu0 %vm39_vm1, %v7400_v2  ;;  %13521 = vmatpush3.xpose.msk.msra.mxu1 %vm39_vm1, %v7401_v3 }
0x159d   :  { %13517 = vmatprep.mubr.msk.f32.mxu0 %vm14054_vm0, %v14053_v1  ;;  %13522 = vmatprep.mubr.msk.f32.mxu1 %vm14054_vm0, %v14053_v1 }
0x159e   :  { %13525 = vmatprep.subr.mxu0 %v14053_v1  ;;  %13530 = vmatprep.subr.mxu1 %v14053_v1 }
0x159f   :  { %13518 = vmatmul.mubr.msk.f32.vlgmr.msra.gmra.mxu0 %vm39_vm1, %v14732_v54  ;;  %13523 = vmatmul.mubr.msk.f32.vlgmr.msra.gmra.mxu1 %vm39_vm1, %v14732_v54 }
0x15a0   :  { %13526 = vmatpush3.xpose.msk.msra.mxu0 %vm1016_vm3, %v4395_v7  ;;  %13531 = vmatpush3.xpose.msk.msra.mxu1 %vm1016_vm3, %v4468_v8 }
0x15a1   :  { %13527 = vmatprep.mubr.msk.f32.mxu0 %vm14054_vm0, %v14053_v1  ;;  %13532 = vmatprep.mubr.msk.f32.mxu1 %vm14054_vm0, %v14053_v1 }
0x15a2   :  { %13535 = vmatprep.subr.mxu0 %v14053_v1  ;;  %13540 = vmatprep.subr.mxu1 %v14053_v1 }
0x165b   :  { %v7478_v11 = vpop.f32.mrf.mxu0  ;;  %v7551_v13 = vpop.f32.mrf.mxu1 }
0x165c   :  { %v7479_v51 = vadd.f32 %v7478_v11, %v7402_v29  ;;  %v7552_v14 = vadd.f32 %v7551_v13, %v7403_v34 }
0x165d   :  { %v13509_v20 = vpop.f32.mrf.mxu0  ;;  %v13514_v21 = vpop.f32.mrf.mxu1 }
0x165e   :  { %13528 = vmatmul.mubr.msk.f32.vlgmr.msra.gmra.mxu0 %vm1016_vm3, %v7479_v51  ;;  %13533 = vmatmul.mubr.msk.f32.vlgmr.msra.gmra.mxu1 %vm1016_vm3, %v7552_v14 }
0x165f   :  { %13536 = vmatpush3.xpose.msk.msra.mxu0 %vm1016_vm3, %v4541_v16  ;;  %13541 = vmatpush3.xpose.msk.msra.mxu1 %vm1016_vm3, %v4614_v19  ;;  %v7624_v26 = vpop.f32.mrf.mxu0  ;;  %v7697_v27 = vpop.f32.mrf.mxu1 }
0x1660   :  { %v7625_v28 = vadd.f32 %v7624_v26, %v7404_v22  ;;  %v7698_v38 = vadd.f32 %v7697_v27, %v7405_v23  ;;  %13537 = vmatprep.mubr.msk.f32.mxu0 %vm14054_vm0, %v14053_v1  ;;  %13542 = vmatprep.mubr.msk.f32.mxu1 %vm14054_vm0, %v14053_v1  ;;  %v4624_v22 = vld [vmem:[#allocation2 + $0x550] sm:$0xff] }
0x1661   :  { %v13519_v33 = vpop.f32.mrf.mxu0  ;;  %v13524_v36 = vpop.f32.mrf.mxu1  ;;  %13545 = vmatprep.subr.mxu0 %v14053_v1  ;;  %13550 = vmatprep.subr.mxu1 %v14053_v1  ;;  %v4914_v27 = vadd.f32 %v14625_v31, %v4624_v22  ;;  %v8345_v31 = vld [vmem:[#allocation2 + $0x558] sm:$0xff]  ;;  %v8774_v22 = vld [vmem:[#allocation2 + $0x600] sm:$0xff] }
0x1662   :  { %13538 = vmatmul.mubr.msk.f32.vlgmr.msra.gmra.mxu0 %vm1016_vm3, %v7625_v28  ;;  %13543 = vmatmul.mubr.msk.f32.vlgmr.msra.gmra.mxu1 %vm1016_vm3, %v7698_v38  ;;  %v4841_v38 = vadd.f32 %v14645_v55, %v4623_v24  ;;  %v8346_v55 = vld [vmem:[#allocation2 + $0x560] sm:$0xff]  ;;  %v8772_v24 = vld [vmem:[#allocation2 + $0x5f0] sm:$0xff] }
0x1663   :  { %13546 = vmatpush3.msra.mxu0 %v4695_v42  ;;  %13551 = vmatpush3.msra.mxu1 %v4768_v32 }
0x1664   :  { %13547 = vmatprep.mubr.msk.f32.mxu0 %vm14054_vm0, %v14053_v1  ;;  %13552 = vmatprep.mubr.msk.f32.mxu1 %vm14054_vm0, %v14053_v1 }
0x1665   :  { %13555 = vmatprep.subr.mxu0 %v14053_v1  ;;  %13560 = vmatprep.subr.mxu1 %v14053_v1 }
0x171e   :  { %v7773_v47 = vpop.f32.mrf.mxu0  ;;  %v7849_v52 = vpop.f32.mrf.mxu1 }
0x171f   :  { %v8005_v37 = vmul.f32 0.35355338, %v7773_v47  ;;  %v8006_v40 = vmul.f32 0.35355338, %v7849_v52  ;;  %v8348_v47 = vld [vmem:[#allocation2 + $0x570] sm:$0xff] }
0x1720   :  { %v13529_v41 = vpop.f32.mrf.mxu0  ;;  %v13534_v44 = vpop.f32.mrf.mxu1 }
0x1721   :  { %v8012_v45 = vsel %vm1016_vm3, %v8006_v40, -inf  ;;  %v8009_v49 = vsel %vm1016_vm3, %v8005_v37, -inf }
0x1722   :  { %8013 = vmax.xlane.f32.xlu1 %v8012_v45  ;;  %v8001_v50 = vpop.f32.mrf.mxu1  ;;  %8010 = vmax.xlane.f32.xlu0 %v8009_v49  ;;  %v7925_v30 = vpop.f32.mrf.mxu0 }
0x1723   :  { %v8008_v53 = vmul.f32 0.35355338, %v8001_v50  ;;  %v8007_v15 = vmul.f32 0.35355338, %v7925_v30 }
0x1724   :  { %v13539_v46 = vpop.f32.mrf.mxu0  ;;  %v13544_v56 = vpop.f32.mrf.mxu1 }
0x1725   :  { %v8018_v57 = vsel %vm1016_vm3, %v8008_v53, -inf  ;;  %v8015_v18 = vsel %vm1016_vm3, %v8007_v15, -inf }
0x1726   :  { %8019 = vmax.xlane.f32.xlu1 %v8018_v57  ;;  %8016 = vmax.xlane.f32.xlu0 %v8015_v18 }
0x17ab   :  { %v8014_v58 = vpop.xlane.xlu1 %8013  ;;  %v8011_v60 = vpop.xlane.xlu0 %8010 }
0x17ac   :  { %v8022_v61 = vsub.f32 %v8006_v40, %v8014_v58  ;;  %v8021_v62 = vsub.f32 %v8005_v37, %v8011_v60  ;;  %v8347_v37 = vld [vmem:[#allocation2 + $0x568] sm:$0xff] }
0x17ae   :  { %v8027_v63 = vmul.f32 1.442695, %v8022_v61  ;;  %v8025_v0 = vmul.f32 1.442695, %v8021_v62 }
0x17af   :  { %v8020_v2 = vpop.xlane.xlu1 %8019  ;;  %v8017_v3 = vpop.xlane.xlu0 %8016 }
0x17b0   :  { %13945 = vpow2.f32 %v8027_v63  ;;  %v8024_v5 = vsub.f32 %v8008_v53, %v8020_v2  ;;  %v8023_v6 = vsub.f32 %v8007_v15, %v8017_v3 }
0x17b1   :  { %13947 = vpow2.f32 %v8025_v0 }
0x17b2   :  { %v8031_v7 = vmul.f32 1.442695, %v8024_v5  ;;  %v8029_v8 = vmul.f32 1.442695, %v8023_v6  ;;  %v12496_v5 = vld [vmem:[#allocation2 + $0x578] ss:$0 sm:$0xff] }
0x17b4   :  { %13949 = vpow2.f32 %v8031_v7 }
0x17b5   :  { %13951 = vpow2.f32 %v8029_v8 }
0x17bd   :  { %v13946_v29 = vpop.eup %13945 }
0x17be   :  { %v13948_v34 = vpop.eup %13947  ;;  %v8036_v9 = vsel %vm1016_vm3, %v13946_v29, 0.0 }
0x17bf   :  { %8037 = vadd.xlane.f32.xlu1 %v8036_v9  ;;  %v8033_v10 = vsel %vm1016_vm3, %v13948_v34, 0.0 }
0x17c0   :  { %8034 = vadd.xlane.f32.xlu0 %v8033_v10  ;;  %v8685_v10 = vld [vmem:[#allocation2 + $0x5a8] sm:$0xff] }
0x17c1   :  { %v13950_v11 = vpop.eup %13949 }
0x17c2   :  { %v13952_v13 = vpop.eup %13951  ;;  %v8042_v51 = vsel %vm1016_vm3, %v13950_v11, 0.0 }
0x17c3   :  { %8043 = vadd.xlane.f32.xlu1 %v8042_v51  ;;  %v8039_v14 = vsel %vm1016_vm3, %v13952_v13, 0.0  ;;  %v8780_v51 = vld [vmem:[#allocation2 + $0x630] sm:$0xff] }
0x17c4   :  { %8040 = vadd.xlane.f32.xlu0 %v8039_v14  ;;  %v8779_v14 = vld [vmem:[#allocation2 + $0x628] sm:$0xff] }
0x1848   :  { %v8038_v16 = vpop.xlane.xlu1 %8037 }
0x1849   :  { %13953 = vrcp.f32 %v8038_v16  ;;  %v8035_v19 = vpop.xlane.xlu0 %8034  ;;  %v8778_v16 = vld [vmem:[#allocation2 + $0x620] sm:$0xff] }
0x184a   :  { %13955 = vrcp.f32 %v8035_v19  ;;  %v8777_v19 = vld [vmem:[#allocation2 + $0x618] sm:$0xff] }
0x184c   :  { %v8044_v20 = vpop.xlane.xlu1 %8043 }
0x184d   :  { %13957 = vrcp.f32 %v8044_v20  ;;  %v8041_v21 = vpop.xlane.xlu0 %8040  ;;  %v8776_v20 = vld [vmem:[#allocation2 + $0x610] sm:$0xff] }
0x184e   :  { %13959 = vrcp.f32 %v8041_v21  ;;  %v8775_v21 = vld [vmem:[#allocation2 + $0x608] sm:$0xff] }
0x1856   :  { %v13954_v23 = vpop.eup %13953 }
0x1857   :  { %v13956_v25 = vpop.eup %13955  ;;  %v8050_v26 = vmul.f32 %v13954_v23, %v13946_v29  ;;  %v8773_v23 = vld [vmem:[#allocation2 + $0x5f8] sm:$0xff] }
0x1858   :  { %v8049_v28 = vmul.f32 %v13956_v25, %v13948_v34  ;;  %v8771_v25 = vld [vmem:[#allocation2 + $0x5e8] sm:$0xff] }
0x1859   :  { %13553 = vmatmul.mubr.msk.f32.vlgmr.msra.gmra.mxu1 %vm1016_vm3, %v8050_v26  ;;  %v8770_v26 = vld [vmem:[#allocation2 + $0x5e0] sm:$0xff] }
0x185a   :  { %v13958_v42 = vpop.eup %13957  ;;  %13548 = vmatmul.mubr.msk.f32.vlgmr.msra.gmra.mxu0 %vm1016_vm3, %v8049_v28  ;;  %13561 = vmatpush3.msra.mxu1 %v4914_v27  ;;  %v8769_v27 = vld [vmem:[#allocation2 + $0x5d8] sm:$0xff]  ;;  %v8768_v28 = vld [vmem:[#allocation2 + $0x5d0] sm:$0xff] }
0x185b   :  { %v13960_v32 = vpop.eup %13959  ;;  %13556 = vmatpush3.msra.mxu0 %v4841_v38  ;;  %13557 = vmatprep.mubr.msk.f32.mxu0 %vm14054_vm0, %v14053_v1  ;;  %v8052_v33 = vmul.f32 %v13958_v42, %v13950_v11  ;;  %v8684_v11 = vld [vmem:[#allocation2 + $0x5a0] sm:$0xff] }
0x185c   :  { %v8051_v36 = vmul.f32 %v13960_v32, %v13952_v13  ;;  %13562 = vmatprep.mubr.msk.f32.mxu1 %vm14054_vm0, %v14053_v1  ;;  %13565 = vmatprep.subr.mxu0 %v14053_v1  ;;  %v8683_v13 = vld [vmem:[#allocation2 + $0x598] sm:$0xff] }
0x185d   :  { %13563 = vmatmul.mubr.msk.f32.vlgmr.msra.gmra.mxu1 %vm1016_vm3, %v8052_v33  ;;  %13570 = vmatprep.subr.mxu1 %v14053_v1 }
0x185e   :  { %13558 = vmatmul.mubr.msk.f32.vlgmr.msra.gmra.mxu0 %vm1016_vm3, %v8051_v36  ;;  %13572 = vmatprep.mubr.msk.f32.mxu1 %vm14054_vm0, %v14053_v1 }
0x185f   :  { %13566 = vmatpush3.msra.mxu0 %v8345_v31  ;;  %13567 = vmatprep.mubr.msk.f32.mxu0 %vm14054_vm0, %v14053_v1 }
0x1860   :  { %13575 = vmatprep.subr.mxu0 %v14053_v1  ;;  %13571 = vmatpush3.msra.mxu1 %v8346_v55 }
0x1861   :  { %13580 = vmatprep.subr.mxu1 %v14053_v1 }
0x1919   :  { %v8195_v52 = vpop.f32.mrf.mxu1 }
0x191a   :  { %v8122_v40 = vpop.f32.mrf.mxu0  ;;  %13573 = vmatmul.mubr.msk.f32.vlgmr.msra.gmra.mxu1 %vm1016_vm3, %v8195_v52 }
0x191b   :  { %13568 = vmatmul.mubr.msk.f32.vlgmr.msra.gmra.mxu0 %vm1016_vm3, %v8122_v40  ;;  %v13554_v41 = vpop.f32.mrf.mxu1  ;;  %13581 = vmatpush3.msra.mxu1 %v8348_v47 }
0x191c   :  { %v13549_v44 = vpop.f32.mrf.mxu0  ;;  %13576 = vmatpush3.msra.mxu0 %v8347_v37  ;;  %13577 = vmatprep.mubr.msk.f32.mxu0 %vm14054_vm0, %v14053_v1  ;;  %v12497_v37 = vld [vmem:[#allocation2 + $0x580] ss:$0 sm:$0xff]  ;;  %v12498_v41 = vld [vmem:[#allocation2 + $0x588] ss:$0 sm:$0xff] }
0x191d   :  { %v8341_v45 = vpop.f32.mrf.mxu1  ;;  %13582 = vmatprep.mubr.msk.f32.mxu1 %vm14054_vm0, %v14053_v1  ;;  %13585 = vmatprep.subr.mxu0 %v14053_v1 }
0x191e   :  { %v8268_v49 = vpop.f32.mrf.mxu0  ;;  %13583 = vmatmul.mubr.msk.f32.vlgmr.msra.gmra.mxu1 %vm1016_vm3, %v8341_v45  ;;  %13596 = vmatprep.subr.mxu1 %v14053_v1 }
0x191f   :  { %13578 = vmatmul.mubr.msk.f32.vlgmr.msra.gmra.mxu0 %vm1016_vm3, %v8268_v49  ;;  %v13564_v50 = vpop.f32.mrf.mxu1  ;;  %13628 = vmatprep.mubr.msk.f32.mxu1 %vm14054_vm0, %v14053_v1  ;;  %v8767_v49 = vld [vmem:[#allocation2 + $0x5c8] sm:$0xff] }
0x1920   :  { %v13559_v30 = vpop.f32.mrf.mxu0  ;;  %13593 = vmatprep.mubr.msk.f32.mxu0 %vm14054_vm0, %v14053_v1  ;;  %13586 = vmatpush3.msra.mxu0 %v8685_v10  ;;  %v8766_v50 = vld [vmem:[#allocation2 + $0x5c0] sm:$0xff] }
0x1921   :  { %13587 = vmatprep.subr.mxu0 %v14053_v1  ;;  %13597 = vmatpush3.msra.mxu1 %v8780_v51  ;;  %v8765_v30 = vld [vmem:[#allocation2 + $0x5b8] sm:$0xff] }
0x1922   :  { %13588 = vmatpush3.msra.mxu0 %v8684_v11  ;;  %13598 = vmatprep.subr.mxu1 %v14053_v1 }
0x1923   :  { %13589 = vmatprep.subr.mxu0 %v14053_v1  ;;  %13599 = vmatpush3.msra.mxu1 %v8779_v14  ;;  %v12503_v14 = vld [vmem:[#allocation2 + $0x648] ss:$0 sm:$0xff] }
0x1924   :  { %13590 = vmatpush3.msra.mxu0 %v8683_v13  ;;  %13600 = vmatprep.subr.mxu1 %v14053_v1 }
0x1925   :  { %13591 = vmatprep.subr.mxu0 %v14053_v1  ;;  %13601 = vmatpush3.msra.mxu1 %v8778_v16 }
0x1926   :  { %13602 = vmatprep.subr.mxu1 %v14053_v1 }
0x1927   :  { %13603 = vmatpush3.msra.mxu1 %v8777_v19 }
0x1928   :  { %13604 = vmatprep.subr.mxu1 %v14053_v1 }
0x1929   :  { %13605 = vmatpush3.msra.mxu1 %v8776_v20  ;;  %v8885_v20 = vld [vmem:[#allocation2 + $0x658] sm:$0xff] }
0x192a   :  { %13606 = vmatprep.subr.mxu1 %v14053_v1 }
0x192b   :  { %13607 = vmatpush3.msra.mxu1 %v8775_v21  ;;  %v9488_v21 = vld [vmem:[#allocation2 + $0x6d8] sm:$0xff] }
0x192c   :  { %13608 = vmatprep.subr.mxu1 %v14053_v1 }
0x192d   :  { %13609 = vmatpush3.msra.mxu1 %v8774_v22  ;;  %v8886_v22 = vld [vmem:[#allocation2 + $0x660] sm:$0xff] }
0x192e   :  { %13610 = vmatprep.subr.mxu1 %v14053_v1 }
0x192f   :  { %13611 = vmatpush3.msra.mxu1 %v8773_v23  ;;  %v9490_v23 = vld [vmem:[#allocation2 + $0x6e8] sm:$0xff] }
0x1930   :  { %13612 = vmatprep.subr.mxu1 %v14053_v1 }
0x1931   :  { %13613 = vmatpush3.msra.mxu1 %v8772_v24  ;;  %v8887_v24 = vld [vmem:[#allocation2 + $0x668] sm:$0xff] }
0x1932   :  { %13614 = vmatprep.subr.mxu1 %v14053_v1 }
0x1933   :  { %13615 = vmatpush3.msra.mxu1 %v8771_v25  ;;  %v9187_v25 = vld [vmem:[#allocation2 + $0x690] sm:$0xff] }
0x1934   :  { %13616 = vmatprep.subr.mxu1 %v14053_v1 }
0x1935   :  { %13617 = vmatpush3.msra.mxu1 %v8770_v26  ;;  %v9188_v26 = vld [vmem:[#allocation2 + $0x698] sm:$0xff] }
0x1936   :  { %13618 = vmatprep.subr.mxu1 %v14053_v1 }
0x1937   :  { %13619 = vmatpush3.msra.mxu1 %v8769_v27  ;;  %v9189_v27 = vld [vmem:[#allocation2 + $0x6a0] sm:$0xff] }
0x1938   :  { %13620 = vmatprep.subr.mxu1 %v14053_v1 }
0x1939   :  { %13621 = vmatpush3.msra.mxu1 %v8768_v28  ;;  %v9487_v28 = vld [vmem:[#allocation2 + $0x6d0] sm:$0xff] }
0x193a   :  { %13622 = vmatprep.subr.mxu1 %v14053_v1 }
0x193b   :  { %13623 = vmatpush3.msra.mxu1 %v8767_v49 }
0x193c   :  { %13624 = vmatprep.subr.mxu1 %v14053_v1 }
0x193d   :  { %13625 = vmatpush3.msra.mxu1 %v8766_v50  ;;  %v9191_v50 = vld [vmem:[#allocation2 + $0x6b0] sm:$0xff] }
0x193e   :  { %13626 = vmatprep.subr.mxu1 %v14053_v1 }
0x193f   :  { %13627 = vmatpush3.msra.mxu1 %v8765_v30 }
0x1940   :  { %13666 = vmatprep.subr.mxu1 %v14053_v1 }
0x19da   :  { %v8491_v53 = vpop.f32.mrf.mxu1 }
0x19db   :  { %v8418_v15 = vpop.f32.mrf.mxu0  ;;  %v8642_v56 = vsel %vm39_vm1, %v8491_v53, 0.0  ;;  %v12499_v53 = vld [vmem:[#allocation2 + $0x5b0] ss:$0 sm:$0xff] }
0x19dc   :  { %v8641_v46 = vsel %vm39_vm1, %v8418_v15, 0.0  ;;  %v13574_v57 = vpop.f32.mrf.mxu1 }
0x19dd   :  { %v13569_v18 = vpop.f32.mrf.mxu0  ;;  %v8643_v60 = vadd.f32 %v8642_v56, %v8641_v46 }
0x19de   :  { %v8637_v58 = vpop.f32.mrf.mxu1  ;;  %v12501_v18 = vld [vmem:[#allocation2 + $0x638] ss:$0 sm:$0xff] }
0x19df   :  { %v8564_v61 = vpop.f32.mrf.mxu0  ;;  %v8646_v3 = vsel %vm39_vm1, %v8637_v58, 0.0 }
0x19e0   :  { %v8644_v62 = vsel %vm39_vm1, %v8564_v61, 0.0  ;;  %v13584_v63 = vpop.f32.mrf.mxu1 }
0x19e1   :  { %v8645_v0 = vadd.f32 %v8644_v62, %v8643_v60  ;;  %v13579_v2 = vpop.f32.mrf.mxu0 }
0x19e3   :  { %v8647_v6 = vadd.f32 %v8646_v3, %v8645_v0  ;;  %v8884_v3 = vld [vmem:[#allocation2 + $0x650] sm:$0xff] }
0x19e5   :  { %v8653_v7 = vadd.f32 %v12496_v5, %v8647_v6  ;;  %v9190_v5 = vld [vmem:[#allocation2 + $0x6a8] sm:$0xff] }
0x19e7   :  { %v14827_v8 = vadd.f32 %v8653_v7, %v14732_v54  ;;  %v8682_v54 = vld [vmem:[#allocation2 + $0x590] sm:$0xff] }
0x19e8   :  { %13592 = vmatpush3.msra.mxu0 %v8682_v54  ;;  %v12502_v54 = vld [vmem:[#allocation2 + $0x640] ss:$0 sm:$0xff] }
0x19e9   :  { %v8655_v29 = vsel %vm39_vm1, %v14827_v8, 0.0  ;;  %v8659_v34 = vmul.f32 %v14827_v8, %v14827_v8  ;;  %13631 = vmatprep.subr.mxu0 %v14053_v1 }
0x19ea   :  { %8656 = vadd.xlane.f32.xlu0 %v8655_v29 }
0x19eb   :  { %v8660_v9 = vsel %vm39_vm1, %v8659_v34, 0.0 }
0x19ec   :  { %8661 = vadd.xlane.f32.xlu1 %v8660_v9 }
0x1a73   :  { %v8657_v38 = vpop.xlane.xlu0 %8656 }
0x1a74   :  { %v8658_v42 = vmul.f32 0.03125, %v8657_v38  ;;  %v9489_v38 = vld [vmem:[#allocation2 + $0x6e0] sm:$0xff] }
0x1a75   :  { %v8662_v32 = vpop.xlane.xlu1 %8661 }
0x1a76   :  { %v8664_v33 = vmul.f32 %v8658_v42, %v8658_v42  ;;  %v8663_v36 = vmul.f32 0.03125, %v8662_v32  ;;  %v8666_v47 = vsub.f32 %v14827_v8, %v8658_v42 }
0x1a78   :  { %v8665_v31 = vsub.f32 %v8663_v36, %v8664_v33 }
0x1a7a   :  { %v8667_v55 = vadd.f32 1e-05, %v8665_v31 }
0x1a7c   :  { %13961 = vrsqrt.f32 %v8667_v55 }
0x1a89   :  { %v13962_v52 = vpop.eup %13961 }
0x1a8a   :  { %v8669_v40 = vmul.f32 %v13962_v52, %v8666_v47 }
0x1a8c   :  { %v8675_v44 = vmul.f32 %v12497_v37, %v8669_v40 }
0x1a8e   :  { %v8681_v45 = vadd.f32 %v12498_v41, %v8675_v44 }
0x1a90   :  { %13594 = vmatmul.mubr.msk.f32.vlgmr.msra.gmra.mxu0 %vm39_vm1, %v8681_v45 }
0x1a91   :  { %13633 = vmatprep.mubr.msk.f32.mxu0 %vm14054_vm0, %v14053_v1  ;;  %13632 = vmatpush3.xpose.msk.msra.mxu0 %vm39_vm1, %v8884_v3 }
0x1a92   :  { %13636 = vmatprep.subr.mxu0 %v14053_v1 }
0x1b50   :  { %v8760_v15 = vpop.f32.mrf.mxu0 }
0x1b51   :  { %v8761_v46 = vadd.f32 %v12499_v53, %v8760_v15  ;;  %v8888_v53 = vld [vmem:[#allocation2 + $0x670] sm:$0xff] }
0x1b52   :  { %v13595_v56 = vpop.f32.mrf.mxu0 }
0x1b53   :  { %v8764_v57 = vmax.f32 %v8761_v46, 0.0  ;;  %v9192_v56 = vld [vmem:[#allocation2 + $0x6b8] sm:$0xff] }
0x1b55   :  { %13629 = vmatmul.mubr.f32.vlgmr.msra.gmra.mxu1 %v8764_v57 }
0x1b56   :  { %13668 = vmatprep.mubr.msk.f32.mxu1 %vm14054_vm0, %v14053_v1  ;;  %13667 = vmatpush3.xpose.msk.msra.mxu1 %vm39_vm1, %v9190_v5  ;;  %v8890_v5 = vld [vmem:[#allocation2 + $0x680] sm:$0xff] }
0x1b57   :  { %13676 = vmatprep.subr.mxu1 %v14053_v1 }
0x1c15   :  { %v8852_v58 = vpop.f32.mrf.mxu1 }
0x1c16   :  { %v8853_v60 = vadd.f32 %v12501_v18, %v8852_v58  ;;  %v8889_v58 = vld [vmem:[#allocation2 + $0x678] sm:$0xff] }
0x1c17   :  { %v13630_v61 = vpop.f32.mrf.mxu1 }
0x1c18   :  { %v8856_v62 = vadd.f32 %v8853_v60, %v8681_v45  ;;  %v9194_v61 = vld [vmem:[#allocation2 + $0x6c8] sm:$0xff] }
0x1c1a   :  { %v8857_v63 = vsel %vm39_vm1, %v8856_v62, 0.0  ;;  %v8861_v0 = vmul.f32 %v8856_v62, %v8856_v62 }
0x1c1b   :  { %8858 = vadd.xlane.f32.xlu0 %v8857_v63  ;;  %v9193_v63 = vld [vmem:[#allocation2 + $0x6c0] sm:$0xff] }
0x1c1c   :  { %v8862_v2 = vsel %vm39_vm1, %v8861_v0, 0.0 }
0x1c1d   :  { %8863 = vadd.xlane.f32.xlu1 %v8862_v2 }
0x1ca4   :  { %v8859_v6 = vpop.xlane.xlu0 %8858 }
0x1ca5   :  { %v8860_v7 = vmul.f32 0.03125, %v8859_v6  ;;  %v8891_v6 = vld [vmem:[#allocation2 + $0x688] sm:$0xff] }
0x1ca6   :  { %v8864_v8 = vpop.xlane.xlu1 %8863 }
0x1ca7   :  { %v8866_v29 = vmul.f32 %v8860_v7, %v8860_v7  ;;  %v8865_v34 = vmul.f32 0.03125, %v8864_v8  ;;  %v8868_v11 = vsub.f32 %v8856_v62, %v8860_v7  ;;  %v9492_v8 = vld [vmem:[#allocation2 + $0x6f8] sm:$0xff] }
0x1ca9   :  { %v8867_v9 = vsub.f32 %v8865_v34, %v8866_v29  ;;  %v9491_v34 = vld [vmem:[#allocation2 + $0x6f0] sm:$0xff] }
0x1cab   :  { %v8869_v10 = vadd.f32 1e-05, %v8867_v9 }
0x1cad   :  { %13963 = vrsqrt.f32 %v8869_v10 }
0x1cba   :  { %v13964_v13 = vpop.eup %13963 }
0x1cbb   :  { %v8871_v51 = vmul.f32 %v13964_v13, %v8868_v11 }
0x1cbd   :  { %v8877_v16 = vmul.f32 %v12502_v54, %v8871_v51 }
0x1cbf   :  { %v14866_v19 = vadd.f32 %v12503_v14, %v8877_v16 }
0x1cc1   :  { %13634 = vmatmul.mubr.msk.f32.vlgmr.msra.gmra.mxu0 %vm39_vm1, %v14866_v19  ;;  %13669 = vmatmul.mubr.msk.f32.vlgmr.msra.gmra.mxu1 %vm39_vm1, %v14866_v19 }
0x1cc2   :  { %13637 = vmatpush3.xpose.msk.msra.mxu0 %vm39_vm1, %v8885_v20  ;;  %13677 = vmatpush3.xpose.msk.msra.mxu1 %vm39_vm1, %v9488_v21 }
0x1cc3   :  { %13638 = vmatprep.mubr.msk.f32.mxu0 %vm14054_vm0, %v14053_v1  ;;  %13678 = vmatprep.mubr.msk.f32.mxu1 %vm14054_vm0, %v14053_v1 }
0x1cc4   :  { %13641 = vmatprep.subr.mxu0 %v14053_v1  ;;  %13686 = vmatprep.subr.mxu1 %v14053_v1 }
0x1cc5   :  { %13639 = vmatmul.mubr.msk.f32.vlgmr.msra.gmra.mxu0 %vm39_vm1, %v14866_v19  ;;  %13679 = vmatmul.mubr.msk.f32.vlgmr.msra.gmra.mxu1 %vm39_vm1, %v14866_v19 }
0x1cc6   :  { %13642 = vmatpush3.xpose.msk.msra.mxu0 %vm39_vm1, %v8886_v22  ;;  %13687 = vmatpush3.xpose.msk.msra.mxu1 %vm39_vm1, %v9490_v23 }
0x1cc7   :  { %13643 = vmatprep.mubr.msk.f32.mxu0 %vm14054_vm0, %v14053_v1  ;;  %13688 = vmatprep.mubr.msk.f32.mxu1 %vm14054_vm0, %v14053_v1 }
0x1cc8   :  { %13646 = vmatprep.subr.mxu0 %v14053_v1  ;;  %13696 = vmatprep.subr.mxu1 %v14053_v1 }
0x1cc9   :  { %13644 = vmatmul.mubr.msk.f32.vlgmr.msra.gmra.mxu0 %vm39_vm1, %v14866_v19  ;;  %13689 = vmatmul.mubr.msk.f32.vlgmr.msra.gmra.mxu1 %vm39_vm1, %v14866_v19 }
0x1cca   :  { %13647 = vmatpush3.xpose.msk.msra.mxu0 %vm39_vm1, %v8887_v24  ;;  %13648 = vmatprep.mubr.msk.f32.mxu0 %vm14054_vm0, %v14053_v1 }
0x1ccb   :  { %13651 = vmatprep.subr.mxu0 %v14053_v1  ;;  %13698 = vmatprep.mubr.msk.f32.mxu1 %vm14054_vm0, %v14053_v1 }
0x1ccd   :  { %13649 = vmatmul.mubr.msk.f32.vlgmr.msra.gmra.mxu0 %vm39_vm1, %v14866_v19 }
0x1cce   :  { %13652 = vmatpush3.xpose.msk.msra.mxu0 %vm39_vm1, %v9187_v25  ;;  %13653 = vmatprep.mubr.msk.f32.mxu0 %vm14054_vm0, %v14053_v1 }
0x1ccf   :  { %13656 = vmatprep.subr.mxu0 %v14053_v1 }
0x1cd1   :  { %13654 = vmatmul.mubr.msk.f32.vlgmr.msra.gmra.mxu0 %vm39_vm1, %v14866_v19 }
0x1cd2   :  { %13657 = vmatpush3.xpose.msk.msra.mxu0 %vm39_vm1, %v9188_v26  ;;  %13658 = vmatprep.mubr.msk.f32.mxu0 %vm14054_vm0, %v14053_v1 }
0x1cd3   :  { %13661 = vmatprep.subr.mxu0 %v14053_v1 }
0x1cd5   :  { %13659 = vmatmul.mubr.msk.f32.vlgmr.msra.gmra.mxu0 %vm39_vm1, %v14866_v19 }
0x1cd6   :  { %13662 = vmatpush3.xpose.msk.msra.mxu0 %vm39_vm1, %v9189_v27  ;;  %13663 = vmatprep.mubr.msk.f32.mxu0 %vm14054_vm0, %v14053_v1 }
0x1cd7   :  { %13671 = vmatprep.subr.mxu0 %v14053_v1 }
0x1cd9   :  { %13664 = vmatmul.mubr.msk.f32.vlgmr.msra.gmra.mxu0 %vm39_vm1, %v14866_v19 }
0x1cda   :  { %13672 = vmatpush3.xpose.msk.msra.mxu0 %vm39_vm1, %v9487_v28  ;;  %13673 = vmatprep.mubr.msk.f32.mxu0 %vm14054_vm0, %v14053_v1 }
0x1cdb   :  { %13681 = vmatprep.subr.mxu0 %v14053_v1 }
0x1cdd   :  { %13674 = vmatmul.mubr.msk.f32.vlgmr.msra.gmra.mxu0 %vm39_vm1, %v14866_v19 }
0x1cde   :  { %13682 = vmatpush3.xpose.msk.msra.mxu0 %vm39_vm1, %v9489_v38  ;;  %13683 = vmatprep.mubr.msk.f32.mxu0 %vm14054_vm0, %v14053_v1 }
0x1cdf   :  { %13691 = vmatprep.subr.mxu0 %v14053_v1 }
0x1ce1   :  { %13684 = vmatmul.mubr.msk.f32.vlgmr.msra.gmra.mxu0 %vm39_vm1, %v14866_v19 }
0x1ce2   :  { %13693 = vmatprep.mubr.msk.f32.mxu0 %vm14054_vm0, %v14053_v1 }
0x1d81   :  { %v8964_v42 = vpop.f32.mrf.mxu0  ;;  %v9483_v32 = vpop.f32.mrf.mxu1 }
0x1d82   :  { %v8965_v57 = vadd.f32 %v8964_v42, %v8888_v53  ;;  %v9484_v3 = vadd.f32 %v9483_v32, %v9194_v61 }
0x1d83   :  { %v13635_v33 = vpop.f32.mrf.mxu0  ;;  %v13670_v36 = vpop.f32.mrf.mxu1 }
0x1d85   :  { %v9037_v31 = vpop.f32.mrf.mxu0  ;;  %v9637_v55 = vpop.f32.mrf.mxu1 }
0x1d86   :  { %v9038_v0 = vadd.f32 %v9037_v31, %v8889_v58  ;;  %v9638_v13 = vadd.f32 %v9637_v55, %v9492_v8 }
0x1d87   :  { %v13640_v47 = vpop.f32.mrf.mxu0  ;;  %v13680_v52 = vpop.f32.mrf.mxu1 }
0x1d89   :  { %v9110_v37 = vpop.f32.mrf.mxu0  ;;  %v14936_v40 = vpop.f32.mrf.mxu1 }
0x1d8a   :  { %v9111_v9 = vadd.f32 %v9110_v37, %v8890_v5 }
0x1d8b   :  { %v13645_v41 = vpop.f32.mrf.mxu0  ;;  %v13690_v44 = vpop.f32.mrf.mxu1 }
0x1d8d   :  { %v9183_v45 = vpop.f32.mrf.mxu0 }
0x1d8e   :  { %v9184_v10 = vadd.f32 %v9183_v45, %v8891_v6  ;;  %v9493_v6 = vld [vmem:[#allocation2 + $0x700] sm:$0xff] }
0x1d8f   :  { %v13650_v49 = vpop.f32.mrf.mxu0 }
0x1d91   :  { %v9264_v30 = vpop.f32.mrf.mxu0 }
0x1d92   :  { %v9265_v15 = vadd.f32 %v9264_v30, %v9191_v50 }
0x1d93   :  { %v13655_v46 = vpop.f32.mrf.mxu0 }
0x1d94   :  { %13692 = vmatpush3.xpose.msk.msra.mxu0 %vm1016_vm3, %v9265_v15 }
0x1d95   :  { %v9337_v18 = vpop.f32.mrf.mxu0  ;;  %13701 = vmatprep.subr.mxu0 %v14053_v1 }
0x1d96   :  { %v9338_v60 = vadd.f32 %v9337_v18, %v9192_v56 }
0x1d97   :  { %v13660_v62 = vpop.f32.mrf.mxu0  ;;  %13694 = vmatmul.mubr.msk.f32.vlgmr.msra.gmra.mxu0 %vm1016_vm3, %v8965_v57 }
0x1d98   :  { %13697 = vmatpush3.xpose.msk.msra.mxu1 %vm1016_vm3, %v9338_v60  ;;  %13703 = vmatprep.mubr.msk.f32.mxu0 %vm14054_vm0, %v14053_v1 }
0x1d99   :  { %v9410_v2 = vpop.f32.mrf.mxu0  ;;  %13706 = vmatprep.subr.mxu1 %v14053_v1 }
0x1d9a   :  { %v9411_v7 = vadd.f32 %v9410_v2, %v9193_v63 }
0x1d9b   :  { %v13665_v29 = vpop.f32.mrf.mxu0  ;;  %13699 = vmatmul.mubr.msk.f32.vlgmr.msra.gmra.mxu1 %vm1016_vm3, %v9038_v0 }
0x1d9c   :  { %13702 = vmatpush3.xpose.msk.msra.mxu0 %vm1016_vm3, %v9411_v7  ;;  %13707 = vmatpush3.xpose.msk.msra.mxu1 %vm1016_vm3, %v9484_v3 }
0x1d9d   :  { %v9564_v11 = vpop.f32.mrf.mxu0  ;;  %13708 = vmatprep.mubr.msk.f32.mxu1 %vm14054_vm0, %v14053_v1  ;;  %13711 = vmatprep.subr.mxu0 %v14053_v1 }
0x1d9e   :  { %v9565_v54 = vadd.f32 %v9564_v11, %v9491_v34  ;;  %13716 = vmatprep.subr.mxu1 %v14053_v1  ;;  %v9494_v34 = vld [vmem:[#allocation2 + $0x708] sm:$0xff] }
0x1d9f   :  { %v13675_v51 = vpop.f32.mrf.mxu0  ;;  %13704 = vmatmul.mubr.msk.f32.vlgmr.msra.gmra.mxu0 %vm1016_vm3, %v9111_v9  ;;  %13709 = vmatmul.mubr.msk.f32.vlgmr.msra.gmra.mxu1 %vm1016_vm3, %v9184_v10  ;;  %v9784_v11 = vadd.f32 %v14936_v40, %v9494_v34  ;;  %v10431_v40 = vld [vmem:[#allocation2 + $0x710] sm:$0xff] }
0x1da0   :  { %13712 = vmatpush3.msra.mxu0 %v9565_v54  ;;  %13717 = vmatpush3.msra.mxu1 %v9638_v13 }
0x1da1   :  { %v14954_v14 = vpop.f32.mrf.mxu0  ;;  %13713 = vmatprep.mubr.msk.f32.mxu0 %vm14054_vm0, %v14053_v1  ;;  %13721 = vmatprep.subr.mxu0 %v14053_v1 }
0x1da2   :  { %13718 = vmatprep.mubr.msk.f32.mxu1 %vm14054_vm0, %v14053_v1  ;;  %13726 = vmatprep.subr.mxu1 %v14053_v1  ;;  %v9711_v29 = vadd.f32 %v14954_v14, %v9493_v6 }
0x1da3   :  { %v13685_v16 = vpop.f32.mrf.mxu0 }
0x1da4   :  { %v10432_v16 = vld [vmem:[#allocation2 + $0x718] sm:$0xff] }
0x1e57   :  { %v9859_v20 = vpop.f32.mrf.mxu0 }
0x1e58   :  { %v10091_v21 = vmul.f32 0.35355338, %v9859_v20  ;;  %v10433_v20 = vld [vmem:[#allocation2 + $0x720] sm:$0xff] }
0x1e59   :  { %v13695_v22 = vpop.f32.mrf.mxu0 }
0x1e5a   :  { %v10095_v23 = vsel %vm1016_vm3, %v10091_v21, -inf }
0x1e5b   :  { %v9935_v24 = vpop.f32.mrf.mxu1  ;;  %10096 = vmax.xlane.f32.xlu0 %v10095_v23  ;;  %v10434_v23 = vld [vmem:[#allocation2 + $0x728] sm:$0xff] }
0x1e5c   :  { %v10092_v25 = vmul.f32 0.35355338, %v9935_v24 }
0x1e5d   :  { %v13700_v26 = vpop.f32.mrf.mxu1 }
0x1e5e   :  { %v10098_v27 = vsel %vm1016_vm3, %v10092_v25, -inf }
0x1e5f   :  { %10099 = vmax.xlane.f32.xlu1 %v10098_v27  ;;  %v10011_v28 = vpop.f32.mrf.mxu0  ;;  %v10087_v38 = vpop.f32.mrf.mxu1 }
0x1e60   :  { %v10093_v42 = vmul.f32 0.35355338, %v10011_v28  ;;  %v10094_v32 = vmul.f32 0.35355338, %v10087_v38 }
0x1e61   :  { %v13705_v33 = vpop.f32.mrf.mxu0  ;;  %v13710_v36 = vpop.f32.mrf.mxu1 }
0x1e62   :  { %v10104_v31 = vsel %vm1016_vm3, %v10094_v32, -inf  ;;  %v10101_v55 = vsel %vm1016_vm3, %v10093_v42, -inf }
0x1e63   :  { %10105 = vmax.xlane.f32.xlu1 %v10104_v31  ;;  %10102 = vmax.xlane.f32.xlu0 %v10101_v55 }
0x1ee4   :  { %v10097_v47 = vpop.xlane.xlu0 %10096 }
0x1ee5   :  { %v10107_v52 = vsub.f32 %v10091_v21, %v10097_v47 }
0x1ee7   :  { %v10111_v37 = vmul.f32 1.442695, %v10107_v52 }
0x1ee8   :  { %v10100_v41 = vpop.xlane.xlu1 %10099 }
0x1ee9   :  { %13965 = vpow2.f32 %v10111_v37  ;;  %v10108_v44 = vsub.f32 %v10092_v25, %v10100_v41 }
0x1eeb   :  { %v10113_v45 = vmul.f32 1.442695, %v10108_v44 }
0x1eec   :  { %v10106_v49 = vpop.xlane.xlu1 %10105  ;;  %v10103_v50 = vpop.xlane.xlu0 %10102 }
0x1eed   :  { %13967 = vpow2.f32 %v10113_v45  ;;  %v10110_v30 = vsub.f32 %v10094_v32, %v10106_v49  ;;  %v10109_v53 = vsub.f32 %v10093_v42, %v10103_v50 }
0x1eef   :  { %v10117_v15 = vmul.f32 1.442695, %v10110_v30  ;;  %v10115_v46 = vmul.f32 1.442695, %v10109_v53  ;;  %v12544_v30 = vld [vmem:[#allocation2 + $0x730] ss:$0 sm:$0xff] }
0x1ef1   :  { %13969 = vpow2.f32 %v10117_v15 }
0x1ef2   :  { %13971 = vpow2.f32 %v10115_v46 }
0x1ef6   :  { %v13966_v56 = vpop.eup %13965 }
0x1ef7   :  { %v10119_v57 = vsel %vm1016_vm3, %v13966_v56, 0.0 }
0x1ef8   :  { %10120 = vadd.xlane.f32.xlu0 %v10119_v57 }
0x1efa   :  { %v13968_v18 = vpop.eup %13967 }
0x1efb   :  { %v10122_v58 = vsel %vm1016_vm3, %v13968_v18, 0.0 }
0x1efc   :  { %10123 = vadd.xlane.f32.xlu1 %v10122_v58  ;;  %v10768_v58 = vld [vmem:[#allocation2 + $0x748] sm:$0xff] }
0x1efe   :  { %v13970_v60 = vpop.eup %13969 }
0x1eff   :  { %v13972_v61 = vpop.eup %13971  ;;  %v10128_v62 = vsel %vm1016_vm3, %v13970_v60, 0.0 }
0x1f00   :  { %10129 = vadd.xlane.f32.xlu1 %v10128_v62  ;;  %v10125_v63 = vsel %vm1016_vm3, %v13972_v61, 0.0 }
0x1f01   :  { %10126 = vadd.xlane.f32.xlu0 %v10125_v63 }
0x1f81   :  { %v10121_v0 = vpop.xlane.xlu0 %10120 }
0x1f82   :  { %13973 = vrcp.f32 %v10121_v0 }
0x1f85   :  { %v10124_v2 = vpop.xlane.xlu1 %10123 }
0x1f86   :  { %13975 = vrcp.f32 %v10124_v2 }
0x1f89   :  { %v10130_v3 = vpop.xlane.xlu1 %10129 }
0x1f8a   :  { %13977 = vrcp.f32 %v10130_v3  ;;  %v10127_v5 = vpop.xlane.xlu0 %10126 }
0x1f8b   :  { %13979 = vrcp.f32 %v10127_v5 }
0x1f8f   :  { %v13974_v7 = vpop.eup %13973 }
0x1f90   :  { %v10135_v8 = vmul.f32 %v13974_v7, %v13966_v56  ;;  %v12545_v7 = vld [vmem:[#allocation2 + $0x738] ss:$0 sm:$0xff] }
0x1f92   :  { %13714 = vmatmul.mubr.msk.f32.vlgmr.msra.gmra.mxu0 %vm1016_vm3, %v10135_v8 }
0x1f93   :  { %v13976_v9 = vpop.eup %13975  ;;  %13722 = vmatpush3.msra.mxu0 %v9711_v29  ;;  %13723 = vmatprep.mubr.msk.f32.mxu0 %vm14054_vm0, %v14053_v1  ;;  %v12546_v29 = vld [vmem:[#allocation2 + $0x740] ss:$0 sm:$0xff] }
0x1f94   :  { %v10136_v10 = vmul.f32 %v13976_v9, %v13968_v18  ;;  %13731 = vmatprep.subr.mxu0 %v14053_v1 }
0x1f96   :  { %13719 = vmatmul.mubr.msk.f32.vlgmr.msra.gmra.mxu1 %vm1016_vm3, %v10136_v10  ;;  %v10770_v10 = vld [vmem:[#allocation2 + $0x758] sm:$0xff] }
0x1f97   :  { %v13978_v13 = vpop.eup %13977  ;;  %13727 = vmatpush3.msra.mxu1 %v9784_v11  ;;  %13728 = vmatprep.mubr.msk.f32.mxu1 %vm14054_vm0, %v14053_v1  ;;  %v10771_v11 = vld [vmem:[#allocation2 + $0x760] sm:$0xff] }
0x1f98   :  { %v13980_v54 = vpop.eup %13979  ;;  %v10138_v51 = vmul.f32 %v13978_v13, %v13970_v60  ;;  %13736 = vmatprep.subr.mxu1 %v14053_v1  ;;  %v10769_v60 = vld [vmem:[#allocation2 + $0x750] sm:$0xff] }
0x1f99   :  { %v10137_v14 = vmul.f32 %v13980_v54, %v13972_v61  ;;  %v4922_v13 = vld [vmem:[#allocation2 + $0x7b0] sm:$0xff]  ;;  %v4921_v54 = vld [vmem:[#allocation2 + $0x7a8] sm:$0xff] }
0x1f9a   :  { %13729 = vmatmul.mubr.msk.f32.vlgmr.msra.gmra.mxu1 %vm1016_vm3, %v10138_v51  ;;  %v5068_v51 = vadd.f32 %v14629_v35, %v4922_v13  ;;  %v10772_v35 = vld [vmem:[#allocation2 + $0x768] sm:$0xff] }
0x1f9b   :  { %13724 = vmatmul.mubr.msk.f32.vlgmr.msra.gmra.mxu0 %vm1016_vm3, %v10137_v14  ;;  %13738 = vmatprep.mubr.msk.f32.mxu1 %vm14054_vm0, %v14053_v1  ;;  %v4995_v14 = vadd.f32 %v14647_v59, %v4921_v54  ;;  %v10773_v59 = vld [vmem:[#allocation2 + $0x770] sm:$0xff] }
0x1f9c   :  { %13733 = vmatprep.mubr.msk.f32.mxu0 %vm14054_vm0, %v14053_v1  ;;  %13732 = vmatpush3.msra.mxu0 %v10431_v40  ;;  %v4924_v40 = vld [vmem:[#allocation2 + $0x7c0] sm:$0xff] }
0x1f9d   :  { %13741 = vmatprep.subr.mxu0 %v14053_v1  ;;  %13737 = vmatpush3.msra.mxu1 %v10432_v16  ;;  %v4923_v16 = vld [vmem:[#allocation2 + $0x7b8] sm:$0xff] }
0x1f9e   :  { %13746 = vmatprep.subr.mxu1 %v14053_v1 }
0x2052   :  { %v10208_v21 = vpop.f32.mrf.mxu0 }
0x2053   :  { %13734 = vmatmul.mubr.msk.f32.vlgmr.msra.gmra.mxu0 %vm1016_vm3, %v10208_v21 }
0x2054   :  { %v13715_v22 = vpop.f32.mrf.mxu0  ;;  %13742 = vmatpush3.msra.mxu0 %v10433_v20  ;;  %13743 = vmatprep.mubr.msk.f32.mxu0 %vm14054_vm0, %v14053_v1 }
0x2055   :  { %13751 = vmatprep.subr.mxu0 %v14053_v1 }
0x2056   :  { %v10281_v24 = vpop.f32.mrf.mxu1 }
0x2057   :  { %13739 = vmatmul.mubr.msk.f32.vlgmr.msra.gmra.mxu1 %vm1016_vm3, %v10281_v24  ;;  %v5214_v24 = vadd.f32 %v14633_v39, %v4924_v40 }
0x2058   :  { %v13720_v25 = vpop.f32.mrf.mxu1  ;;  %13747 = vmatpush3.msra.mxu1 %v10434_v23  ;;  %13748 = vmatprep.mubr.msk.f32.mxu1 %vm14054_vm0, %v14053_v1 }
0x2059   :  { %13756 = vmatprep.subr.mxu1 %v14053_v1  ;;  %v5141_v25 = vadd.f32 %v14650_v4, %v4923_v16 }
0x205a   :  { %v10427_v26 = vpop.f32.mrf.mxu1 }
0x205b   :  { %v10354_v27 = vpop.f32.mrf.mxu0  ;;  %13749 = vmatmul.mubr.msk.f32.vlgmr.msra.gmra.mxu1 %vm1016_vm3, %v10427_v26 }
0x205c   :  { %13744 = vmatmul.mubr.msk.f32.vlgmr.msra.gmra.mxu0 %vm1016_vm3, %v10354_v27  ;;  %v13730_v28 = vpop.f32.mrf.mxu1  ;;  %13758 = vmatprep.mubr.msk.f32.mxu1 %vm14054_vm0, %v14053_v1 }
0x205d   :  { %v13725_v38 = vpop.f32.mrf.mxu0  ;;  %13753 = vmatprep.mubr.msk.f32.mxu0 %vm14054_vm0, %v14053_v1  ;;  %13752 = vmatpush3.xpose.msk.msra.mxu0 %vm39_vm1, %v10768_v58  ;;  %v10774_v28 = vld [vmem:[#allocation2 + $0x778] sm:$0xff] }
0x205e   :  { %13757 = vmatpush3.xpose.msk.msra.mxu1 %vm39_vm1, %v10769_v60  ;;  %13761 = vmatprep.subr.mxu0 %v14053_v1  ;;  %v10775_v38 = vld [vmem:[#allocation2 + $0x780] sm:$0xff] }
0x205f   :  { %13766 = vmatprep.subr.mxu1 %v14053_v1 }
0x2113   :  { %v10504_v42 = vpop.f32.mrf.mxu0 }
0x2114   :  { %v10727_v55 = vsel %vm39_vm1, %v10504_v42, 0.0  ;;  %v5222_v42 = vld [vmem:[#allocation2 + $0x7f0] sm:$0xff] }
0x2115   :  { %v13735_v32 = vpop.f32.mrf.mxu0  ;;  %v5368_v4 = vadd.f32 %v14637_v43, %v5222_v42 }
0x2116   :  { %v5221_v32 = vld [vmem:[#allocation2 + $0x7e8] sm:$0xff] }
0x2117   :  { %v10577_v33 = vpop.f32.mrf.mxu1 }
0x2118   :  { %v10728_v36 = vsel %vm39_vm1, %v10577_v33, 0.0 }
0x2119   :  { %v13740_v31 = vpop.f32.mrf.mxu1  ;;  %v10729_v52 = vadd.f32 %v10728_v36, %v10727_v55  ;;  %v5295_v55 = vadd.f32 %v14657_v12, %v5221_v32 }
0x211b   :  { %v10723_v47 = vpop.f32.mrf.mxu1 }
0x211c   :  { %v10650_v37 = vpop.f32.mrf.mxu0  ;;  %v10732_v50 = vsel %vm39_vm1, %v10723_v47, 0.0 }
0x211d   :  { %v10730_v41 = vsel %vm39_vm1, %v10650_v37, 0.0  ;;  %v13750_v44 = vpop.f32.mrf.mxu1 }
0x211e   :  { %v10731_v45 = vadd.f32 %v10730_v41, %v10729_v52  ;;  %v13745_v49 = vpop.f32.mrf.mxu0 }
0x2120   :  { %v10733_v53 = vadd.f32 %v10732_v50, %v10731_v45 }
0x2122   :  { %v10739_v15 = vadd.f32 %v12544_v30, %v10733_v53 }
0x2124   :  { %v10740_v46 = vadd.f32 %v10739_v15, %v14866_v19 }
0x2126   :  { %v10741_v56 = vsel %vm39_vm1, %v10740_v46, 0.0  ;;  %v10745_v57 = vmul.f32 %v10740_v46, %v10740_v46 }
0x2127   :  { %10742 = vadd.xlane.f32.xlu0 %v10741_v56 }
0x2128   :  { %v10746_v18 = vsel %vm39_vm1, %v10745_v57, 0.0 }
0x2129   :  { %10747 = vadd.xlane.f32.xlu1 %v10746_v18 }
0x21b0   :  { %v10743_v61 = vpop.xlane.xlu0 %10742 }
0x21b1   :  { %v10744_v62 = vmul.f32 0.03125, %v10743_v61 }
0x21b2   :  { %v10748_v19 = vpop.xlane.xlu1 %10747 }
0x21b3   :  { %v10750_v63 = vmul.f32 %v10744_v62, %v10744_v62  ;;  %v10749_v0 = vmul.f32 0.03125, %v10748_v19  ;;  %v10752_v5 = vsub.f32 %v10740_v46, %v10744_v62 }
0x21b5   :  { %v10751_v2 = vsub.f32 %v10749_v0, %v10750_v63 }
0x21b7   :  { %v10753_v3 = vadd.f32 1e-05, %v10751_v2 }
0x21b9   :  { %13981 = vrsqrt.f32 %v10753_v3 }
0x21c6   :  { %v13982_v6 = vpop.eup %13981 }
0x21c7   :  { %v10755_v8 = vmul.f32 %v13982_v6, %v10752_v5 }
0x21c9   :  { %v10761_v34 = vmul.f32 %v12545_v7, %v10755_v8 }
0x21cb   :  { %v15013_v9 = vadd.f32 %v12546_v29, %v10761_v34 }
0x21cd   :  { %13754 = vmatmul.mubr.msk.f32.vlgmr.msra.gmra.mxu0 %vm39_vm1, %v15013_v9  ;;  %13759 = vmatmul.mubr.msk.f32.vlgmr.msra.gmra.mxu1 %vm39_vm1, %v15013_v9 }
0x21ce   :  { %13762 = vmatpush3.xpose.msk.msra.mxu0 %vm39_vm1, %v10770_v10  ;;  %13767 = vmatpush3.xpose.msk.msra.mxu1 %vm39_vm1, %v10771_v11 }
0x21cf   :  { %13763 = vmatprep.mubr.msk.f32.mxu0 %vm14054_vm0, %v14053_v1  ;;  %13768 = vmatprep.mubr.msk.f32.mxu1 %vm14054_vm0, %v14053_v1 }
0x21d0   :  { %13771 = vmatprep.subr.mxu0 %v14053_v1  ;;  %13776 = vmatprep.subr.mxu1 %v14053_v1 }
0x21d1   :  { %13764 = vmatmul.mubr.msk.f32.vlgmr.msra.gmra.mxu0 %vm39_vm1, %v15013_v9  ;;  %13769 = vmatmul.mubr.msk.f32.vlgmr.msra.gmra.mxu1 %vm39_vm1, %v15013_v9 }
0x21d2   :  { %13772 = vmatpush3.xpose.msk.msra.mxu0 %vm1016_vm3, %v4995_v14  ;;  %13777 = vmatpush3.xpose.msk.msra.mxu1 %vm1016_vm3, %v5068_v51 }
0x21d3   :  { %13773 = vmatprep.mubr.msk.f32.mxu0 %vm14054_vm0, %v14053_v1  ;;  %13778 = vmatprep.mubr.msk.f32.mxu1 %vm14054_vm0, %v14053_v1 }
0x21d4   :  { %13781 = vmatprep.subr.mxu0 %v14053_v1  ;;  %13786 = vmatprep.subr.mxu1 %v14053_v1 }
0x228d   :  { %v10848_v20 = vpop.f32.mrf.mxu0  ;;  %v10921_v21 = vpop.f32.mrf.mxu1 }
0x228e   :  { %v10849_v22 = vadd.f32 %v10848_v20, %v10772_v35  ;;  %v10922_v23 = vadd.f32 %v10921_v21, %v10773_v59  ;;  %v5224_v20 = vld [vmem:[#allocation2 + $0x800] sm:$0xff] }
0x228f   :  { %v13755_v26 = vpop.f32.mrf.mxu0  ;;  %v13760_v27 = vpop.f32.mrf.mxu1 }
0x2290   :  { %13774 = vmatmul.mubr.msk.f32.vlgmr.msra.gmra.mxu0 %vm1016_vm3, %v10849_v22  ;;  %13779 = vmatmul.mubr.msk.f32.vlgmr.msra.gmra.mxu1 %vm1016_vm3, %v10922_v23  ;;  %v5223_v22 = vld [vmem:[#allocation2 + $0x7f8] sm:$0xff] }
0x2291   :  { %13782 = vmatpush3.xpose.msk.msra.mxu0 %vm1016_vm3, %v5141_v25  ;;  %13787 = vmatpush3.xpose.msk.msra.mxu1 %vm1016_vm3, %v5214_v24  ;;  %v10994_v33 = vpop.f32.mrf.mxu0  ;;  %v11067_v36 = vpop.f32.mrf.mxu1  ;;  %v5514_v25 = vadd.f32 %v14641_v48, %v5224_v20  ;;  %v5441_v27 = vadd.f32 %v14663_v17, %v5223_v22  ;;  %v11715_v48 = vld [vmem:[#allocation2 + $0x808] sm:$0xff]  ;;  %v11716_v17 = vld [vmem:[#allocation2 + $0x810] sm:$0xff] }
0x2292   :  { %v10995_v31 = vadd.f32 %v10994_v33, %v10774_v28  ;;  %v11068_v39 = vadd.f32 %v11067_v36, %v10775_v38  ;;  %13783 = vmatprep.mubr.msk.f32.mxu0 %vm14054_vm0, %v14053_v1  ;;  %13788 = vmatprep.mubr.msk.f32.mxu1 %vm14054_vm0, %v14053_v1  ;;  %v11718_v33 = vld [vmem:[#allocation2 + $0x820] sm:$0xff] }
0x2293   :  { %v13765_v47 = vpop.f32.mrf.mxu0  ;;  %v13770_v52 = vpop.f32.mrf.mxu1  ;;  %13791 = vmatprep.subr.mxu0 %v14053_v1  ;;  %13796 = vmatprep.subr.mxu1 %v14053_v1 }
0x2294   :  { %13784 = vmatmul.mubr.msk.f32.vlgmr.msra.gmra.mxu0 %vm1016_vm3, %v10995_v31  ;;  %13789 = vmatmul.mubr.msk.f32.vlgmr.msra.gmra.mxu1 %vm1016_vm3, %v11068_v39  ;;  %v11717_v31 = vld [vmem:[#allocation2 + $0x818] sm:$0xff] }
0x2295   :  { %13792 = vmatpush3.msra.mxu0 %v5295_v55  ;;  %13797 = vmatpush3.msra.mxu1 %v5368_v4 }
0x2296   :  { %13793 = vmatprep.mubr.msk.f32.mxu0 %vm14054_vm0, %v14053_v1  ;;  %13798 = vmatprep.mubr.msk.f32.mxu1 %vm14054_vm0, %v14053_v1 }
0x2297   :  { %13801 = vmatprep.subr.mxu0 %v14053_v1  ;;  %13806 = vmatprep.subr.mxu1 %v14053_v1 }
0x2350   :  { %v11143_v43 = vpop.f32.mrf.mxu0  ;;  %v11219_v12 = vpop.f32.mrf.mxu1 }
0x2351   :  { %v11375_v37 = vmul.f32 0.35355338, %v11143_v43  ;;  %v11376_v41 = vmul.f32 0.35355338, %v11219_v12 }
0x2352   :  { %v13775_v44 = vpop.f32.mrf.mxu0  ;;  %v13780_v45 = vpop.f32.mrf.mxu1 }
0x2353   :  { %v11382_v49 = vsel %vm1016_vm3, %v11376_v41, -inf  ;;  %v11379_v50 = vsel %vm1016_vm3, %v11375_v37, -inf }
0x2354   :  { %11383 = vmax.xlane.f32.xlu1 %v11382_v49  ;;  %v11371_v30 = vpop.f32.mrf.mxu1  ;;  %11380 = vmax.xlane.f32.xlu0 %v11379_v50  ;;  %v11295_v53 = vpop.f32.mrf.mxu0 }
0x2355   :  { %v11378_v15 = vmul.f32 0.35355338, %v11371_v30  ;;  %v11377_v46 = vmul.f32 0.35355338, %v11295_v53 }
0x2356   :  { %v13785_v56 = vpop.f32.mrf.mxu0  ;;  %v13790_v57 = vpop.f32.mrf.mxu1 }
0x2357   :  { %v11388_v18 = vsel %vm1016_vm3, %v11378_v15, -inf  ;;  %v11385_v58 = vsel %vm1016_vm3, %v11377_v46, -inf }
0x2358   :  { %11389 = vmax.xlane.f32.xlu1 %v11388_v18  ;;  %11386 = vmax.xlane.f32.xlu0 %v11385_v58 }
0x23dd   :  { %v11384_v60 = vpop.xlane.xlu1 %11383  ;;  %v11381_v61 = vpop.xlane.xlu0 %11380 }
0x23de   :  { %v11392_v62 = vsub.f32 %v11376_v41, %v11384_v60  ;;  %v11391_v19 = vsub.f32 %v11375_v37, %v11381_v61  ;;  %v12571_v60 = vld [vmem:[#allocation2 + $0x828] ss:$0 sm:$0xff] }
0x23e0   :  { %v11397_v63 = vmul.f32 1.442695, %v11392_v62  ;;  %v11395_v0 = vmul.f32 1.442695, %v11391_v19 }
0x23e1   :  { %v11390_v2 = vpop.xlane.xlu1 %11389  ;;  %v11387_v3 = vpop.xlane.xlu0 %11386 }
0x23e2   :  { %13983 = vpow2.f32 %v11397_v63  ;;  %v11394_v5 = vsub.f32 %v11378_v15, %v11390_v2  ;;  %v11393_v6 = vsub.f32 %v11377_v46, %v11387_v3  ;;  %v12055_v3 = vld [vmem:[#allocation2 + $0x858] sm:$0xff] }
0x23e3   :  { %13985 = vpow2.f32 %v11395_v0 }
0x23e4   :  { %v11401_v7 = vmul.f32 1.442695, %v11394_v5  ;;  %v11399_v8 = vmul.f32 1.442695, %v11393_v6  ;;  %v12054_v5 = vld [vmem:[#allocation2 + $0x850] sm:$0xff]  ;;  %v12053_v6 = vld [vmem:[#allocation2 + $0x848] sm:$0xff] }
0x23e6   :  { %13987 = vpow2.f32 %v11401_v7  ;;  %v12150_v7 = vld [vmem:[#allocation2 + $0x8e0] sm:$0xff] }
0x23e7   :  { %13989 = vpow2.f32 %v11399_v8  ;;  %v12149_v8 = vld [vmem:[#allocation2 + $0x8d8] sm:$0xff] }
0x23ef   :  { %v13984_v29 = vpop.eup %13983 }
0x23f0   :  { %v13986_v34 = vpop.eup %13985  ;;  %v11406_v10 = vsel %vm1016_vm3, %v13984_v29, 0.0 }
0x23f1   :  { %11407 = vadd.xlane.f32.xlu1 %v11406_v10  ;;  %v11403_v11 = vsel %vm1016_vm3, %v13986_v34, 0.0  ;;  %v12146_v10 = vld [vmem:[#allocation2 + $0x8c0] sm:$0xff] }
0x23f2   :  { %11404 = vadd.xlane.f32.xlu0 %v11403_v11  ;;  %v12145_v11 = vld [vmem:[#allocation2 + $0x8b8] sm:$0xff] }
0x23f3   :  { %v13988_v13 = vpop.eup %13987 }
0x23f4   :  { %v13990_v54 = vpop.eup %13989  ;;  %v11412_v51 = vsel %vm1016_vm3, %v13988_v13, 0.0 }
0x23f5   :  { %11413 = vadd.xlane.f32.xlu1 %v11412_v51  ;;  %v11409_v14 = vsel %vm1016_vm3, %v13990_v54, 0.0  ;;  %v12142_v51 = vld [vmem:[#allocation2 + $0x8a0] sm:$0xff] }
0x23f6   :  { %11410 = vadd.xlane.f32.xlu0 %v11409_v14  ;;  %v12141_v14 = vld [vmem:[#allocation2 + $0x898] sm:$0xff] }
0x247a   :  { %v11408_v35 = vpop.xlane.xlu1 %11407 }
0x247b   :  { %13991 = vrcp.f32 %v11408_v35  ;;  %v11405_v59 = vpop.xlane.xlu0 %11404  ;;  %v12140_v35 = vld [vmem:[#allocation2 + $0x890] sm:$0xff] }
0x247c   :  { %13993 = vrcp.f32 %v11405_v59  ;;  %v12139_v59 = vld [vmem:[#allocation2 + $0x888] sm:$0xff] }
0x247e   :  { %v11414_v40 = vpop.xlane.xlu1 %11413 }
0x247f   :  { %13995 = vrcp.f32 %v11414_v40  ;;  %v11411_v16 = vpop.xlane.xlu0 %11410  ;;  %v12138_v40 = vld [vmem:[#allocation2 + $0x880] sm:$0xff] }
0x2480   :  { %13997 = vrcp.f32 %v11411_v16 }
0x2488   :  { %v13992_v21 = vpop.eup %13991 }
0x2489   :  { %v13994_v23 = vpop.eup %13993  ;;  %v11420_v24 = vmul.f32 %v13992_v21, %v13984_v29  ;;  %v12148_v29 = vld [vmem:[#allocation2 + $0x8d0] sm:$0xff] }
0x248a   :  { %v11419_v26 = vmul.f32 %v13994_v23, %v13986_v34  ;;  %v12147_v34 = vld [vmem:[#allocation2 + $0x8c8] sm:$0xff] }
0x248b   :  { %13799 = vmatmul.mubr.msk.f32.vlgmr.msra.gmra.mxu1 %vm1016_vm3, %v11420_v24 }
0x248c   :  { %v13996_v28 = vpop.eup %13995  ;;  %13794 = vmatmul.mubr.msk.f32.vlgmr.msra.gmra.mxu0 %vm1016_vm3, %v11419_v26  ;;  %13807 = vmatpush3.msra.mxu1 %v5514_v25 }
0x248d   :  { %v13998_v38 = vpop.eup %13997  ;;  %v11422_v42 = vmul.f32 %v13996_v28, %v13988_v13  ;;  %13802 = vmatpush3.msra.mxu0 %v5441_v27  ;;  %13803 = vmatprep.mubr.msk.f32.mxu0 %vm14054_vm0, %v14053_v1  ;;  %v12144_v13 = vld [vmem:[#allocation2 + $0x8b0] sm:$0xff] }
0x248e   :  { %v11421_v32 = vmul.f32 %v13998_v38, %v13990_v54  ;;  %13808 = vmatprep.mubr.msk.f32.mxu1 %vm14054_vm0, %v14053_v1  ;;  %13811 = vmatprep.subr.mxu0 %v14053_v1  ;;  %v12143_v54 = vld [vmem:[#allocation2 + $0x8a8] sm:$0xff]  ;;  %v12572_v28 = vld [vmem:[#allocation2 + $0x830] ss:$0 sm:$0xff] }
0x248f   :  { %13809 = vmatmul.mubr.msk.f32.vlgmr.msra.gmra.mxu1 %vm1016_vm3, %v11422_v42  ;;  %13816 = vmatprep.subr.mxu1 %v14053_v1  ;;  %v12573_v42 = vld [vmem:[#allocation2 + $0x838] ss:$0 sm:$0xff] }
0x2490   :  { %13804 = vmatmul.mubr.msk.f32.vlgmr.msra.gmra.mxu0 %vm1016_vm3, %v11421_v32  ;;  %13818 = vmatprep.mubr.msk.f32.mxu1 %vm14054_vm0, %v14053_v1 }
0x2491   :  { %13812 = vmatpush3.msra.mxu0 %v11715_v48  ;;  %13813 = vmatprep.mubr.msk.f32.mxu0 %vm14054_vm0, %v14053_v1 }
0x2492   :  { %13821 = vmatprep.subr.mxu0 %v14053_v1  ;;  %13817 = vmatpush3.msra.mxu1 %v11716_v17  ;;  %v12137_v17 = vld [vmem:[#allocation2 + $0x878] sm:$0xff] }
0x2493   :  { %13826 = vmatprep.subr.mxu1 %v14053_v1 }
0x254b   :  { %v11565_v36 = vpop.f32.mrf.mxu1 }
0x254c   :  { %v11492_v39 = vpop.f32.mrf.mxu0  ;;  %13819 = vmatmul.mubr.msk.f32.vlgmr.msra.gmra.mxu1 %vm1016_vm3, %v11565_v36  ;;  %v12135_v36 = vld [vmem:[#allocation2 + $0x868] sm:$0xff] }
0x254d   :  { %13814 = vmatmul.mubr.msk.f32.vlgmr.msra.gmra.mxu0 %vm1016_vm3, %v11492_v39  ;;  %v13800_v4 = vpop.f32.mrf.mxu1  ;;  %13827 = vmatpush3.msra.mxu1 %v11718_v33  ;;  %v12136_v33 = vld [vmem:[#allocation2 + $0x870] sm:$0xff] }
0x254e   :  { %v13795_v55 = vpop.f32.mrf.mxu0  ;;  %13822 = vmatpush3.msra.mxu0 %v11717_v31  ;;  %13823 = vmatprep.mubr.msk.f32.mxu0 %vm14054_vm0, %v14053_v1  ;;  %v12574_v31 = vld [vmem:[#allocation2 + $0x860] ss:$0 sm:$0xff] }
0x254f   :  { %v11711_v47 = vpop.f32.mrf.mxu1  ;;  %13828 = vmatprep.mubr.msk.f32.mxu1 %vm14054_vm0, %v14053_v1  ;;  %13831 = vmatprep.subr.mxu0 %v14053_v1 }
0x2550   :  { %v11638_v52 = vpop.f32.mrf.mxu0  ;;  %13829 = vmatmul.mubr.msk.f32.vlgmr.msra.gmra.mxu1 %vm1016_vm3, %v11711_v47  ;;  %13842 = vmatprep.subr.mxu1 %v14053_v1 }
0x2551   :  { %13824 = vmatmul.mubr.msk.f32.vlgmr.msra.gmra.mxu0 %vm1016_vm3, %v11638_v52  ;;  %v13810_v43 = vpop.f32.mrf.mxu1  ;;  %13874 = vmatprep.mubr.msk.f32.mxu1 %vm14054_vm0, %v14053_v1  ;;  %v12576_v52 = vld [vmem:[#allocation2 + $0x8e8] ss:$0 sm:$0xff] }
0x2552   :  { %v13805_v12 = vpop.f32.mrf.mxu0  ;;  %13839 = vmatprep.mubr.msk.f32.mxu0 %vm14054_vm0, %v14053_v1  ;;  %13832 = vmatpush3.msra.mxu0 %v12055_v3 }
0x2553   :  { %13833 = vmatprep.subr.mxu0 %v14053_v1  ;;  %13843 = vmatpush3.msra.mxu1 %v12150_v7 }
0x2554   :  { %13834 = vmatpush3.msra.mxu0 %v12054_v5  ;;  %13844 = vmatprep.subr.mxu1 %v14053_v1 }
0x2555   :  { %13835 = vmatprep.subr.mxu0 %v14053_v1  ;;  %13845 = vmatpush3.msra.mxu1 %v12149_v8 }
0x2556   :  { %13836 = vmatpush3.msra.mxu0 %v12053_v6  ;;  %13846 = vmatprep.subr.mxu1 %v14053_v1 }
0x2557   :  { %13837 = vmatprep.subr.mxu0 %v14053_v1  ;;  %13847 = vmatpush3.msra.mxu1 %v12148_v29 }
0x2558   :  { %13848 = vmatprep.subr.mxu1 %v14053_v1 }
0x2559   :  { %13849 = vmatpush3.msra.mxu1 %v12147_v34 }
0x255a   :  { %13850 = vmatprep.subr.mxu1 %v14053_v1 }
0x255b   :  { %13851 = vmatpush3.msra.mxu1 %v12146_v10 }
0x255c   :  { %13852 = vmatprep.subr.mxu1 %v14053_v1 }
0x255d   :  { %13853 = vmatpush3.msra.mxu1 %v12145_v11  ;;  %v12579_v11 = vld [vmem:[#allocation2 + $0x900] ss:$0 sm:$0xff] }
0x255e   :  { %13854 = vmatprep.subr.mxu1 %v14053_v1 }
0x255f   :  { %13855 = vmatpush3.msra.mxu1 %v12144_v13 }
0x2560   :  { %13856 = vmatprep.subr.mxu1 %v14053_v1 }
0x2561   :  { %13857 = vmatpush3.msra.mxu1 %v12143_v54  ;;  %v12580_v54 = vld [vmem:[#allocation2 + $0x908] ss:$0 sm:$0xff] }
0x2562   :  { %13858 = vmatprep.subr.mxu1 %v14053_v1 }
0x2563   :  { %13859 = vmatpush3.msra.mxu1 %v12142_v51 }
0x2564   :  { %13860 = vmatprep.subr.mxu1 %v14053_v1 }
0x2565   :  { %13861 = vmatpush3.msra.mxu1 %v12141_v14 }
0x2566   :  { %13862 = vmatprep.subr.mxu1 %v14053_v1 }
0x2567   :  { %13863 = vmatpush3.msra.mxu1 %v12140_v35 }
0x2568   :  { %13864 = vmatprep.subr.mxu1 %v14053_v1 }
0x2569   :  { %13865 = vmatpush3.msra.mxu1 %v12139_v59 }
0x256a   :  { %13866 = vmatprep.subr.mxu1 %v14053_v1 }
0x256b   :  { %13867 = vmatpush3.msra.mxu1 %v12138_v40 }
0x256c   :  { %13868 = vmatprep.subr.mxu1 %v14053_v1 }
0x256d   :  { %13869 = vmatpush3.msra.mxu1 %v12137_v17 }
0x256e   :  { %13870 = vmatprep.subr.mxu1 %v14053_v1 }
0x256f   :  { %13871 = vmatpush3.msra.mxu1 %v12136_v33 }
0x2570   :  { %13872 = vmatprep.subr.mxu1 %v14053_v1 }
0x2571   :  { %13873 = vmatpush3.msra.mxu1 %v12135_v36 }
0x260c   :  { %v11861_v37 = vpop.f32.mrf.mxu1 }
0x260d   :  { %v11788_v41 = vpop.f32.mrf.mxu0  ;;  %v12012_v45 = vsel %vm39_vm1, %v11861_v37, 0.0 }
0x260e   :  { %v12011_v44 = vsel %vm39_vm1, %v11788_v41, 0.0  ;;  %v13820_v49 = vpop.f32.mrf.mxu1 }
0x260f   :  { %v13815_v50 = vpop.f32.mrf.mxu0  ;;  %v12013_v53 = vadd.f32 %v12012_v45, %v12011_v44 }
0x2610   :  { %v12007_v30 = vpop.f32.mrf.mxu1 }
0x2611   :  { %v11934_v15 = vpop.f32.mrf.mxu0  ;;  %v12016_v58 = vsel %vm39_vm1, %v12007_v30, 0.0 }
0x2612   :  { %v12014_v46 = vsel %vm39_vm1, %v11934_v15, 0.0  ;;  %v13830_v56 = vpop.f32.mrf.mxu1 }
0x2613   :  { %v12015_v57 = vadd.f32 %v12014_v46, %v12013_v53  ;;  %v13825_v18 = vpop.f32.mrf.mxu0 }
0x2615   :  { %v12017_v61 = vadd.f32 %v12016_v58, %v12015_v57  ;;  %v12577_v58 = vld [vmem:[#allocation2 + $0x8f0] ss:$0 sm:$0xff] }
0x2617   :  { %v12023_v62 = vadd.f32 %v12571_v60, %v12017_v61  ;;  %v12578_v61 = vld [vmem:[#allocation2 + $0x8f8] ss:$0 sm:$0xff] }
0x2619   :  { %v15108_v19 = vadd.f32 %v12023_v62, %v15013_v9  ;;  %v12052_v9 = vld [vmem:[#allocation2 + $0x840] sm:$0xff] }
0x261a   :  { %13838 = vmatpush3.msra.mxu0 %v12052_v9 }
0x261b   :  { %v12025_v63 = vsel %vm39_vm1, %v15108_v19, 0.0  ;;  %v12029_v0 = vmul.f32 %v15108_v19, %v15108_v19 }
0x261c   :  { %12026 = vadd.xlane.f32.xlu0 %v12025_v63 }
0x261d   :  { %v12030_v2 = vsel %vm39_vm1, %v12029_v0, 0.0 }
0x261e   :  { %12031 = vadd.xlane.f32.xlu1 %v12030_v2 }
0x26a5   :  { %v12027_v16 = vpop.xlane.xlu0 %12026 }
0x26a6   :  { %v12028_v20 = vmul.f32 0.03125, %v12027_v16 }
0x26a7   :  { %v12032_v21 = vpop.xlane.xlu1 %12031 }
0x26a8   :  { %v12034_v22 = vmul.f32 %v12028_v20, %v12028_v20  ;;  %v12033_v23 = vmul.f32 0.03125, %v12032_v21  ;;  %v12036_v26 = vsub.f32 %v15108_v19, %v12028_v20 }
0x26aa   :  { %v12035_v24 = vsub.f32 %v12033_v23, %v12034_v22 }
0x26ac   :  { %v12037_v25 = vadd.f32 1e-05, %v12035_v24 }
0x26ae   :  { %13999 = vrsqrt.f32 %v12037_v25 }
0x26bb   :  { %v14000_v27 = vpop.eup %13999 }
0x26bc   :  { %v12039_v38 = vmul.f32 %v14000_v27, %v12036_v26 }
0x26be   :  { %v12045_v32 = vmul.f32 %v12572_v28, %v12039_v38 }
0x26c0   :  { %v12051_v48 = vadd.f32 %v12573_v42, %v12045_v32 }
0x26c2   :  { %13840 = vmatmul.mubr.msk.f32.vlgmr.msra.gmra.mxu0 %vm39_vm1, %v12051_v48 }
0x2782   :  { %v12130_v39 = vpop.f32.mrf.mxu0 }
0x2783   :  { %v12131_v4 = vadd.f32 %v12574_v31, %v12130_v39 }
0x2784   :  { %v13841_v55 = vpop.f32.mrf.mxu0 }
0x2785   :  { %v12134_v47 = vmax.f32 %v12131_v4, 0.0 }
0x2787   :  { %13875 = vmatmul.mubr.f32.vlgmr.msra.gmra.mxu1 %v12134_v47 }
0x2847   :  { %v12222_v43 = vpop.f32.mrf.mxu1 }
0x2848   :  { %v12223_v12 = vadd.f32 %v12576_v52, %v12222_v43 }
0x2849   :  { %v13876_v37 = vpop.f32.mrf.mxu1 }
0x284a   :  { %v12226_v41 = vadd.f32 %v12223_v12, %v12051_v48 }
0x284c   :  { %v12227_v44 = vsel %vm39_vm1, %v12226_v41, 0.0  ;;  %v12231_v45 = vmul.f32 %v12226_v41, %v12226_v41 }
0x284d   :  { %12228 = vadd.xlane.f32.xlu0 %v12227_v44 }
0x284e   :  { %v12232_v49 = vsel %vm39_vm1, %v12231_v45, 0.0 }
0x284f   :  { %12233 = vadd.xlane.f32.xlu1 %v12232_v49 }
0x28d6   :  { %v12229_v1 = vpop.xlane.xlu0 %12228 }
0x28d7   :  { %v12230_v50 = vmul.f32 0.03125, %v12229_v1 }
0x28d8   :  { %v12234_v30 = vpop.xlane.xlu1 %12233 }
0x28d9   :  { %v12236_v53 = vmul.f32 %v12230_v50, %v12230_v50  ;;  %v12235_v15 = vmul.f32 0.03125, %v12234_v30  ;;  %v12238_v57 = vsub.f32 %v12226_v41, %v12230_v50 }
0x28db   :  { %v12237_v46 = vsub.f32 %v12235_v15, %v12236_v53 }
0x28dd   :  { %v12239_v56 = vadd.f32 1e-05, %v12237_v46 }
0x28df   :  { %14001 = vrsqrt.f32 %v12239_v56 }
0x28ec   :  { %v14002_v18 = vpop.eup %14001 }
0x28ed   :  { %v12241_v60 = vmul.f32 %v14002_v18, %v12238_v57 }
0x28ef   :  { %v12247_v62 = vmul.f32 %v12577_v58, %v12241_v60 }
0x28f1   :  { %v12253_v19 = vadd.f32 %v12578_v61, %v12247_v62 }
0x28f3   :  { %v12254_v63 = vsel %vm39_vm1, %v12253_v19, 0.0  ;;  %v12258_v0 = vmul.f32 %v12253_v19, %v12253_v19 }
0x28f4   :  { %12255 = vadd.xlane.f32.xlu0 %v12254_v63 }
0x28f5   :  { %v12259_v2 = vsel %vm39_vm1, %v12258_v0, 0.0 }
0x28f6   :  { %12260 = vadd.xlane.f32.xlu1 %v12259_v2 }
0x297d   :  { %v12256_v3 = vpop.xlane.xlu0 %12255 }
0x297e   :  { %v12257_v5 = vmul.f32 0.03125, %v12256_v3 }
0x297f   :  { %v12261_v6 = vpop.xlane.xlu1 %12260 }
0x2980   :  { %v12263_v9 = vmul.f32 %v12257_v5, %v12257_v5  ;;  %v12262_v7 = vmul.f32 0.03125, %v12261_v6  ;;  %v12265_v34 = vsub.f32 %v12253_v19, %v12257_v5 }
0x2982   :  { %v12264_v8 = vsub.f32 %v12262_v7, %v12263_v9 }
0x2984   :  { %v12266_v29 = vadd.f32 1e-05, %v12264_v8 }
0x2986   :  { %14003 = vrsqrt.f32 %v12266_v29 }
0x2993   :  { %v14004_v10 = vpop.eup %14003 }
0x2994   :  { %v12268_v13 = vmul.f32 %v14004_v10, %v12265_v34 }
0x2996   :  { %v12274_v51 = vmul.f32 %v12579_v11, %v12268_v13 }
0x2998   :  { %v12280_v14 = vadd.f32 %v12580_v54, %v12274_v51 }
0x299a   :  { %12281 = vst.msk [vmem:[#allocation5] sm:$0xff] %vm39_vm1, %v12280_v14 }
0x299b   :  { %14036 = shalt.err (!%p14033_p9)
}
0x299c   :  { %12291 = dma.vmem_to_hbm [thread:$0]  %s12289_s1, 128, %s15145_s2, [#allocation4]  }
0x299d   :  { %14047 = dma.done.wait [#allocation4], 128  }
0x299e   :  { %14048 = vsyncadd [#allocation4], 4294967168 }
0x299f   :  { %12295 = vsyncpa [#allocation3], 1 }
0x29a0   :  { %12296 = vsyncpa [#allocation4], 1 }

</bundles_post_ra>
